<compile_context>
chip_gen: v6e
topology: v6e:2x2x1
jax: 0.10.0
libtpu: 0.0.40
codegen_flags: <defaults>
</compile_context>

<pallas_src>
import functools
import math

import numpy as np

import jax
import jax.numpy as jnp
from jax.experimental import pallas as pl
from jax.experimental.pallas import tpu as pltpu  # noqa: F401  (TPU backend)

BN_EPS = 1e-5

# Columns of the packed per-channel parameter matrix (Cin, 9).
(_POS_B, _BN1_G, _BN1_B, _C1_B, _ATTN_B, _C2_B, _BN2_G, _BN2_B, _F2_B) = range(9)


def _gelu_tanh(x):
    # TODO(synk): PyTorch nn.GELU() defaults to the exact erf formulation; erf
    # has no guaranteed Mosaic lowering, so the tanh approximation is used
    # in-kernel (max abs deviation ~1e-3, inside the test tolerance).
    c = math.sqrt(2.0 / math.pi)
    return 0.5 * x * (1.0 + jnp.tanh(c * x * (1.0 + 0.044715 * x * x)))


def _tap_masks(k, n, h, w):
    """(k*k, 1, n*h*w) float mask: 1 where tap (dy,dx) stays inside its image."""
    p = k // 2
    pos = np.arange(n * h * w)
    hh = (pos % (h * w)) // w
    ww = pos % w
    masks = []
    for dy in range(-p, p + 1):
        for dx in range(-p, p + 1):
            ok = ((hh + dy >= 0) & (hh + dy < h) &
                  (ww + dx >= 0) & (ww + dx < w))
            masks.append(ok.astype(np.float32))
    return jnp.asarray(np.stack(masks)[:, None, :])


# ----------------------------------------------------------------------------
# Single fused kernel.  Activation layout: (C, M) with M = N*H*W in the lane
# dim (pixels in lanes), channels in sublanes.  All weights / biases / masks
# are whole-array VMEM operands; no grid (one invocation).
# ----------------------------------------------------------------------------
def _metablock_kernel(x_ref, vec_ref,
                      pos_w_ref, pos_m_ref,
                      attn_w_ref, attn_m_ref,
                      c1_w_ref, c2_w_ref,
                      f1_w_ref, f1_b_ref, f2_w_ref,
                      red_w_ref, red_b_ref,
                      o_ref, *, width, inv_m):

    vec = vec_ref[...]                       # (Cin, 9): all per-channel params

    def col(j):                              # (Cin, 1) column j of packed params
        return vec[:, j:j + 1]

    def dwconv(v, w_ref_, m_ref_, bias, k):
        # Depthwise KxK conv on the flattened (C, M) layout.  Spatial tap
        # (dy, dx) is a lane shift of dy*width+dx; the zero halo keeps slices
        # in bounds and the precomputed masks zero any contribution that
        # would cross a row / image boundary.  The center tap needs no mask.
        p = k // 2
        halo = p * width + p
        cdim, mdim = v.shape
        zpad = jnp.zeros((cdim, halo), jnp.float32)
        vp = jnp.concatenate([zpad, v, zpad], axis=1)
        acc = None
        t = 0
        for dy in range(-p, p + 1):
            for dx in range(-p, p + 1):
                off = halo + dy * width + dx
                tap = vp[:, off:off + mdim]
                wt = w_ref_[t]                                 # (C, 1)
                if dy == 0 and dx == 0:
                    term = wt * tap                            # interior: mask == 1
                else:
                    term = (wt * m_ref_[t]) * tap
                acc = term if acc is None else acc + term
                t += 1
        return acc + bias

    def bn(v, g, b):
        # Batch-stat BatchNorm: per-channel mean / biased variance over the
        # M = N*H*W lanes, two-pass centered variance.
        mean = jnp.sum(v, axis=1, keepdims=True) * inv_m
        cent = v - mean
        var = jnp.sum(cent * cent, axis=1, keepdims=True) * inv_m
        return cent * (g * jax.lax.rsqrt(var + BN_EPS)) + b

    def pw(wT_ref, v, bias):
        # 1x1 conv as (Cout, Cin) @ (Cin, M): lane-dense (Cout, M) MXU output.
        return jnp.dot(wT_ref[...], v,
                       preferred_element_type=jnp.float32) + bias

    x = x_ref[...]

    # pos_embed: x = x + dw3x3(x)
    x = x + dwconv(x, pos_w_ref, pos_m_ref, col(_POS_B), 3)

    # conv attention branch: x = x + conv1x1(dw5x5(conv1x1(BN(x))))
    y = pw(c1_w_ref, bn(x, col(_BN1_G), col(_BN1_B)), col(_C1_B))
    y = dwconv(y, attn_w_ref, attn_m_ref, col(_ATTN_B), 5)
    x = x + pw(c2_w_ref, y, col(_C2_B))

    # CMlp: x = x + fc2(GELU(fc1(BN(x))))   (drop = 0 -> identity)
    z = _gelu_tanh(pw(f1_w_ref, bn(x, col(_BN2_G), col(_BN2_B)), f1_b_ref[...]))
    x = x + pw(f2_w_ref, z, col(_F2_B))

    # reduction: 1x1 conv Cin -> Cout
    o_ref[...] = pw(red_w_ref, x, red_b_ref[...]).astype(o_ref.dtype)


def meta_block_forward(x_nchw, p):
    n, c, h, w = x_nchw.shape
    m = n * h * w
    cout = p["red_w"].shape[1]

    # NCHW -> (C, N*H*W): channels in sublanes, pixels in lanes (tiny reshape).
    x_cm = jnp.transpose(x_nchw, (1, 0, 2, 3)).reshape(c, m).astype(jnp.float32)

    mask3 = _tap_masks(3, n, h, w)   # (9, 1, M)
    mask5 = _tap_masks(5, n, h, w)   # (25, 1, M)

    # Pack the nine per-channel parameter vectors into one (Cin, 9) operand.
    vec = jnp.concatenate(
        [p["pos_b"], p["bn1_g"], p["bn1_b"], p["c1_b"], p["attn_b"],
         p["c2_b"], p["bn2_g"], p["bn2_b"], p["f2_b"]], axis=0).T

    args = (
        x_cm, vec,
        p["pos_w"][:, :, None], mask3,
        p["attn_w"][:, :, None], mask5,
        p["c1_w"].T, p["c2_w"].T,
        p["f1_w"].T, p["f1_b"].T, p["f2_w"].T,
        p["red_w"].T, p["red_b"].T,
    )

    # Whole block in one grid-less pallas_call: every array is a whole-block
    # VMEM operand (total footprint ~1 MiB at these shapes; fits every TPU
    # generation including v7x's 64 MiB VMEM).
    # TODO(synk): for production SimVP sizes (C~128-512, H=W~32-128) add a
    # batch/spatial grid with halo tiles instead of whole-tensor residency
    # (also re-enables megacore 'parallel' sharding).
    out_cm = pl.pallas_call(
        functools.partial(_metablock_kernel, width=w, inv_m=1.0 / m),
        out_shape=jax.ShapeDtypeStruct((cout, m), jnp.float32),
    )(*args)

    return jnp.transpose(out_cm.reshape(cout, n, h, w), (1, 0, 2, 3))  # NCHW


# ----------------------------------------------------------------------------
# Deterministic parameter init and pure-JAX reference
# ----------------------------------------------------------------------------
def init_params(key, cin, cout, mlp_ratio):
    hidden = int(cin * mlp_ratio)
    ks = jax.random.split(key, 18)

    def rnd(k, shape, scale=0.1):
        return (scale * jax.random.normal(k, shape)).astype(jnp.float32)

    return {
        "pos_w": rnd(ks[0], (9, cin)),   "pos_b": rnd(ks[1], (1, cin)),
        "bn1_g": 1.0 + rnd(ks[2], (1, cin)), "bn1_b": rnd(ks[3], (1, cin)),
        "c1_w": rnd(ks[4], (cin, cin)),  "c1_b": rnd(ks[5], (1, cin)),
        "attn_w": rnd(ks[6], (25, cin)), "attn_b": rnd(ks[7], (1, cin)),
        "c2_w": rnd(ks[8], (cin, cin)),  "c2_b": rnd(ks[9], (1, cin)),
        "bn2_g": 1.0 + rnd(ks[10], (1, cin)), "bn2_b": rnd(ks[11], (1, cin)),
        "f1_w": rnd(ks[12], (cin, hidden)), "f1_b": rnd(ks[13], (1, hidden)),
        "f2_w": rnd(ks[14], (hidden, cin)), "f2_b": rnd(ks[15], (1, cin)),
        "red_w": rnd(ks[16], (cin, cout)), "red_b": rnd(ks[17], (1, cout)),
    }


def reference_forward(x_nchw, p):
    x = jnp.transpose(x_nchw, (0, 2, 3, 1)).astype(jnp.float32)

    def dw(xx, wv, bv, k):
        c = xx.shape[-1]
        rhs = wv.reshape(k, k, 1, c)
        y = jax.lax.conv_general_dilated(
            xx, rhs, window_strides=(1, 1), padding="SAME",
            dimension_numbers=("NHWC", "HWIO", "NHWC"),
            feature_group_count=c, precision=jax.lax.Precision.HIGHEST)
        return y + bv.reshape(1, 1, 1, -1)

    def bn(xx, g, b):
        mu = jnp.mean(xx, axis=(0, 1, 2), keepdims=True)
        var = jnp.mean((xx - mu) ** 2, axis=(0, 1, 2), keepdims=True)
        return (xx - mu) / jnp.sqrt(var + BN_EPS) * g.reshape(1, 1, 1, -1) \
            + b.reshape(1, 1, 1, -1)

    def pw(xx, wv, bv):
        return jnp.einsum("nhwc,cd->nhwd", xx, wv,
                          precision=jax.lax.Precision.HIGHEST) + bv.reshape(1, 1, 1, -1)

    x = x + dw(x, p["pos_w"], p["pos_b"], 3)
    y = pw(bn(x, p["bn1_g"], p["bn1_b"]), p["c1_w"], p["c1_b"])
    y = dw(y, p["attn_w"], p["attn_b"], 5)
    x = x + pw(y, p["c2_w"], p["c2_b"])
    z = _gelu_tanh(pw(bn(x, p["bn2_g"], p["bn2_b"]), p["f1_w"], p["f1_b"]))
    x = x + pw(z, p["f2_w"], p["f2_b"])
    out = pw(x, p["red_w"], p["red_b"])
    return jnp.transpose(out, (0, 3, 1, 2))


if __name__ == "__main__":
    N, Cin, H, W = 2, 4, 16, 16
    Cout = 8                  # in_channels != out_channels -> reduction conv used
    mlp_ratio = 8.0

    key = jax.random.PRNGKey(0)
    k_x, k_p = jax.random.split(key)
    x = jax.random.normal(k_x, (N, Cin, H, W), jnp.float32)
    params = init_params(k_p, Cin, Cout, mlp_ratio)

    fwd = jax.jit(meta_block_forward)
    out = jax.block_until_ready(fwd(x, params))
    assert out.shape == (N, Cout, H, W), out.shape

    ref = reference_forward(x, params)
    err = float(jnp.max(jnp.abs(out - ref)))
    if not err < 1e-2:
        raise AssertionError(f"mismatch vs reference: max abs err {err}")
    print("KERNEL_OK")
</pallas_src>

<mosaic_0001>
module attributes {stable_mosaic.version = 11 : i64} {
  func.func @_metablock_kernel(%arg0: memref<4x512xf32, #tpu.memory_space<vmem>>, %arg1: memref<4x9xf32, #tpu.memory_space<vmem>>, %arg2: memref<9x4x1xf32, #tpu.memory_space<vmem>>, %arg3: memref<9x1x512xf32, #tpu.memory_space<vmem>>, %arg4: memref<25x4x1xf32, #tpu.memory_space<vmem>>, %arg5: memref<25x1x512xf32, #tpu.memory_space<vmem>>, %arg6: memref<4x4xf32, #tpu.memory_space<vmem>>, %arg7: memref<4x4xf32, #tpu.memory_space<vmem>>, %arg8: memref<32x4xf32, #tpu.memory_space<vmem>>, %arg9: memref<32x1xf32, #tpu.memory_space<vmem>>, %arg10: memref<4x32xf32, #tpu.memory_space<vmem>>, %arg11: memref<8x4xf32, #tpu.memory_space<vmem>>, %arg12: memref<8x1xf32, #tpu.memory_space<vmem>>, %arg13: memref<8x512xf32, #tpu.memory_space<vmem>>) attributes {dimension_semantics = [], scalar_prefetch = 0 : i64, scratch_operands = 0 : i64, tpu.core_type = #tpu.core_type<tc>} {
    %c0 = arith.constant 0 : index
    %c0_0 = arith.constant 0 : index
    %0 = vector.load %arg1[%c0, %c0_0] : memref<4x9xf32, #tpu.memory_space<vmem>>, vector<4x9xf32>
    %c0_1 = arith.constant 0 : index
    %c0_2 = arith.constant 0 : index
    %1 = vector.load %arg0[%c0_1, %c0_2] : memref<4x512xf32, #tpu.memory_space<vmem>>, vector<4x512xf32>
    %2 = vector.extract_strided_slice %0 {offsets = [0, 0], sizes = [4, 1], strides = [1, 1]} : vector<4x9xf32> to vector<4x1xf32>
    %cst = arith.constant 0.000000e+00 : f32
    %3 = vector.broadcast %cst : f32 to vector<4x17xf32>
    %4 = tpu.concatenate %3, %1, %3 in 1 : vector<4x17xf32>, vector<4x512xf32>, vector<4x17xf32> -> vector<4x546xf32>
    %5 = vector.extract_strided_slice %4 {offsets = [0, 0], sizes = [4, 512], strides = [1, 1]} : vector<4x546xf32> to vector<4x512xf32>
    %c0_3 = arith.constant 0 : index
    %c0_4 = arith.constant 0 : index
    %c0_5 = arith.constant 0 : index
    %6 = vector.load %arg2[%c0_3, %c0_4, %c0_5] : memref<9x4x1xf32, #tpu.memory_space<vmem>>, vector<1x4x1xf32>
    %7 = vector.shape_cast %6 : vector<1x4x1xf32> to vector<4x1xf32>
    %c0_6 = arith.constant 0 : index
    %c0_7 = arith.constant 0 : index
    %c0_8 = arith.constant 0 : index
    %8 = vector.load %arg3[%c0_6, %c0_7, %c0_8] : memref<9x1x512xf32, #tpu.memory_space<vmem>>, vector<1x1x512xf32>
    %9 = vector.shape_cast %8 : vector<1x1x512xf32> to vector<1x512xf32>
    %10 = vector.broadcast %7 : vector<4x1xf32> to vector<4x512xf32>
    %11 = vector.broadcast %9 : vector<1x512xf32> to vector<4x512xf32>
    %12 = arith.mulf %10, %11 : vector<4x512xf32>
    %13 = arith.mulf %12, %5 : vector<4x512xf32>
    %14 = vector.extract_strided_slice %4 {offsets = [0, 1], sizes = [4, 512], strides = [1, 1]} : vector<4x546xf32> to vector<4x512xf32>
    %c1 = arith.constant 1 : index
    %c0_9 = arith.constant 0 : index
    %c0_10 = arith.constant 0 : index
    %15 = vector.load %arg2[%c1, %c0_9, %c0_10] : memref<9x4x1xf32, #tpu.memory_space<vmem>>, vector<1x4x1xf32>
    %16 = vector.shape_cast %15 : vector<1x4x1xf32> to vector<4x1xf32>
    %c1_11 = arith.constant 1 : index
    %c0_12 = arith.constant 0 : index
    %c0_13 = arith.constant 0 : index
    %17 = vector.load %arg3[%c1_11, %c0_12, %c0_13] : memref<9x1x512xf32, #tpu.memory_space<vmem>>, vector<1x1x512xf32>
    %18 = vector.shape_cast %17 : vector<1x1x512xf32> to vector<1x512xf32>
    %19 = vector.broadcast %16 : vector<4x1xf32> to vector<4x512xf32>
    %20 = vector.broadcast %18 : vector<1x512xf32> to vector<4x512xf32>
    %21 = arith.mulf %19, %20 : vector<4x512xf32>
    %22 = arith.mulf %21, %14 : vector<4x512xf32>
    %23 = arith.addf %13, %22 : vector<4x512xf32>
    %24 = vector.extract_strided_slice %4 {offsets = [0, 2], sizes = [4, 512], strides = [1, 1]} : vector<4x546xf32> to vector<4x512xf32>
    %c2 = arith.constant 2 : index
    %c0_14 = arith.constant 0 : index
    %c0_15 = arith.constant 0 : index
    %25 = vector.load %arg2[%c2, %c0_14, %c0_15] : memref<9x4x1xf32, #tpu.memory_space<vmem>>, vector<1x4x1xf32>
    %26 = vector.shape_cast %25 : vector<1x4x1xf32> to vector<4x1xf32>
    %c2_16 = arith.constant 2 : index
    %c0_17 = arith.constant 0 : index
    %c0_18 = arith.constant 0 : index
    %27 = vector.load %arg3[%c2_16, %c0_17, %c0_18] : memref<9x1x512xf32, #tpu.memory_space<vmem>>, vector<1x1x512xf32>
    %28 = vector.shape_cast %27 : vector<1x1x512xf32> to vector<1x512xf32>
    %29 = vector.broadcast %26 : vector<4x1xf32> to vector<4x512xf32>
    %30 = vector.broadcast %28 : vector<1x512xf32> to vector<4x512xf32>
    %31 = arith.mulf %29, %30 : vector<4x512xf32>
    %32 = arith.mulf %31, %24 : vector<4x512xf32>
    %33 = arith.addf %23, %32 : vector<4x512xf32>
    %34 = vector.extract_strided_slice %4 {offsets = [0, 16], sizes = [4, 512], strides = [1, 1]} : vector<4x546xf32> to vector<4x512xf32>
    %c3 = arith.constant 3 : index
    %c0_19 = arith.constant 0 : index
    %c0_20 = arith.constant 0 : index
    %35 = vector.load %arg2[%c3, %c0_19, %c0_20] : memref<9x4x1xf32, #tpu.memory_space<vmem>>, vector<1x4x1xf32>
    %36 = vector.shape_cast %35 : vector<1x4x1xf32> to vector<4x1xf32>
    %c3_21 = arith.constant 3 : index
    %c0_22 = arith.constant 0 : index
    %c0_23 = arith.constant 0 : index
    %37 = vector.load %arg3[%c3_21, %c0_22, %c0_23] : memref<9x1x512xf32, #tpu.memory_space<vmem>>, vector<1x1x512xf32>
    %38 = vector.shape_cast %37 : vector<1x1x512xf32> to vector<1x512xf32>
    %39 = vector.broadcast %36 : vector<4x1xf32> to vector<4x512xf32>
    %40 = vector.broadcast %38 : vector<1x512xf32> to vector<4x512xf32>
    %41 = arith.mulf %39, %40 : vector<4x512xf32>
    %42 = arith.mulf %41, %34 : vector<4x512xf32>
    %43 = arith.addf %33, %42 : vector<4x512xf32>
    %44 = vector.extract_strided_slice %4 {offsets = [0, 17], sizes = [4, 512], strides = [1, 1]} : vector<4x546xf32> to vector<4x512xf32>
    %c4 = arith.constant 4 : index
    %c0_24 = arith.constant 0 : index
    %c0_25 = arith.constant 0 : index
    %45 = vector.load %arg2[%c4, %c0_24, %c0_25] : memref<9x4x1xf32, #tpu.memory_space<vmem>>, vector<1x4x1xf32>
    %46 = vector.shape_cast %45 : vector<1x4x1xf32> to vector<4x1xf32>
    %47 = vector.broadcast %46 : vector<4x1xf32> to vector<4x512xf32>
    %48 = arith.mulf %47, %44 : vector<4x512xf32>
    %49 = arith.addf %43, %48 : vector<4x512xf32>
    %50 = vector.extract_strided_slice %4 {offsets = [0, 18], sizes = [4, 512], strides = [1, 1]} : vector<4x546xf32> to vector<4x512xf32>
    %c5 = arith.constant 5 : index
    %c0_26 = arith.constant 0 : index
    %c0_27 = arith.constant 0 : index
    %51 = vector.load %arg2[%c5, %c0_26, %c0_27] : memref<9x4x1xf32, #tpu.memory_space<vmem>>, vector<1x4x1xf32>
    %52 = vector.shape_cast %51 : vector<1x4x1xf32> to vector<4x1xf32>
    %c5_28 = arith.constant 5 : index
    %c0_29 = arith.constant 0 : index
    %c0_30 = arith.constant 0 : index
    %53 = vector.load %arg3[%c5_28, %c0_29, %c0_30] : memref<9x1x512xf32, #tpu.memory_space<vmem>>, vector<1x1x512xf32>
    %54 = vector.shape_cast %53 : vector<1x1x512xf32> to vector<1x512xf32>
    %55 = vector.broadcast %52 : vector<4x1xf32> to vector<4x512xf32>
    %56 = vector.broadcast %54 : vector<1x512xf32> to vector<4x512xf32>
    %57 = arith.mulf %55, %56 : vector<4x512xf32>
    %58 = arith.mulf %57, %50 : vector<4x512xf32>
    %59 = arith.addf %49, %58 : vector<4x512xf32>
    %60 = vector.extract_strided_slice %4 {offsets = [0, 32], sizes = [4, 512], strides = [1, 1]} : vector<4x546xf32> to vector<4x512xf32>
    %c6 = arith.constant 6 : index
    %c0_31 = arith.constant 0 : index
    %c0_32 = arith.constant 0 : index
    %61 = vector.load %arg2[%c6, %c0_31, %c0_32] : memref<9x4x1xf32, #tpu.memory_space<vmem>>, vector<1x4x1xf32>
    %62 = vector.shape_cast %61 : vector<1x4x1xf32> to vector<4x1xf32>
    %c6_33 = arith.constant 6 : index
    %c0_34 = arith.constant 0 : index
    %c0_35 = arith.constant 0 : index
    %63 = vector.load %arg3[%c6_33, %c0_34, %c0_35] : memref<9x1x512xf32, #tpu.memory_space<vmem>>, vector<1x1x512xf32>
    %64 = vector.shape_cast %63 : vector<1x1x512xf32> to vector<1x512xf32>
    %65 = vector.broadcast %62 : vector<4x1xf32> to vector<4x512xf32>
    %66 = vector.broadcast %64 : vector<1x512xf32> to vector<4x512xf32>
    %67 = arith.mulf %65, %66 : vector<4x512xf32>
    %68 = arith.mulf %67, %60 : vector<4x512xf32>
    %69 = arith.addf %59, %68 : vector<4x512xf32>
    %70 = vector.extract_strided_slice %4 {offsets = [0, 33], sizes = [4, 512], strides = [1, 1]} : vector<4x546xf32> to vector<4x512xf32>
    %c7 = arith.constant 7 : index
    %c0_36 = arith.constant 0 : index
    %c0_37 = arith.constant 0 : index
    %71 = vector.load %arg2[%c7, %c0_36, %c0_37] : memref<9x4x1xf32, #tpu.memory_space<vmem>>, vector<1x4x1xf32>
    %72 = vector.shape_cast %71 : vector<1x4x1xf32> to vector<4x1xf32>
    %c7_38 = arith.constant 7 : index
    %c0_39 = arith.constant 0 : index
    %c0_40 = arith.constant 0 : index
    %73 = vector.load %arg3[%c7_38, %c0_39, %c0_40] : memref<9x1x512xf32, #tpu.memory_space<vmem>>, vector<1x1x512xf32>
    %74 = vector.shape_cast %73 : vector<1x1x512xf32> to vector<1x512xf32>
    %75 = vector.broadcast %72 : vector<4x1xf32> to vector<4x512xf32>
    %76 = vector.broadcast %74 : vector<1x512xf32> to vector<4x512xf32>
    %77 = arith.mulf %75, %76 : vector<4x512xf32>
    %78 = arith.mulf %77, %70 : vector<4x512xf32>
    %79 = arith.addf %69, %78 : vector<4x512xf32>
    %80 = vector.extract_strided_slice %4 {offsets = [0, 34], sizes = [4, 512], strides = [1, 1]} : vector<4x546xf32> to vector<4x512xf32>
    %c8 = arith.constant 8 : index
    %c0_41 = arith.constant 0 : index
    %c0_42 = arith.constant 0 : index
    %81 = vector.load %arg2[%c8, %c0_41, %c0_42] : memref<9x4x1xf32, #tpu.memory_space<vmem>>, vector<1x4x1xf32>
    %82 = vector.shape_cast %81 : vector<1x4x1xf32> to vector<4x1xf32>
    %c8_43 = arith.constant 8 : index
    %c0_44 = arith.constant 0 : index
    %c0_45 = arith.constant 0 : index
    %83 = vector.load %arg3[%c8_43, %c0_44, %c0_45] : memref<9x1x512xf32, #tpu.memory_space<vmem>>, vector<1x1x512xf32>
    %84 = vector.shape_cast %83 : vector<1x1x512xf32> to vector<1x512xf32>
    %85 = vector.broadcast %82 : vector<4x1xf32> to vector<4x512xf32>
    %86 = vector.broadcast %84 : vector<1x512xf32> to vector<4x512xf32>
    %87 = arith.mulf %85, %86 : vector<4x512xf32>
    %88 = arith.mulf %87, %80 : vector<4x512xf32>
    %89 = arith.addf %79, %88 : vector<4x512xf32>
    %90 = vector.broadcast %2 : vector<4x1xf32> to vector<4x512xf32>
    %91 = arith.addf %89, %90 : vector<4x512xf32>
    %92 = arith.addf %1, %91 : vector<4x512xf32>
    %93 = vector.extract_strided_slice %0 {offsets = [0, 1], sizes = [4, 1], strides = [1, 1]} : vector<4x9xf32> to vector<4x1xf32>
    %94 = vector.extract_strided_slice %0 {offsets = [0, 2], sizes = [4, 1], strides = [1, 1]} : vector<4x9xf32> to vector<4x1xf32>
    %cst_46 = arith.constant dense<0.000000e+00> : vector<4xf32>
    %95 = vector.multi_reduction <add>, %92, %cst_46 [1] : vector<4x512xf32> to vector<4xf32>
    %96 = vector.shape_cast %95 : vector<4xf32> to vector<4x1xf32>
    %cst_47 = arith.constant 0.001953125 : f32
    %97 = vector.broadcast %cst_47 : f32 to vector<4x1xf32>
    %98 = arith.mulf %96, %97 : vector<4x1xf32>
    %99 = vector.broadcast %98 : vector<4x1xf32> to vector<4x512xf32>
    %100 = arith.subf %92, %99 : vector<4x512xf32>
    %101 = arith.mulf %100, %100 : vector<4x512xf32>
    %cst_48 = arith.constant dense<0.000000e+00> : vector<4xf32>
    %102 = vector.multi_reduction <add>, %101, %cst_48 [1] : vector<4x512xf32> to vector<4xf32>
    %103 = vector.shape_cast %102 : vector<4xf32> to vector<4x1xf32>
    %cst_49 = arith.constant 0.001953125 : f32
    %104 = vector.broadcast %cst_49 : f32 to vector<4x1xf32>
    %105 = arith.mulf %103, %104 : vector<4x1xf32>
    %cst_50 = arith.constant 9.99999974E-6 : f32
    %106 = vector.broadcast %cst_50 : f32 to vector<4x1xf32>
    %107 = arith.addf %105, %106 : vector<4x1xf32>
    %108 = math.rsqrt %107 : vector<4x1xf32>
    %109 = arith.mulf %93, %108 : vector<4x1xf32>
    %110 = vector.broadcast %109 : vector<4x1xf32> to vector<4x512xf32>
    %111 = arith.mulf %100, %110 : vector<4x512xf32>
    %112 = vector.broadcast %94 : vector<4x1xf32> to vector<4x512xf32>
    %113 = arith.addf %111, %112 : vector<4x512xf32>
    %114 = vector.extract_strided_slice %0 {offsets = [0, 3], sizes = [4, 1], strides = [1, 1]} : vector<4x9xf32> to vector<4x1xf32>
    %c0_51 = arith.constant 0 : index
    %c0_52 = arith.constant 0 : index
    %115 = vector.load %arg6[%c0_51, %c0_52] : memref<4x4xf32, #tpu.memory_space<vmem>>, vector<4x4xf32>
    %cst_53 = arith.constant dense<0.000000e+00> : vector<4x512xf32>
    %116 = tpu.matmul %115, %113, %cst_53 {dimension_numbers = #tpu.dot_dimension_numbers<[1], [0], [0], [1], [0, 0, 1, 1], [], []>} : vector<4x4xf32>, vector<4x512xf32>, vector<4x512xf32> -> vector<4x512xf32>
    %117 = vector.broadcast %114 : vector<4x1xf32> to vector<4x512xf32>
    %118 = arith.addf %116, %117 : vector<4x512xf32>
    %119 = vector.extract_strided_slice %0 {offsets = [0, 4], sizes = [4, 1], strides = [1, 1]} : vector<4x9xf32> to vector<4x1xf32>
    %cst_54 = arith.constant 0.000000e+00 : f32
    %120 = vector.broadcast %cst_54 : f32 to vector<4x34xf32>
    %121 = tpu.concatenate %120, %118, %120 in 1 : vector<4x34xf32>, vector<4x512xf32>, vector<4x34xf32> -> vector<4x580xf32>
    %122 = vector.extract_strided_slice %121 {offsets = [0, 0], sizes = [4, 512], strides = [1, 1]} : vector<4x580xf32> to vector<4x512xf32>
    %c0_55 = arith.constant 0 : index
    %c0_56 = arith.constant 0 : index
    %c0_57 = arith.constant 0 : index
    %123 = vector.load %arg4[%c0_55, %c0_56, %c0_57] : memref<25x4x1xf32, #tpu.memory_space<vmem>>, vector<1x4x1xf32>
    %124 = vector.shape_cast %123 : vector<1x4x1xf32> to vector<4x1xf32>
    %c0_58 = arith.constant 0 : index
    %c0_59 = arith.constant 0 : index
    %c0_60 = arith.constant 0 : index
    %125 = vector.load %arg5[%c0_58, %c0_59, %c0_60] : memref<25x1x512xf32, #tpu.memory_space<vmem>>, vector<1x1x512xf32>
    %126 = vector.shape_cast %125 : vector<1x1x512xf32> to vector<1x512xf32>
    %127 = vector.broadcast %124 : vector<4x1xf32> to vector<4x512xf32>
    %128 = vector.broadcast %126 : vector<1x512xf32> to vector<4x512xf32>
    %129 = arith.mulf %127, %128 : vector<4x512xf32>
    %130 = arith.mulf %129, %122 : vector<4x512xf32>
    %131 = vector.extract_strided_slice %121 {offsets = [0, 1], sizes = [4, 512], strides = [1, 1]} : vector<4x580xf32> to vector<4x512xf32>
    %c1_61 = arith.constant 1 : index
    %c0_62 = arith.constant 0 : index
    %c0_63 = arith.constant 0 : index
    %132 = vector.load %arg4[%c1_61, %c0_62, %c0_63] : memref<25x4x1xf32, #tpu.memory_space<vmem>>, vector<1x4x1xf32>
    %133 = vector.shape_cast %132 : vector<1x4x1xf32> to vector<4x1xf32>
    %c1_64 = arith.constant 1 : index
    %c0_65 = arith.constant 0 : index
    %c0_66 = arith.constant 0 : index
    %134 = vector.load %arg5[%c1_64, %c0_65, %c0_66] : memref<25x1x512xf32, #tpu.memory_space<vmem>>, vector<1x1x512xf32>
    %135 = vector.shape_cast %134 : vector<1x1x512xf32> to vector<1x512xf32>
    %136 = vector.broadcast %133 : vector<4x1xf32> to vector<4x512xf32>
    %137 = vector.broadcast %135 : vector<1x512xf32> to vector<4x512xf32>
    %138 = arith.mulf %136, %137 : vector<4x512xf32>
    %139 = arith.mulf %138, %131 : vector<4x512xf32>
    %140 = arith.addf %130, %139 : vector<4x512xf32>
    %141 = vector.extract_strided_slice %121 {offsets = [0, 2], sizes = [4, 512], strides = [1, 1]} : vector<4x580xf32> to vector<4x512xf32>
    %c2_67 = arith.constant 2 : index
    %c0_68 = arith.constant 0 : index
    %c0_69 = arith.constant 0 : index
    %142 = vector.load %arg4[%c2_67, %c0_68, %c0_69] : memref<25x4x1xf32, #tpu.memory_space<vmem>>, vector<1x4x1xf32>
    %143 = vector.shape_cast %142 : vector<1x4x1xf32> to vector<4x1xf32>
    %c2_70 = arith.constant 2 : index
    %c0_71 = arith.constant 0 : index
    %c0_72 = arith.constant 0 : index
    %144 = vector.load %arg5[%c2_70, %c0_71, %c0_72] : memref<25x1x512xf32, #tpu.memory_space<vmem>>, vector<1x1x512xf32>
    %145 = vector.shape_cast %144 : vector<1x1x512xf32> to vector<1x512xf32>
    %146 = vector.broadcast %143 : vector<4x1xf32> to vector<4x512xf32>
    %147 = vector.broadcast %145 : vector<1x512xf32> to vector<4x512xf32>
    %148 = arith.mulf %146, %147 : vector<4x512xf32>
    %149 = arith.mulf %148, %141 : vector<4x512xf32>
    %150 = arith.addf %140, %149 : vector<4x512xf32>
    %151 = vector.extract_strided_slice %121 {offsets = [0, 3], sizes = [4, 512], strides = [1, 1]} : vector<4x580xf32> to vector<4x512xf32>
    %c3_73 = arith.constant 3 : index
    %c0_74 = arith.constant 0 : index
    %c0_75 = arith.constant 0 : index
    %152 = vector.load %arg4[%c3_73, %c0_74, %c0_75] : memref<25x4x1xf32, #tpu.memory_space<vmem>>, vector<1x4x1xf32>
    %153 = vector.shape_cast %152 : vector<1x4x1xf32> to vector<4x1xf32>
    %c3_76 = arith.constant 3 : index
    %c0_77 = arith.constant 0 : index
    %c0_78 = arith.constant 0 : index
    %154 = vector.load %arg5[%c3_76, %c0_77, %c0_78] : memref<25x1x512xf32, #tpu.memory_space<vmem>>, vector<1x1x512xf32>
    %155 = vector.shape_cast %154 : vector<1x1x512xf32> to vector<1x512xf32>
    %156 = vector.broadcast %153 : vector<4x1xf32> to vector<4x512xf32>
    %157 = vector.broadcast %155 : vector<1x512xf32> to vector<4x512xf32>
    %158 = arith.mulf %156, %157 : vector<4x512xf32>
    %159 = arith.mulf %158, %151 : vector<4x512xf32>
    %160 = arith.addf %150, %159 : vector<4x512xf32>
    %161 = vector.extract_strided_slice %121 {offsets = [0, 4], sizes = [4, 512], strides = [1, 1]} : vector<4x580xf32> to vector<4x512xf32>
    %c4_79 = arith.constant 4 : index
    %c0_80 = arith.constant 0 : index
    %c0_81 = arith.constant 0 : index
    %162 = vector.load %arg4[%c4_79, %c0_80, %c0_81] : memref<25x4x1xf32, #tpu.memory_space<vmem>>, vector<1x4x1xf32>
    %163 = vector.shape_cast %162 : vector<1x4x1xf32> to vector<4x1xf32>
    %c4_82 = arith.constant 4 : index
    %c0_83 = arith.constant 0 : index
    %c0_84 = arith.constant 0 : index
    %164 = vector.load %arg5[%c4_82, %c0_83, %c0_84] : memref<25x1x512xf32, #tpu.memory_space<vmem>>, vector<1x1x512xf32>
    %165 = vector.shape_cast %164 : vector<1x1x512xf32> to vector<1x512xf32>
    %166 = vector.broadcast %163 : vector<4x1xf32> to vector<4x512xf32>
    %167 = vector.broadcast %165 : vector<1x512xf32> to vector<4x512xf32>
    %168 = arith.mulf %166, %167 : vector<4x512xf32>
    %169 = arith.mulf %168, %161 : vector<4x512xf32>
    %170 = arith.addf %160, %169 : vector<4x512xf32>
    %171 = vector.extract_strided_slice %121 {offsets = [0, 16], sizes = [4, 512], strides = [1, 1]} : vector<4x580xf32> to vector<4x512xf32>
    %c5_85 = arith.constant 5 : index
    %c0_86 = arith.constant 0 : index
    %c0_87 = arith.constant 0 : index
    %172 = vector.load %arg4[%c5_85, %c0_86, %c0_87] : memref<25x4x1xf32, #tpu.memory_space<vmem>>, vector<1x4x1xf32>
    %173 = vector.shape_cast %172 : vector<1x4x1xf32> to vector<4x1xf32>
    %c5_88 = arith.constant 5 : index
    %c0_89 = arith.constant 0 : index
    %c0_90 = arith.constant 0 : index
    %174 = vector.load %arg5[%c5_88, %c0_89, %c0_90] : memref<25x1x512xf32, #tpu.memory_space<vmem>>, vector<1x1x512xf32>
    %175 = vector.shape_cast %174 : vector<1x1x512xf32> to vector<1x512xf32>
    %176 = vector.broadcast %173 : vector<4x1xf32> to vector<4x512xf32>
    %177 = vector.broadcast %175 : vector<1x512xf32> to vector<4x512xf32>
    %178 = arith.mulf %176, %177 : vector<4x512xf32>
    %179 = arith.mulf %178, %171 : vector<4x512xf32>
    %180 = arith.addf %170, %179 : vector<4x512xf32>
    %181 = vector.extract_strided_slice %121 {offsets = [0, 17], sizes = [4, 512], strides = [1, 1]} : vector<4x580xf32> to vector<4x512xf32>
    %c6_91 = arith.constant 6 : index
    %c0_92 = arith.constant 0 : index
    %c0_93 = arith.constant 0 : index
    %182 = vector.load %arg4[%c6_91, %c0_92, %c0_93] : memref<25x4x1xf32, #tpu.memory_space<vmem>>, vector<1x4x1xf32>
    %183 = vector.shape_cast %182 : vector<1x4x1xf32> to vector<4x1xf32>
    %c6_94 = arith.constant 6 : index
    %c0_95 = arith.constant 0 : index
    %c0_96 = arith.constant 0 : index
    %184 = vector.load %arg5[%c6_94, %c0_95, %c0_96] : memref<25x1x512xf32, #tpu.memory_space<vmem>>, vector<1x1x512xf32>
    %185 = vector.shape_cast %184 : vector<1x1x512xf32> to vector<1x512xf32>
    %186 = vector.broadcast %183 : vector<4x1xf32> to vector<4x512xf32>
    %187 = vector.broadcast %185 : vector<1x512xf32> to vector<4x512xf32>
    %188 = arith.mulf %186, %187 : vector<4x512xf32>
    %189 = arith.mulf %188, %181 : vector<4x512xf32>
    %190 = arith.addf %180, %189 : vector<4x512xf32>
    %191 = vector.extract_strided_slice %121 {offsets = [0, 18], sizes = [4, 512], strides = [1, 1]} : vector<4x580xf32> to vector<4x512xf32>
    %c7_97 = arith.constant 7 : index
    %c0_98 = arith.constant 0 : index
    %c0_99 = arith.constant 0 : index
    %192 = vector.load %arg4[%c7_97, %c0_98, %c0_99] : memref<25x4x1xf32, #tpu.memory_space<vmem>>, vector<1x4x1xf32>
    %193 = vector.shape_cast %192 : vector<1x4x1xf32> to vector<4x1xf32>
    %c7_100 = arith.constant 7 : index
    %c0_101 = arith.constant 0 : index
    %c0_102 = arith.constant 0 : index
    %194 = vector.load %arg5[%c7_100, %c0_101, %c0_102] : memref<25x1x512xf32, #tpu.memory_space<vmem>>, vector<1x1x512xf32>
    %195 = vector.shape_cast %194 : vector<1x1x512xf32> to vector<1x512xf32>
    %196 = vector.broadcast %193 : vector<4x1xf32> to vector<4x512xf32>
    %197 = vector.broadcast %195 : vector<1x512xf32> to vector<4x512xf32>
    %198 = arith.mulf %196, %197 : vector<4x512xf32>
    %199 = arith.mulf %198, %191 : vector<4x512xf32>
    %200 = arith.addf %190, %199 : vector<4x512xf32>
    %201 = vector.extract_strided_slice %121 {offsets = [0, 19], sizes = [4, 512], strides = [1, 1]} : vector<4x580xf32> to vector<4x512xf32>
    %c8_103 = arith.constant 8 : index
    %c0_104 = arith.constant 0 : index
    %c0_105 = arith.constant 0 : index
    %202 = vector.load %arg4[%c8_103, %c0_104, %c0_105] : memref<25x4x1xf32, #tpu.memory_space<vmem>>, vector<1x4x1xf32>
    %203 = vector.shape_cast %202 : vector<1x4x1xf32> to vector<4x1xf32>
    %c8_106 = arith.constant 8 : index
    %c0_107 = arith.constant 0 : index
    %c0_108 = arith.constant 0 : index
    %204 = vector.load %arg5[%c8_106, %c0_107, %c0_108] : memref<25x1x512xf32, #tpu.memory_space<vmem>>, vector<1x1x512xf32>
    %205 = vector.shape_cast %204 : vector<1x1x512xf32> to vector<1x512xf32>
    %206 = vector.broadcast %203 : vector<4x1xf32> to vector<4x512xf32>
    %207 = vector.broadcast %205 : vector<1x512xf32> to vector<4x512xf32>
    %208 = arith.mulf %206, %207 : vector<4x512xf32>
    %209 = arith.mulf %208, %201 : vector<4x512xf32>
    %210 = arith.addf %200, %209 : vector<4x512xf32>
    %211 = vector.extract_strided_slice %121 {offsets = [0, 20], sizes = [4, 512], strides = [1, 1]} : vector<4x580xf32> to vector<4x512xf32>
    %c9 = arith.constant 9 : index
    %c0_109 = arith.constant 0 : index
    %c0_110 = arith.constant 0 : index
    %212 = vector.load %arg4[%c9, %c0_109, %c0_110] : memref<25x4x1xf32, #tpu.memory_space<vmem>>, vector<1x4x1xf32>
    %213 = vector.shape_cast %212 : vector<1x4x1xf32> to vector<4x1xf32>
    %c9_111 = arith.constant 9 : index
    %c0_112 = arith.constant 0 : index
    %c0_113 = arith.constant 0 : index
    %214 = vector.load %arg5[%c9_111, %c0_112, %c0_113] : memref<25x1x512xf32, #tpu.memory_space<vmem>>, vector<1x1x512xf32>
    %215 = vector.shape_cast %214 : vector<1x1x512xf32> to vector<1x512xf32>
    %216 = vector.broadcast %213 : vector<4x1xf32> to vector<4x512xf32>
    %217 = vector.broadcast %215 : vector<1x512xf32> to vector<4x512xf32>
    %218 = arith.mulf %216, %217 : vector<4x512xf32>
    %219 = arith.mulf %218, %211 : vector<4x512xf32>
    %220 = arith.addf %210, %219 : vector<4x512xf32>
    %221 = vector.extract_strided_slice %121 {offsets = [0, 32], sizes = [4, 512], strides = [1, 1]} : vector<4x580xf32> to vector<4x512xf32>
    %c10 = arith.constant 10 : index
    %c0_114 = arith.constant 0 : index
    %c0_115 = arith.constant 0 : index
    %222 = vector.load %arg4[%c10, %c0_114, %c0_115] : memref<25x4x1xf32, #tpu.memory_space<vmem>>, vector<1x4x1xf32>
    %223 = vector.shape_cast %222 : vector<1x4x1xf32> to vector<4x1xf32>
    %c10_116 = arith.constant 10 : index
    %c0_117 = arith.constant 0 : index
    %c0_118 = arith.constant 0 : index
    %224 = vector.load %arg5[%c10_116, %c0_117, %c0_118] : memref<25x1x512xf32, #tpu.memory_space<vmem>>, vector<1x1x512xf32>
    %225 = vector.shape_cast %224 : vector<1x1x512xf32> to vector<1x512xf32>
    %226 = vector.broadcast %223 : vector<4x1xf32> to vector<4x512xf32>
    %227 = vector.broadcast %225 : vector<1x512xf32> to vector<4x512xf32>
    %228 = arith.mulf %226, %227 : vector<4x512xf32>
    %229 = arith.mulf %228, %221 : vector<4x512xf32>
    %230 = arith.addf %220, %229 : vector<4x512xf32>
    %231 = vector.extract_strided_slice %121 {offsets = [0, 33], sizes = [4, 512], strides = [1, 1]} : vector<4x580xf32> to vector<4x512xf32>
    %c11 = arith.constant 11 : index
    %c0_119 = arith.constant 0 : index
    %c0_120 = arith.constant 0 : index
    %232 = vector.load %arg4[%c11, %c0_119, %c0_120] : memref<25x4x1xf32, #tpu.memory_space<vmem>>, vector<1x4x1xf32>
    %233 = vector.shape_cast %232 : vector<1x4x1xf32> to vector<4x1xf32>
    %c11_121 = arith.constant 11 : index
    %c0_122 = arith.constant 0 : index
    %c0_123 = arith.constant 0 : index
    %234 = vector.load %arg5[%c11_121, %c0_122, %c0_123] : memref<25x1x512xf32, #tpu.memory_space<vmem>>, vector<1x1x512xf32>
    %235 = vector.shape_cast %234 : vector<1x1x512xf32> to vector<1x512xf32>
    %236 = vector.broadcast %233 : vector<4x1xf32> to vector<4x512xf32>
    %237 = vector.broadcast %235 : vector<1x512xf32> to vector<4x512xf32>
    %238 = arith.mulf %236, %237 : vector<4x512xf32>
    %239 = arith.mulf %238, %231 : vector<4x512xf32>
    %240 = arith.addf %230, %239 : vector<4x512xf32>
    %241 = vector.extract_strided_slice %121 {offsets = [0, 34], sizes = [4, 512], strides = [1, 1]} : vector<4x580xf32> to vector<4x512xf32>
    %c12 = arith.constant 12 : index
    %c0_124 = arith.constant 0 : index
    %c0_125 = arith.constant 0 : index
    %242 = vector.load %arg4[%c12, %c0_124, %c0_125] : memref<25x4x1xf32, #tpu.memory_space<vmem>>, vector<1x4x1xf32>
    %243 = vector.shape_cast %242 : vector<1x4x1xf32> to vector<4x1xf32>
    %244 = vector.broadcast %243 : vector<4x1xf32> to vector<4x512xf32>
    %245 = arith.mulf %244, %241 : vector<4x512xf32>
    %246 = arith.addf %240, %245 : vector<4x512xf32>
    %247 = vector.extract_strided_slice %121 {offsets = [0, 35], sizes = [4, 512], strides = [1, 1]} : vector<4x580xf32> to vector<4x512xf32>
    %c13 = arith.constant 13 : index
    %c0_126 = arith.constant 0 : index
    %c0_127 = arith.constant 0 : index
    %248 = vector.load %arg4[%c13, %c0_126, %c0_127] : memref<25x4x1xf32, #tpu.memory_space<vmem>>, vector<1x4x1xf32>
    %249 = vector.shape_cast %248 : vector<1x4x1xf32> to vector<4x1xf32>
    %c13_128 = arith.constant 13 : index
    %c0_129 = arith.constant 0 : index
    %c0_130 = arith.constant 0 : index
    %250 = vector.load %arg5[%c13_128, %c0_129, %c0_130] : memref<25x1x512xf32, #tpu.memory_space<vmem>>, vector<1x1x512xf32>
    %251 = vector.shape_cast %250 : vector<1x1x512xf32> to vector<1x512xf32>
    %252 = vector.broadcast %249 : vector<4x1xf32> to vector<4x512xf32>
    %253 = vector.broadcast %251 : vector<1x512xf32> to vector<4x512xf32>
    %254 = arith.mulf %252, %253 : vector<4x512xf32>
    %255 = arith.mulf %254, %247 : vector<4x512xf32>
    %256 = arith.addf %246, %255 : vector<4x512xf32>
    %257 = vector.extract_strided_slice %121 {offsets = [0, 36], sizes = [4, 512], strides = [1, 1]} : vector<4x580xf32> to vector<4x512xf32>
    %c14 = arith.constant 14 : index
    %c0_131 = arith.constant 0 : index
    %c0_132 = arith.constant 0 : index
    %258 = vector.load %arg4[%c14, %c0_131, %c0_132] : memref<25x4x1xf32, #tpu.memory_space<vmem>>, vector<1x4x1xf32>
    %259 = vector.shape_cast %258 : vector<1x4x1xf32> to vector<4x1xf32>
    %c14_133 = arith.constant 14 : index
    %c0_134 = arith.constant 0 : index
    %c0_135 = arith.constant 0 : index
    %260 = vector.load %arg5[%c14_133, %c0_134, %c0_135] : memref<25x1x512xf32, #tpu.memory_space<vmem>>, vector<1x1x512xf32>
    %261 = vector.shape_cast %260 : vector<1x1x512xf32> to vector<1x512xf32>
    %262 = vector.broadcast %259 : vector<4x1xf32> to vector<4x512xf32>
    %263 = vector.broadcast %261 : vector<1x512xf32> to vector<4x512xf32>
    %264 = arith.mulf %262, %263 : vector<4x512xf32>
    %265 = arith.mulf %264, %257 : vector<4x512xf32>
    %266 = arith.addf %256, %265 : vector<4x512xf32>
    %267 = vector.extract_strided_slice %121 {offsets = [0, 48], sizes = [4, 512], strides = [1, 1]} : vector<4x580xf32> to vector<4x512xf32>
    %c15 = arith.constant 15 : index
    %c0_136 = arith.constant 0 : index
    %c0_137 = arith.constant 0 : index
    %268 = vector.load %arg4[%c15, %c0_136, %c0_137] : memref<25x4x1xf32, #tpu.memory_space<vmem>>, vector<1x4x1xf32>
    %269 = vector.shape_cast %268 : vector<1x4x1xf32> to vector<4x1xf32>
    %c15_138 = arith.constant 15 : index
    %c0_139 = arith.constant 0 : index
    %c0_140 = arith.constant 0 : index
    %270 = vector.load %arg5[%c15_138, %c0_139, %c0_140] : memref<25x1x512xf32, #tpu.memory_space<vmem>>, vector<1x1x512xf32>
    %271 = vector.shape_cast %270 : vector<1x1x512xf32> to vector<1x512xf32>
    %272 = vector.broadcast %269 : vector<4x1xf32> to vector<4x512xf32>
    %273 = vector.broadcast %271 : vector<1x512xf32> to vector<4x512xf32>
    %274 = arith.mulf %272, %273 : vector<4x512xf32>
    %275 = arith.mulf %274, %267 : vector<4x512xf32>
    %276 = arith.addf %266, %275 : vector<4x512xf32>
    %277 = vector.extract_strided_slice %121 {offsets = [0, 49], sizes = [4, 512], strides = [1, 1]} : vector<4x580xf32> to vector<4x512xf32>
    %c16 = arith.constant 16 : index
    %c0_141 = arith.constant 0 : index
    %c0_142 = arith.constant 0 : index
    %278 = vector.load %arg4[%c16, %c0_141, %c0_142] : memref<25x4x1xf32, #tpu.memory_space<vmem>>, vector<1x4x1xf32>
    %279 = vector.shape_cast %278 : vector<1x4x1xf32> to vector<4x1xf32>
    %c16_143 = arith.constant 16 : index
    %c0_144 = arith.constant 0 : index
    %c0_145 = arith.constant 0 : index
    %280 = vector.load %arg5[%c16_143, %c0_144, %c0_145] : memref<25x1x512xf32, #tpu.memory_space<vmem>>, vector<1x1x512xf32>
    %281 = vector.shape_cast %280 : vector<1x1x512xf32> to vector<1x512xf32>
    %282 = vector.broadcast %279 : vector<4x1xf32> to vector<4x512xf32>
    %283 = vector.broadcast %281 : vector<1x512xf32> to vector<4x512xf32>
    %284 = arith.mulf %282, %283 : vector<4x512xf32>
    %285 = arith.mulf %284, %277 : vector<4x512xf32>
    %286 = arith.addf %276, %285 : vector<4x512xf32>
    %287 = vector.extract_strided_slice %121 {offsets = [0, 50], sizes = [4, 512], strides = [1, 1]} : vector<4x580xf32> to vector<4x512xf32>
    %c17 = arith.constant 17 : index
    %c0_146 = arith.constant 0 : index
    %c0_147 = arith.constant 0 : index
    %288 = vector.load %arg4[%c17, %c0_146, %c0_147] : memref<25x4x1xf32, #tpu.memory_space<vmem>>, vector<1x4x1xf32>
    %289 = vector.shape_cast %288 : vector<1x4x1xf32> to vector<4x1xf32>
    %c17_148 = arith.constant 17 : index
    %c0_149 = arith.constant 0 : index
    %c0_150 = arith.constant 0 : index
    %290 = vector.load %arg5[%c17_148, %c0_149, %c0_150] : memref<25x1x512xf32, #tpu.memory_space<vmem>>, vector<1x1x512xf32>
    %291 = vector.shape_cast %290 : vector<1x1x512xf32> to vector<1x512xf32>
    %292 = vector.broadcast %289 : vector<4x1xf32> to vector<4x512xf32>
    %293 = vector.broadcast %291 : vector<1x512xf32> to vector<4x512xf32>
    %294 = arith.mulf %292, %293 : vector<4x512xf32>
    %295 = arith.mulf %294, %287 : vector<4x512xf32>
    %296 = arith.addf %286, %295 : vector<4x512xf32>
    %297 = vector.extract_strided_slice %121 {offsets = [0, 51], sizes = [4, 512], strides = [1, 1]} : vector<4x580xf32> to vector<4x512xf32>
    %c18 = arith.constant 18 : index
    %c0_151 = arith.constant 0 : index
    %c0_152 = arith.constant 0 : index
    %298 = vector.load %arg4[%c18, %c0_151, %c0_152] : memref<25x4x1xf32, #tpu.memory_space<vmem>>, vector<1x4x1xf32>
    %299 = vector.shape_cast %298 : vector<1x4x1xf32> to vector<4x1xf32>
    %c18_153 = arith.constant 18 : index
    %c0_154 = arith.constant 0 : index
    %c0_155 = arith.constant 0 : index
    %300 = vector.load %arg5[%c18_153, %c0_154, %c0_155] : memref<25x1x512xf32, #tpu.memory_space<vmem>>, vector<1x1x512xf32>
    %301 = vector.shape_cast %300 : vector<1x1x512xf32> to vector<1x512xf32>
    %302 = vector.broadcast %299 : vector<4x1xf32> to vector<4x512xf32>
    %303 = vector.broadcast %301 : vector<1x512xf32> to vector<4x512xf32>
    %304 = arith.mulf %302, %303 : vector<4x512xf32>
    %305 = arith.mulf %304, %297 : vector<4x512xf32>
    %306 = arith.addf %296, %305 : vector<4x512xf32>
    %307 = vector.extract_strided_slice %121 {offsets = [0, 52], sizes = [4, 512], strides = [1, 1]} : vector<4x580xf32> to vector<4x512xf32>
    %c19 = arith.constant 19 : index
    %c0_156 = arith.constant 0 : index
    %c0_157 = arith.constant 0 : index
    %308 = vector.load %arg4[%c19, %c0_156, %c0_157] : memref<25x4x1xf32, #tpu.memory_space<vmem>>, vector<1x4x1xf32>
    %309 = vector.shape_cast %308 : vector<1x4x1xf32> to vector<4x1xf32>
    %c19_158 = arith.constant 19 : index
    %c0_159 = arith.constant 0 : index
    %c0_160 = arith.constant 0 : index
    %310 = vector.load %arg5[%c19_158, %c0_159, %c0_160] : memref<25x1x512xf32, #tpu.memory_space<vmem>>, vector<1x1x512xf32>
    %311 = vector.shape_cast %310 : vector<1x1x512xf32> to vector<1x512xf32>
    %312 = vector.broadcast %309 : vector<4x1xf32> to vector<4x512xf32>
    %313 = vector.broadcast %311 : vector<1x512xf32> to vector<4x512xf32>
    %314 = arith.mulf %312, %313 : vector<4x512xf32>
    %315 = arith.mulf %314, %307 : vector<4x512xf32>
    %316 = arith.addf %306, %315 : vector<4x512xf32>
    %317 = vector.extract_strided_slice %121 {offsets = [0, 64], sizes = [4, 512], strides = [1, 1]} : vector<4x580xf32> to vector<4x512xf32>
    %c20 = arith.constant 20 : index
    %c0_161 = arith.constant 0 : index
    %c0_162 = arith.constant 0 : index
    %318 = vector.load %arg4[%c20, %c0_161, %c0_162] : memref<25x4x1xf32, #tpu.memory_space<vmem>>, vector<1x4x1xf32>
    %319 = vector.shape_cast %318 : vector<1x4x1xf32> to vector<4x1xf32>
    %c20_163 = arith.constant 20 : index
    %c0_164 = arith.constant 0 : index
    %c0_165 = arith.constant 0 : index
    %320 = vector.load %arg5[%c20_163, %c0_164, %c0_165] : memref<25x1x512xf32, #tpu.memory_space<vmem>>, vector<1x1x512xf32>
    %321 = vector.shape_cast %320 : vector<1x1x512xf32> to vector<1x512xf32>
    %322 = vector.broadcast %319 : vector<4x1xf32> to vector<4x512xf32>
    %323 = vector.broadcast %321 : vector<1x512xf32> to vector<4x512xf32>
    %324 = arith.mulf %322, %323 : vector<4x512xf32>
    %325 = arith.mulf %324, %317 : vector<4x512xf32>
    %326 = arith.addf %316, %325 : vector<4x512xf32>
    %327 = vector.extract_strided_slice %121 {offsets = [0, 65], sizes = [4, 512], strides = [1, 1]} : vector<4x580xf32> to vector<4x512xf32>
    %c21 = arith.constant 21 : index
    %c0_166 = arith.constant 0 : index
    %c0_167 = arith.constant 0 : index
    %328 = vector.load %arg4[%c21, %c0_166, %c0_167] : memref<25x4x1xf32, #tpu.memory_space<vmem>>, vector<1x4x1xf32>
    %329 = vector.shape_cast %328 : vector<1x4x1xf32> to vector<4x1xf32>
    %c21_168 = arith.constant 21 : index
    %c0_169 = arith.constant 0 : index
    %c0_170 = arith.constant 0 : index
    %330 = vector.load %arg5[%c21_168, %c0_169, %c0_170] : memref<25x1x512xf32, #tpu.memory_space<vmem>>, vector<1x1x512xf32>
    %331 = vector.shape_cast %330 : vector<1x1x512xf32> to vector<1x512xf32>
    %332 = vector.broadcast %329 : vector<4x1xf32> to vector<4x512xf32>
    %333 = vector.broadcast %331 : vector<1x512xf32> to vector<4x512xf32>
    %334 = arith.mulf %332, %333 : vector<4x512xf32>
    %335 = arith.mulf %334, %327 : vector<4x512xf32>
    %336 = arith.addf %326, %335 : vector<4x512xf32>
    %337 = vector.extract_strided_slice %121 {offsets = [0, 66], sizes = [4, 512], strides = [1, 1]} : vector<4x580xf32> to vector<4x512xf32>
    %c22 = arith.constant 22 : index
    %c0_171 = arith.constant 0 : index
    %c0_172 = arith.constant 0 : index
    %338 = vector.load %arg4[%c22, %c0_171, %c0_172] : memref<25x4x1xf32, #tpu.memory_space<vmem>>, vector<1x4x1xf32>
    %339 = vector.shape_cast %338 : vector<1x4x1xf32> to vector<4x1xf32>
    %c22_173 = arith.constant 22 : index
    %c0_174 = arith.constant 0 : index
    %c0_175 = arith.constant 0 : index
    %340 = vector.load %arg5[%c22_173, %c0_174, %c0_175] : memref<25x1x512xf32, #tpu.memory_space<vmem>>, vector<1x1x512xf32>
    %341 = vector.shape_cast %340 : vector<1x1x512xf32> to vector<1x512xf32>
    %342 = vector.broadcast %339 : vector<4x1xf32> to vector<4x512xf32>
    %343 = vector.broadcast %341 : vector<1x512xf32> to vector<4x512xf32>
    %344 = arith.mulf %342, %343 : vector<4x512xf32>
    %345 = arith.mulf %344, %337 : vector<4x512xf32>
    %346 = arith.addf %336, %345 : vector<4x512xf32>
    %347 = vector.extract_strided_slice %121 {offsets = [0, 67], sizes = [4, 512], strides = [1, 1]} : vector<4x580xf32> to vector<4x512xf32>
    %c23 = arith.constant 23 : index
    %c0_176 = arith.constant 0 : index
    %c0_177 = arith.constant 0 : index
    %348 = vector.load %arg4[%c23, %c0_176, %c0_177] : memref<25x4x1xf32, #tpu.memory_space<vmem>>, vector<1x4x1xf32>
    %349 = vector.shape_cast %348 : vector<1x4x1xf32> to vector<4x1xf32>
    %c23_178 = arith.constant 23 : index
    %c0_179 = arith.constant 0 : index
    %c0_180 = arith.constant 0 : index
    %350 = vector.load %arg5[%c23_178, %c0_179, %c0_180] : memref<25x1x512xf32, #tpu.memory_space<vmem>>, vector<1x1x512xf32>
    %351 = vector.shape_cast %350 : vector<1x1x512xf32> to vector<1x512xf32>
    %352 = vector.broadcast %349 : vector<4x1xf32> to vector<4x512xf32>
    %353 = vector.broadcast %351 : vector<1x512xf32> to vector<4x512xf32>
    %354 = arith.mulf %352, %353 : vector<4x512xf32>
    %355 = arith.mulf %354, %347 : vector<4x512xf32>
    %356 = arith.addf %346, %355 : vector<4x512xf32>
    %357 = vector.extract_strided_slice %121 {offsets = [0, 68], sizes = [4, 512], strides = [1, 1]} : vector<4x580xf32> to vector<4x512xf32>
    %c24 = arith.constant 24 : index
    %c0_181 = arith.constant 0 : index
    %c0_182 = arith.constant 0 : index
    %358 = vector.load %arg4[%c24, %c0_181, %c0_182] : memref<25x4x1xf32, #tpu.memory_space<vmem>>, vector<1x4x1xf32>
    %359 = vector.shape_cast %358 : vector<1x4x1xf32> to vector<4x1xf32>
    %c24_183 = arith.constant 24 : index
    %c0_184 = arith.constant 0 : index
    %c0_185 = arith.constant 0 : index
    %360 = vector.load %arg5[%c24_183, %c0_184, %c0_185] : memref<25x1x512xf32, #tpu.memory_space<vmem>>, vector<1x1x512xf32>
    %361 = vector.shape_cast %360 : vector<1x1x512xf32> to vector<1x512xf32>
    %362 = vector.broadcast %359 : vector<4x1xf32> to vector<4x512xf32>
    %363 = vector.broadcast %361 : vector<1x512xf32> to vector<4x512xf32>
    %364 = arith.mulf %362, %363 : vector<4x512xf32>
    %365 = arith.mulf %364, %357 : vector<4x512xf32>
    %366 = arith.addf %356, %365 : vector<4x512xf32>
    %367 = vector.broadcast %119 : vector<4x1xf32> to vector<4x512xf32>
    %368 = arith.addf %366, %367 : vector<4x512xf32>
    %369 = vector.extract_strided_slice %0 {offsets = [0, 5], sizes = [4, 1], strides = [1, 1]} : vector<4x9xf32> to vector<4x1xf32>
    %c0_186 = arith.constant 0 : index
    %c0_187 = arith.constant 0 : index
    %370 = vector.load %arg7[%c0_186, %c0_187] : memref<4x4xf32, #tpu.memory_space<vmem>>, vector<4x4xf32>
    %cst_188 = arith.constant dense<0.000000e+00> : vector<4x512xf32>
    %371 = tpu.matmul %370, %368, %cst_188 {dimension_numbers = #tpu.dot_dimension_numbers<[1], [0], [0], [1], [0, 0, 1, 1], [], []>} : vector<4x4xf32>, vector<4x512xf32>, vector<4x512xf32> -> vector<4x512xf32>
    %372 = vector.broadcast %369 : vector<4x1xf32> to vector<4x512xf32>
    %373 = arith.addf %371, %372 : vector<4x512xf32>
    %374 = arith.addf %92, %373 : vector<4x512xf32>
    %375 = vector.extract_strided_slice %0 {offsets = [0, 6], sizes = [4, 1], strides = [1, 1]} : vector<4x9xf32> to vector<4x1xf32>
    %376 = vector.extract_strided_slice %0 {offsets = [0, 7], sizes = [4, 1], strides = [1, 1]} : vector<4x9xf32> to vector<4x1xf32>
    %cst_189 = arith.constant dense<0.000000e+00> : vector<4xf32>
    %377 = vector.multi_reduction <add>, %374, %cst_189 [1] : vector<4x512xf32> to vector<4xf32>
    %378 = vector.shape_cast %377 : vector<4xf32> to vector<4x1xf32>
    %cst_190 = arith.constant 0.001953125 : f32
    %379 = vector.broadcast %cst_190 : f32 to vector<4x1xf32>
    %380 = arith.mulf %378, %379 : vector<4x1xf32>
    %381 = vector.broadcast %380 : vector<4x1xf32> to vector<4x512xf32>
    %382 = arith.subf %374, %381 : vector<4x512xf32>
    %383 = arith.mulf %382, %382 : vector<4x512xf32>
    %cst_191 = arith.constant dense<0.000000e+00> : vector<4xf32>
    %384 = vector.multi_reduction <add>, %383, %cst_191 [1] : vector<4x512xf32> to vector<4xf32>
    %385 = vector.shape_cast %384 : vector<4xf32> to vector<4x1xf32>
    %cst_192 = arith.constant 0.001953125 : f32
    %386 = vector.broadcast %cst_192 : f32 to vector<4x1xf32>
    %387 = arith.mulf %385, %386 : vector<4x1xf32>
    %cst_193 = arith.constant 9.99999974E-6 : f32
    %388 = vector.broadcast %cst_193 : f32 to vector<4x1xf32>
    %389 = arith.addf %387, %388 : vector<4x1xf32>
    %390 = math.rsqrt %389 : vector<4x1xf32>
    %391 = arith.mulf %375, %390 : vector<4x1xf32>
    %392 = vector.broadcast %391 : vector<4x1xf32> to vector<4x512xf32>
    %393 = arith.mulf %382, %392 : vector<4x512xf32>
    %394 = vector.broadcast %376 : vector<4x1xf32> to vector<4x512xf32>
    %395 = arith.addf %393, %394 : vector<4x512xf32>
    %c0_194 = arith.constant 0 : index
    %c0_195 = arith.constant 0 : index
    %396 = vector.load %arg9[%c0_194, %c0_195] : memref<32x1xf32, #tpu.memory_space<vmem>>, vector<32x1xf32>
    %c0_196 = arith.constant 0 : index
    %c0_197 = arith.constant 0 : index
    %397 = vector.load %arg8[%c0_196, %c0_197] : memref<32x4xf32, #tpu.memory_space<vmem>>, vector<32x4xf32>
    %cst_198 = arith.constant dense<0.000000e+00> : vector<32x512xf32>
    %398 = tpu.matmul %397, %395, %cst_198 {dimension_numbers = #tpu.dot_dimension_numbers<[1], [0], [0], [1], [0, 0, 1, 1], [], []>} : vector<32x4xf32>, vector<4x512xf32>, vector<32x512xf32> -> vector<32x512xf32>
    %399 = vector.broadcast %396 : vector<32x1xf32> to vector<32x512xf32>
    %400 = arith.addf %398, %399 : vector<32x512xf32>
    %cst_199 = arith.constant 5.000000e-01 : f32
    %401 = vector.broadcast %cst_199 : f32 to vector<32x512xf32>
    %402 = arith.mulf %401, %400 : vector<32x512xf32>
    %cst_200 = arith.constant 0.797884583 : f32
    %403 = vector.broadcast %cst_200 : f32 to vector<32x512xf32>
    %404 = arith.mulf %403, %400 : vector<32x512xf32>
    %cst_201 = arith.constant 4.471500e-02 : f32
    %405 = vector.broadcast %cst_201 : f32 to vector<32x512xf32>
    %406 = arith.mulf %405, %400 : vector<32x512xf32>
    %407 = arith.mulf %406, %400 : vector<32x512xf32>
    %cst_202 = arith.constant 1.000000e+00 : f32
    %408 = vector.broadcast %cst_202 : f32 to vector<32x512xf32>
    %409 = arith.addf %408, %407 : vector<32x512xf32>
    %410 = arith.mulf %404, %409 : vector<32x512xf32>
    %411 = math.tanh %410 : vector<32x512xf32>
    %cst_203 = arith.constant 1.000000e+00 : f32
    %412 = vector.broadcast %cst_203 : f32 to vector<32x512xf32>
    %413 = arith.addf %412, %411 : vector<32x512xf32>
    %414 = arith.mulf %402, %413 : vector<32x512xf32>
    %415 = vector.extract_strided_slice %0 {offsets = [0, 8], sizes = [4, 1], strides = [1, 1]} : vector<4x9xf32> to vector<4x1xf32>
    %c0_204 = arith.constant 0 : index
    %c0_205 = arith.constant 0 : index
    %416 = vector.load %arg10[%c0_204, %c0_205] : memref<4x32xf32, #tpu.memory_space<vmem>>, vector<4x32xf32>
    %cst_206 = arith.constant dense<0.000000e+00> : vector<4x512xf32>
    %417 = tpu.matmul %416, %414, %cst_206 {dimension_numbers = #tpu.dot_dimension_numbers<[1], [0], [0], [1], [0, 0, 1, 1], [], []>} : vector<4x32xf32>, vector<32x512xf32>, vector<4x512xf32> -> vector<4x512xf32>
    %418 = vector.broadcast %415 : vector<4x1xf32> to vector<4x512xf32>
    %419 = arith.addf %417, %418 : vector<4x512xf32>
    %420 = arith.addf %374, %419 : vector<4x512xf32>
    %c0_207 = arith.constant 0 : index
    %c0_208 = arith.constant 0 : index
    %421 = vector.load %arg12[%c0_207, %c0_208] : memref<8x1xf32, #tpu.memory_space<vmem>>, vector<8x1xf32>
    %c0_209 = arith.constant 0 : index
    %c0_210 = arith.constant 0 : index
    %422 = vector.load %arg11[%c0_209, %c0_210] : memref<8x4xf32, #tpu.memory_space<vmem>>, vector<8x4xf32>
    %cst_211 = arith.constant dense<0.000000e+00> : vector<8x512xf32>
    %423 = tpu.matmul %422, %420, %cst_211 {dimension_numbers = #tpu.dot_dimension_numbers<[1], [0], [0], [1], [0, 0, 1, 1], [], []>} : vector<8x4xf32>, vector<4x512xf32>, vector<8x512xf32> -> vector<8x512xf32>
    %424 = vector.broadcast %421 : vector<8x1xf32> to vector<8x512xf32>
    %425 = arith.addf %423, %424 : vector<8x512xf32>
    %c0_212 = arith.constant 0 : index
    %c0_213 = arith.constant 0 : index
    %426 = vector.load %arg13[%c0_212, %c0_213] : memref<8x512xf32, #tpu.memory_space<vmem>>, vector<8x512xf32>
    tpu.vector_store %arg13[%c0_212, %c0_213], %425 {strides = array<i32>} : memref<8x512xf32, #tpu.memory_space<vmem>>, vector<8x512xf32>,
    return
  }
}

</mosaic_0001>

<bundles_post_ra>
// kernel: meta_block_forward.1
= control target key start
LH: loop header
LB: loop body
LE: loop exit
PB: predicated region body
PF: predicated region fallthrough
CT: control target
= control target key end

     0   :  { %v5605_v2 = vmov 0   ;;  %s3476_s29 = smov 17   ;;  %vm59_vm0 = vcmask 138240   ;;  %s3478_s15 = smov 127   ;;  %v78_v53 = vlaneseq  ;;  %vm152_vm1 = vcmask 1039360   ;;  %s5591_s0 = inlined_call_operand.vmem [shape: f32[4,512], index: 0, kind: input, shape index: {}]   ;;  %s5592_s2 = inlined_call_operand.vmem [shape: f32[9,4,1], index: 2, kind: input, shape index: {}]   ;;  %s5593_s1 = inlined_call_operand.vmem [shape: f32[4,9], index: 1, kind: input, shape index: {}]   ;;  %s5594_s3 = inlined_call_operand.vmem [shape: f32[9,1,512], index: 3, kind: input, shape index: {}]   ;;  %s5595_s4 = inlined_call_operand.vmem [shape: f32[25,4,1], index: 4, kind: input, shape index: {}]   ;;  %s5596_s6 = inlined_call_operand.vmem [shape: f32[4,4], index: 6, kind: input, shape index: {}]   ;;  %s5597_s5 = inlined_call_operand.vmem [shape: f32[25,1,512], index: 5, kind: input, shape index: {}]   ;;  %s5598_s7 = inlined_call_operand.vmem [shape: f32[4,4], index: 7, kind: input, shape index: {}]   ;;  %s5599_s9 = inlined_call_operand.vmem [shape: f32[32,1], index: 9, kind: input, shape index: {}]   ;;  %s5600_s8 = inlined_call_operand.vmem [shape: f32[32,4], index: 8, kind: input, shape index: {}]   ;;  %s5601_s10 = inlined_call_operand.vmem [shape: f32[4,32], index: 10, kind: input, shape index: {}]   ;;  %s5602_s12 = inlined_call_operand.vmem [shape: f32[8,1], index: 12, kind: input, shape index: {}]   ;;  %s5603_s11 = inlined_call_operand.vmem [shape: f32[8,4], index: 11, kind: input, shape index: {}]   ;;  %s5604_s13 = inlined_call_operand.vmem [shape: f32[8,512], index: 13, kind: output, shape index: {}]  }
   0x1   :  { %v3585_v0 = vld [vmem:[%s5591_s0 + $0x8] sm:$0xff]  ;;  %v3590_v1 = vld [vmem:[%s5591_s0] sm:$0xff]  ;;  %3422 = vset.pattern.permute.xlu1 %v5605_v2  ;;  %3423 = vset.pattern.permute.xlu0 %v5605_v2  ;;  %v3297_v4 = vld [vmem:[%s5592_s2 + $0x10] sm:$0xf]  ;;  %s3477_s0 = smov 126   ;;  %s3480_s16 = smov 95  }
   0x2   :  { %5658 = vst [vmem:[#allocation2_spill] sm:$0xff] %v3585_v0  ;;  %5659 = vst [vmem:[#allocation3_spill] sm:$0xff] %v3590_v1  ;;  %55 = vrot.lane.b32.xlu1 %v3585_v0, %s3476_s29  ;;  %51 = vrot.lane.b32.xlu0 %v3590_v1, %s3476_s29  ;;  %v49_v3 = vcombine.high %v3590_v1, %v3590_v1  ;;  %v50_v5 = vcombine.high %v3585_v0, %v3585_v0  ;;  %v70_v6 = vld [vmem:[%s5592_s2] sm:$0xf]  ;;  %v3293_v7 = vld [vmem:[%s5592_s2 + $0x8] sm:$0xf] }
   0x3   :  { %v3291_v8 = vld [vmem:[%s5592_s2 + $0x4] sm:$0xf]  ;;  %v3295_v9 = vld [vmem:[%s5592_s2 + $0xc] sm:$0xf]  ;;  %v3298_v10 = vld [vmem:[%s5592_s2 + $0x14] sm:$0xf] }
   0x4   :  { %v3302_v11 = vld [vmem:[%s5592_s2 + $0x1c] sm:$0xf]  ;;  %v3300_v12 = vld [vmem:[%s5592_s2 + $0x18] sm:$0xf]  ;;  %v3304_v13 = vld [vmem:[%s5592_s2 + $0x20] sm:$0xf] }
   0x5   :  { %v3630_v14 = vld [vmem:[%s5593_s1] sm:$0xf]  ;;  %s3479_s2 = smov 112   ;;  %s3481_s17 = smov 110   ;;  %v3768_v56 = vshrl.u32 %v78_v53, 7  ;;  %vm213_vm2 = vcmask 1031168  }
   0x6   :  { %295 = vperm.xlu1 %3422, %v3297_v4   ;;  %53 = vrot.lane.b32.xlu0 %v49_v3, %s3476_s29  ;;  %5660 = vst [vmem:[#allocation4_spill] sm:$0xff] %v3630_v14  ;;  %s3482_s18 = smov 96   ;;  %s3483_s19 = smov 94   ;;  %v71_v62 = vld [vmem:[%s5594_s3] sm:$0xf]  ;;  %vm274_vm3 = vcmask 916480  }
   0x7   :  { %s3484_s20 = smov 111   ;;  %5668 = vst [vmem:[#allocation12_spill] sm:$0xff] %v3768_v56  ;;  %v3775_v59 = vsub.s32 0, %v3768_v56  ;;  %v3778_v60 = vsub.s32 1, %v3768_v56  ;;  %v3786_v63 = vsub.s32 2, %v3768_v56  ;;  %v3789_v3 = vsub.s32 3, %v3768_v56 }
   0x8   :  { %vm375_vm4 = vcmask 900096   ;;  %vm436_vm5 = vcmask 785408   ;;  %vm558_vm6 = vcmask 769024   ;;  %vm318_vm7 = vcmask 908288   ;;  %s3490_s27 = smov 34   ;;  %s3492_s28 = smov 125  }
   0x9   :  { %5670 = vst [vmem:[#allocation14_spill] sm:$0xff] %v3786_v63  ;;  %vm497_vm8 = vcmask 777216   ;;  %vm600_vm9 = vcmask 1043456   ;;  %vm679_vm10 = vcmask 31744   ;;  %vm845_vm11 = vcmask 277504   ;;  %s3494_s30 = smov 124  }
   0xa   :  { %74 = vperm.xlu1 %3422, %v70_v6   ;;  %57 = vrot.lane.b32.xlu0 %v50_v5, %s3476_s29  ;;  %v3796_v5 = vld [vmem:[%s5594_s3 + $0x8] sm:$0xf]  ;;  %v3801_v6 = vld [vmem:[%s5594_s3 + $0xc] sm:$0xf]  ;;  %s3493_s29 = smov 93   ;;  %s3495_s14 = smov 92  }
   0xb   :  { %s3496_s21 = smov 80   ;;  %s3497_s22 = smov 79   ;;  %vm1058_vm12 = vcmask 1022976   ;;  %vm1119_vm13 = vcmask 1014784   ;;  %vm1360_vm14 = vcmask 891904   ;;  %vm1421_vm15 = vcmask 883712  }
   0xc   :  { %s3498_s23 = smov 78   ;;  %s3500_s24 = smov 77  }
   0xd   :  { %s3501_s25 = smov 62   ;;  %s3503_s26 = smov 64  }
   0xe   :  { %175 = vperm.xlu1 %3422, %v3293_v7   ;;  %112 = vperm.xlu0 %3423, %v3291_v8   ;;  %v81_v7 = vrot.slane %v71_v62, %v3775_v59  ;;  %v85_v8 = vrot.slane %v71_v62, %v3778_v60 }
  0x12   :  { %236 = vperm.xlu1 %3422, %v3295_v9   ;;  %337 = vperm.xlu0 %3423, %v3298_v10   ;;  %v3810_v10 = vld [vmem:[%s5594_s3 + $0x1c] sm:$0xf] }
  0x16   :  { %459 = vperm.xlu1 %3422, %v3302_v11   ;;  %398 = vperm.xlu0 %3423, %v3300_v12   ;;  %v89_v11 = vrot.slane %v71_v62, %v3786_v63  ;;  %v93_v12 = vrot.slane %v71_v62, %v3789_v3 }
  0x1a   :  { %520 = vperm.xlu0 %3423, %v3304_v13   ;;  %v182_v13 = vrot.slane %v3796_v5, %v3775_v59 }
  0x1e   :  { %577 = vperm.xlu0 %3423, %v3630_v14  }
  0x74   :  { %v52_v15 = vpop.permute.xlu0 %51  ;;  %v56_v17 = vpop.permute.xlu1 %55 }
  0x75   :  { %v3634_v16 = vsel %vm59_vm0, 0.0, %v52_v15 }
  0x76   :  { %203 = vrot.lane.b32.xlu1 %v3634_v16, %s3477_s0  ;;  %142 = vrot.lane.b32.xlu0 %v3634_v16, %s3478_s15 }
  0x78   :  { %v54_v18 = vpop.permute.xlu0 %53 }
  0x79   :  { %v3645_v19 = vsel %vm59_vm0, %v54_v18, %v56_v17  ;;  %v3652_v20 = vsel %vm59_vm0, %v52_v15, %v54_v18  ;;  %v3292_v15 = vld [vmem:[%s5594_s3 + $0x4] sm:$0xf] }
  0x7a   :  { %264 = vrot.lane.b32.xlu1 %v3634_v16, %s3479_s2  ;;  %487 = vrot.lane.b32.xlu0 %v3634_v16, %s3480_s16  ;;  %v119_v2 = vrot.slane %v3292_v15, %v3775_v59  ;;  %v123_v14 = vrot.slane %v3292_v15, %v3778_v60  ;;  %v131_v1 = vrot.slane %v3292_v15, %v3789_v3 }
  0x7c   :  { %v58_v21 = vpop.permute.xlu0 %57 }
  0x7d   :  { %v69_v22 = vsel %vm59_vm0, %v58_v21, 0.0  ;;  %v3670_v23 = vsel %vm59_vm0, %v56_v17, %v58_v21  ;;  %v243_v17 = vrot.slane %v3801_v6, %v3775_v59  ;;  %v186_v21 = vrot.slane %v3796_v5, %v3778_v60 }
  0x7e   :  { %365 = vrot.lane.b32.xlu1 %v3634_v16, %s3481_s17  ;;  %146 = vrot.lane.b32.xlu0 %v3645_v19, %s3478_s15  ;;  %vm1641_vm0 = vcmask 760832  }
  0x81   :  { %v296_v24 = vpop.permute.xlu1 %295 }
  0x82   :  { %426 = vrot.lane.b32.xlu1 %v3634_v16, %s3482_s18  ;;  %205 = vrot.lane.b32.xlu0 %v3652_v20, %s3477_s0  ;;  %v298_v25 = vmul.f32 %v296_v24, %v3634_v16  ;;  %v300_v26 = vmul.f32 %v296_v24, %v3645_v19  ;;  %v301_v27 = vmul.f32 %v296_v24, %v3670_v23 }
  0x83   :  { %v299_v28 = vmul.f32 %v296_v24, %v3652_v20  ;;  %v302_v29 = vmul.f32 %v296_v24, %v69_v22  ;;  %v251_v24 = vrot.slane %v3801_v6, %v3786_v63 }
  0x85   :  { %v3722_v32 = vpop.permute.xlu1 %74 }
  0x86   :  { %548 = vrot.lane.b32.xlu1 %v3634_v16, %s3483_s19  ;;  %150 = vrot.lane.b32.xlu0 %v69_v22, %s3478_s15  ;;  %v98_v0 = vmul.f32 %v81_v7, %v3722_v32 }
  0x89   :  { %v3718_v30 = vpop.permute.xlu0 %112  ;;  %v3724_v33 = vpop.permute.xlu1 %175 }
  0x8a   :  { %144 = vrot.lane.b32.xlu1 %v3652_v20, %s3478_s15  ;;  %266 = vrot.lane.b32.xlu0 %v3652_v20, %s3479_s2 }
  0x8d   :  { %v3720_v31 = vpop.permute.xlu0 %337  ;;  %v3728_v35 = vpop.permute.xlu1 %236 }
  0x8e   :  { %207 = vrot.lane.b32.xlu1 %v3645_v19, %s3477_s0  ;;  %211 = vrot.lane.b32.xlu0 %v69_v22, %s3477_s0 }
  0x91   :  { %v3726_v34 = vpop.permute.xlu0 %398  ;;  %v3732_v37 = vpop.permute.xlu1 %459 }
  0x92   :  { %148 = vrot.lane.b32.xlu1 %v3670_v23, %s3478_s15  ;;  %270 = vrot.lane.b32.xlu0 %v3670_v23, %s3479_s2 }
  0x95   :  { %v3730_v36 = vpop.permute.xlu0 %520 }
  0x96   :  { %268 = vrot.lane.b32.xlu1 %v3645_v19, %s3479_s2  ;;  %367 = vrot.lane.b32.xlu0 %v3652_v20, %s3481_s17 }
  0x99   :  { %v3734_v38 = vpop.permute.xlu0 %577 }
  0x9a   :  { %209 = vrot.lane.b32.xlu1 %v3670_v23, %s3477_s0  ;;  %428 = vrot.lane.b32.xlu0 %v3652_v20, %s3482_s18  ;;  %5661 = vst [vmem:[#allocation5_spill] sm:$0xff] %v3734_v38 }
  0x9e   :  { %272 = vrot.lane.b32.xlu1 %v69_v22, %s3479_s2  ;;  %371 = vrot.lane.b32.xlu0 %v3670_v23, %s3481_s17 }
  0xa2   :  { %369 = vrot.lane.b32.xlu1 %v3645_v19, %s3481_s17  ;;  %491 = vrot.lane.b32.xlu0 %v3645_v19, %s3480_s16 }
  0xa6   :  { %430 = vrot.lane.b32.xlu1 %v3645_v19, %s3482_s18  ;;  %434 = vrot.lane.b32.xlu0 %v69_v22, %s3482_s18 }
  0xaa   :  { %373 = vrot.lane.b32.xlu1 %v69_v22, %s3481_s17  ;;  %550 = vrot.lane.b32.xlu0 %v3652_v20, %s3483_s19 }
  0xae   :  { %489 = vrot.lane.b32.xlu1 %v3652_v20, %s3480_s16  ;;  %308 = vrot.lane.b32.xlu0 %v298_v25, %s3484_s20  ;;  %v3832_v25 = vld [vmem:[%s5594_s3 + $0x14] sm:$0xf] }
  0xaf   :  { %v344_v53 = vrot.slane %v3832_v25, %v3775_v59 }
  0xb2   :  { %432 = vrot.lane.b32.xlu1 %v3670_v23, %s3482_s18  ;;  %312 = vrot.lane.b32.xlu0 %v300_v26, %s3484_s20  ;;  %v190_v26 = vrot.slane %v3796_v5, %v3786_v63 }
  0xb6   :  { %552 = vrot.lane.b32.xlu1 %v3645_v19, %s3483_s19  ;;  %314 = vrot.lane.b32.xlu0 %v301_v27, %s3484_s20  ;;  %v3839_v27 = vld [vmem:[%s5594_s3 + $0x18] sm:$0xf] }
  0xb7   :  { %v405_v62 = vrot.slane %v3839_v27, %v3775_v59 }
  0xba   :  { %310 = vrot.lane.b32.xlu1 %v299_v28, %s3484_s20  ;;  %495 = vrot.lane.b32.xlu0 %v69_v22, %s3480_s16  ;;  %v194_v28 = vrot.slane %v3796_v5, %v3789_v3  ;;  %v99_v5 = vmul.f32 %v85_v8, %v3722_v32 }
  0xbe   :  { %316 = vrot.lane.b32.xlu1 %v302_v29, %s3484_s20  ;;  %556 = vrot.lane.b32.xlu0 %v69_v22, %s3483_s19  ;;  %v247_v22 = vrot.slane %v3801_v6, %v3778_v60  ;;  %v255_v29 = vrot.slane %v3801_v6, %v3789_v3  ;;  %v127_v6 = vrot.slane %v3292_v15, %v3786_v63 }
  0xbf   :  { %v101_v15 = vmul.f32 %v93_v12, %v3722_v32 }
  0xc2   :  { %493 = vrot.lane.b32.xlu1 %v3670_v23, %s3480_s16 }
  0xc6   :  { %554 = vrot.lane.b32.xlu1 %v3670_v23, %s3483_s19 }
  0xe8   :  { %v3736_v39 = vpop.permute.xlu1 %203  ;;  %v3738_v40 = vpop.permute.xlu0 %142 }
  0xec   :  { %v3740_v41 = vpop.permute.xlu1 %264  ;;  %v3742_v42 = vpop.permute.xlu0 %487 }
  0xed   :  { %5662 = vst [vmem:[#allocation6_spill] sm:$0xff] %v3740_v41  ;;  %5663 = vst [vmem:[#allocation7_spill] sm:$0xff] %v3742_v42  ;;  %v100_v42 = vmul.f32 %v89_v11, %v3722_v32  ;;  %v413_v32 = vrot.slane %v3839_v27, %v3786_v63  ;;  %v417_v11 = vrot.slane %v3839_v27, %v3789_v3 }
  0xee   :  { %v137_v41 = vmul.f32 %v123_v14, %v3718_v30  ;;  %v202_v14 = vmul.f32 %v194_v28, %v3724_v33  ;;  %v422_v28 = vmul.f32 %v405_v62, %v3726_v34 }
  0xf0   :  { %v3744_v43 = vpop.permute.xlu1 %365  ;;  %v3746_v44 = vpop.permute.xlu0 %146 }
  0xf1   :  { %5664 = vst [vmem:[#allocation8_spill] sm:$0xff] %v3744_v43  ;;  %v102_v43 = vmul.f32 %v98_v0, %v3634_v16  ;;  %v200_v0 = vmul.f32 %v186_v21, %v3724_v33  ;;  %v138_v16 = vmul.f32 %v127_v6, %v3718_v30 }
  0xf4   :  { %v3748_v45 = vpop.permute.xlu1 %426  ;;  %v3750_v46 = vpop.permute.xlu0 %205 }
  0xf5   :  { %5665 = vst [vmem:[#allocation9_spill] sm:$0xff] %v3748_v45  ;;  %v356_v45 = vrot.slane %v3832_v25, %v3789_v3 }
  0xf8   :  { %v3752_v47 = vpop.permute.xlu1 %548  ;;  %v3754_v48 = vpop.permute.xlu0 %150 }
  0xf9   :  { %5666 = vst [vmem:[#allocation10_spill] sm:$0xff] %v3752_v47  ;;  %v3868_v47 = vld [vmem:[%s5594_s3 + $0x20] sm:$0xf]  ;;  %s3502_s3 = smov 76  }
  0xfa   :  { %v527_v8 = vrot.slane %v3868_v47, %v3775_v59 }
  0xfc   :  { %v3756_v49 = vpop.permute.xlu1 %144  ;;  %v3758_v50 = vpop.permute.xlu0 %266 }
 0x100   :  { %v3760_v51 = vpop.permute.xlu1 %207  ;;  %v3762_v52 = vpop.permute.xlu0 %211 }
 0x104   :  { %v3764_v54 = vpop.permute.xlu1 %148  ;;  %v3766_v55 = vpop.permute.xlu0 %270 }
 0x105   :  { %5667 = vst [vmem:[#allocation11_spill] sm:$0xff] %v3766_v55  ;;  %v136_v55 = vmul.f32 %v119_v2, %v3718_v30  ;;  %v261_v2 = vmul.f32 %v247_v22, %v3728_v35  ;;  %v155_v21 = vsel %vm152_vm1, %v3746_v44, %v3764_v54  ;;  %v263_v22 = vmul.f32 %v255_v29, %v3728_v35 }
 0x108   :  { %v3770_v57 = vpop.permute.xlu1 %268  ;;  %v3772_v58 = vpop.permute.xlu0 %367 }
 0x109   :  { %5669 = vst [vmem:[#allocation13_spill] sm:$0xff] %v3772_v58  ;;  %v103_v58 = vmul.f32 %v99_v5, %v3652_v20  ;;  %v139_v20 = vmul.f32 %v131_v1, %v3718_v30  ;;  %v262_v1 = vmul.f32 %v251_v24, %v3728_v35  ;;  %v361_v30 = vmul.f32 %v344_v53, %v3720_v31 }
 0x10a   :  { %v3942_v53 = vmul.f32 %v356_v45, %v3720_v31  ;;  %v156_v5 = vsel %vm152_vm1, %v3764_v54, %v3754_v48  ;;  %v5680_v54 = vld [vmem:[#allocation6_spill] sm:$0xff] }
 0x10c   :  { %v3780_v61 = vpop.permute.xlu1 %209  ;;  %v3791_v4 = vpop.permute.xlu0 %428 }
 0x10d   :  { %5671 = vst [vmem:[#allocation15_spill] sm:$0xff] %v3791_v4  ;;  %v531_v4 = vrot.slane %v3868_v47, %v3778_v60 }
 0x110   :  { %v3805_v9 = vpop.permute.xlu1 %272  ;;  %v3821_v18 = vpop.permute.xlu0 %371 }
 0x111   :  { %5672 = vst [vmem:[#allocation16_spill] sm:$0xff] %v3805_v9  ;;  %5673 = vst [vmem:[#allocation17_spill] sm:$0xff] %v3821_v18  ;;  %v348_v18 = vrot.slane %v3832_v25, %v3778_v60  ;;  %v104_v9 = vmul.f32 %v100_v42, %v3645_v19  ;;  %v201_v19 = vmul.f32 %v190_v26, %v3724_v33 }
 0x112   :  { %v260_v42 = vmul.f32 %v243_v17, %v3728_v35  ;;  %v154_v17 = vsel %vm152_vm1, %v3756_v49, %v3746_v44  ;;  %v214_v35 = vsel %vm213_vm2, %v3736_v39, %v3750_v46  ;;  %v215_v39 = vsel %vm213_vm2, %v3750_v46, %v3760_v51 }
 0x113   :  { %v162_v45 = vmul.f32 %v154_v17, %v137_v41  ;;  %v217_v46 = vsel %vm213_vm2, %v3780_v61, %v3762_v52 }
 0x114   :  { %v3851_v56 = vpop.permute.xlu1 %369  ;;  %v3863_v38 = vpop.permute.xlu0 %491 }
 0x115   :  { %5674 = vst [vmem:[#allocation18_spill] sm:$0xff] %v3851_v56  ;;  %5675 = vst [vmem:[#allocation19_spill] sm:$0xff] %v3863_v38  ;;  %v352_v56 = vrot.slane %v3832_v25, %v3786_v63  ;;  %v409_v38 = vrot.slane %v3839_v27, %v3778_v60  ;;  %v535_v25 = vrot.slane %v3868_v47, %v3786_v63 }
 0x116   :  { %v3902_v27 = vmul.f32 %v101_v15, %v3670_v23  ;;  %v3966_v15 = vmul.f32 %v527_v8, %v3730_v36  ;;  %v275_v8 = vsel %vm274_vm3, %v5680_v54, %v3758_v50 }
 0x117   :  { %v3932_v26 = vmul.f32 %v352_v56, %v3720_v31  ;;  %v3939_v24 = vmul.f32 %v409_v38, %v3726_v34  ;;  %v5678_v56 = vrot.slane %v3810_v10, %v3775_v59  ;;  %v5679_v38 = vrot.slane %v3810_v10, %v3778_v60 }
 0x118   :  { %v3882_v7 = vpop.permute.xlu1 %430  ;;  %v3890_v12 = vpop.permute.xlu0 %434  ;;  %v5682_v17 = vld [vmem:[#allocation16_spill] sm:$0xff] }
 0x119   :  { %5676 = vst [vmem:[#allocation20_spill] sm:$0xff] %v3882_v7  ;;  %5677 = vst [vmem:[#allocation21_spill] sm:$0xff] %v3890_v12  ;;  %v199_v12 = vmul.f32 %v182_v13, %v3724_v33  ;;  %v153_v7 = vsel %vm152_vm1, %v3738_v40, %v3756_v49  ;;  %v362_v33 = vmul.f32 %v348_v18, %v3720_v31 }
 0x11a   :  { %v161_v40 = vmul.f32 %v153_v7, %v136_v55  ;;  %v216_v55 = vsel %vm213_vm2, %v3760_v51, %v3780_v61  ;;  %v163_v49 = vmul.f32 %v155_v21, %v138_v16  ;;  %v3951_v18 = vmul.f32 %v5678_v56, %v3732_v37 }
 0x11b   :  { %v3957_v29 = vmul.f32 %v5679_v38, %v3732_v37  ;;  %v224_v6 = vmul.f32 %v216_v55, %v201_v19  ;;  %v3969_v7 = vmul.f32 %v413_v32, %v3726_v34  ;;  %v3972_v16 = vmul.f32 %v417_v11, %v3726_v34  ;;  %v5683_v55 = vld [vmem:[#allocation13_spill] sm:$0xff] }
 0x11c   :  { %v3914_v23 = vpop.permute.xlu1 %373  ;;  %v3919_v13 = vpop.permute.xlu0 %550  ;;  %v165_v62 = vadd.f32 %v161_v40, %v102_v43  ;;  %v222_v41 = vmul.f32 %v214_v35, %v199_v12  ;;  %v276_v43 = vsel %vm274_vm3, %v3758_v50, %v3770_v57  ;;  %v3981_v51 = vmul.f32 %v531_v4, %v3730_v36  ;;  %v5681_v40 = vld [vmem:[#allocation11_spill] sm:$0xff]  ;;  %v5684_v35 = vld [vmem:[#allocation8_spill] sm:$0xff] }
 0x11d   :  { %v223_v32 = vmul.f32 %v215_v39, %v200_v0  ;;  %v164_v34 = vmul.f32 %v156_v5, %v139_v20  ;;  %v167_v11 = vadd.f32 %v163_v49, %v104_v9  ;;  %v166_v19 = vadd.f32 %v162_v45, %v103_v58  ;;  %v5685_v9 = vld [vmem:[#allocation15_spill] sm:$0xff]  ;;  %v5686_v49 = vld [vmem:[#allocation9_spill] sm:$0xff] }
 0x11e   :  { %v277_v21 = vsel %vm274_vm3, %v3770_v57, %v5681_v40  ;;  %v278_v52 = vsel %vm274_vm3, %v5681_v40, %v5682_v17  ;;  %v226_v61 = vadd.f32 %v222_v41, %v165_v62  ;;  %v284_v4 = vmul.f32 %v276_v43, %v261_v2  ;;  %v5687_v41 = vld [vmem:[#allocation18_spill] sm:$0xff] }
 0x11f   :  { %v376_v56 = vsel %vm375_vm4, %v5684_v35, %v5683_v55  ;;  %v225_v50 = vmul.f32 %v217_v46, %v202_v14  ;;  %v228_v0 = vadd.f32 %v224_v6, %v167_v11  ;;  %v283_v20 = vmul.f32 %v275_v8, %v260_v42  ;;  %v5688_v8 = vld [vmem:[#allocation17_spill] sm:$0xff] }
 0x120   :  { %v490_v44 = vpop.permute.xlu1 %489  ;;  %v309_v31 = vpop.permute.xlu0 %308  ;;  %v437_v58 = vsel %vm436_vm5, %v5686_v49, %v5685_v9  ;;  %v227_v57 = vadd.f32 %v223_v32, %v166_v19  ;;  %v168_v45 = vadd.f32 %v164_v34, %v3902_v27  ;;  %v285_v62 = vmul.f32 %v277_v21, %v262_v1  ;;  %v5689_v11 = vld [vmem:[#allocation20_spill] sm:$0xff]  ;;  %v5690_v21 = vld [vmem:[#allocation7_spill] sm:$0xff] }
 0x121   :  { %v286_v2 = vmul.f32 %v278_v52, %v263_v22  ;;  %v384_v5 = vmul.f32 %v376_v56, %v361_v30  ;;  %v377_v14 = vsel %vm375_vm4, %v5683_v55, %v5687_v41  ;;  %v287_v42 = vadd.f32 %v283_v20, %v226_v61  ;;  %v5691_v52 = vld [vmem:[#allocation19_spill] sm:$0xff] }
 0x122   :  { %v229_v6 = vadd.f32 %v225_v50, %v168_v45  ;;  %v445_v43 = vmul.f32 %v437_v58, %v422_v28  ;;  %v289_v46 = vadd.f32 %v285_v62, %v228_v0  ;;  %v288_v54 = vadd.f32 %v284_v4, %v227_v57  ;;  %v5693_v50 = vld [vmem:[#allocation21_spill] sm:$0xff] }
 0x123   :  { %v378_v32 = vsel %vm375_vm4, %v5687_v41, %v5688_v8  ;;  %v438_v27 = vsel %vm436_vm5, %v5685_v9, %v5689_v11  ;;  %v379_v1 = vsel %vm375_vm4, %v5688_v8, %v3914_v23  ;;  %v385_v34 = vmul.f32 %v377_v14, %v362_v33 }
 0x124   :  { %v433_v48 = vpop.permute.xlu1 %432  ;;  %v313_v12 = vpop.permute.xlu0 %312  ;;  %v290_v40 = vadd.f32 %v286_v2, %v229_v6  ;;  %v498_v17 = vsel %vm497_vm8, %v5690_v21, %v490_v44  ;;  %v499_v61 = vsel %vm497_vm8, %v490_v44, %v5691_v52  ;;  %v386_v35 = vmul.f32 %v378_v32, %v3932_v26 }
 0x125   :  { %v446_v23 = vmul.f32 %v438_v27, %v3939_v24  ;;  %v387_v56 = vmul.f32 %v379_v1, %v3942_v53  ;;  %v440_v0 = vsel %vm436_vm5, %v433_v48, %v5693_v50  ;;  %v506_v44 = vmul.f32 %v498_v17, %v3951_v18 }
 0x126   :  { %v507_v58 = vmul.f32 %v499_v61, %v3957_v29  ;;  %v439_v53 = vsel %vm436_vm5, %v5689_v11, %v433_v48  ;;  %v448_v41 = vmul.f32 %v440_v0, %v3972_v16  ;;  %v5694_v29 = vrot.slane %v3810_v10, %v3786_v63 }
 0x128   :  { %v3998_v38 = vpop.permute.xlu1 %552  ;;  %v315_v39 = vpop.permute.xlu0 %314  ;;  %v485_v14 = vmul.f32 %v5694_v29, %v3732_v37 }
 0x129   :  { %v321_v30 = vsel %vm318_vm7, %v313_v12, %v315_v39  ;;  %v560_v26 = vsel %vm558_vm6, %v3919_v13, %v3998_v38 }
 0x12a   :  { %v329_v33 = vadd.f32 %v321_v30, %v289_v46  ;;  %v5696_v30 = vld [vmem:[#allocation5_spill] sm:$0xff] }
 0x12c   :  { %v311_v22 = vpop.permute.xlu1 %310  ;;  %v496_v62 = vpop.permute.xlu0 %495  ;;  %v390_v18 = vadd.f32 %v386_v35, %v329_v33 }
 0x12d   :  { %v319_v28 = vsel %vm318_vm7, %v309_v31, %v311_v22  ;;  %v320_v19 = vsel %vm318_vm7, %v311_v22, %v313_v12  ;;  %v5692_v31 = vld [vmem:[#allocation10_spill] sm:$0xff] }
 0x12e   :  { %v327_v4 = vadd.f32 %v319_v28, %v287_v42  ;;  %v328_v55 = vadd.f32 %v320_v19, %v288_v54  ;;  %v559_v12 = vsel %vm558_vm6, %v5692_v31, %v3919_v13  ;;  %v568_v13 = vmul.f32 %v560_v26, %v3981_v51 }
 0x130   :  { %v388_v20 = vadd.f32 %v384_v5, %v327_v4  ;;  %v389_v9 = vadd.f32 %v385_v34, %v328_v55  ;;  %v317_v49 = vpop.permute.xlu1 %316  ;;  %v567_v5 = vmul.f32 %v559_v12, %v3966_v15  ;;  %v5695_v15 = vrot.slane %v3810_v10, %v3789_v3  ;;  %v557_v34 = vpop.permute.xlu0 %556  ;;  %v5700_v12 = vld [vmem:[#allocation2_spill] sm:$0xff] }
 0x131   :  { %v322_v24 = vsel %vm318_vm7, %v315_v39, %v317_v49  ;;  %v5697_v10 = vrot.slane %v3868_v47, %v3789_v3 }
 0x132   :  { %v449_v57 = vadd.f32 %v445_v43, %v388_v20  ;;  %v450_v45 = vadd.f32 %v446_v23, %v389_v9  ;;  %v330_v2 = vadd.f32 %v322_v24, %v290_v40  ;;  %v447_v43 = vmul.f32 %v439_v53, %v3969_v7 }
 0x133   :  { %v486_v46 = vmul.f32 %v5695_v15, %v3732_v37  ;;  %v546_v37 = vmul.f32 %v535_v25, %v3730_v36  ;;  %v547_v19 = vmul.f32 %v5697_v10, %v3730_v36  ;;  %v3485_v24 = vmov 839922192   ;;  %v856_v10 = vld [vmem:[%s5595_s4] sm:$0xf] }
 0x134   :  { %v510_v39 = vadd.f32 %v506_v44, %v449_v57  ;;  %v511_v42 = vadd.f32 %v507_v58, %v450_v45  ;;  %v391_v6 = vadd.f32 %v387_v56, %v330_v2  ;;  %v494_v48 = vpop.permute.xlu1 %493  ;;  %v451_v27 = vadd.f32 %v447_v43, %v390_v18  ;;  %v5698_v56 = vld [vmem:[#allocation3_spill] sm:$0xff]  ;;  %v5702_v45 = vld [vmem:[#allocation12_spill] sm:$0xff] }
 0x135   :  { %v500_v16 = vsel %vm497_vm8, %v5691_v52, %v494_v48  ;;  %v501_v54 = vsel %vm497_vm8, %v494_v48, %v496_v62  ;;  %v613_v53 = vunpack.c.l.s4 %v3485_v24  ;;  %v3312_v24 = vld [vmem:[%s5595_s4 + $0x4] sm:$0xf] }
 0x136   :  { %v571_v8 = vadd.f32 %v567_v5, %v510_v39  ;;  %v572_v32 = vadd.f32 %v568_v13, %v511_v42  ;;  %v452_v11 = vadd.f32 %v448_v41, %v391_v6  ;;  %v508_v51 = vmul.f32 %v500_v16, %v485_v14 }
 0x137   :  { %v509_v1 = vmul.f32 %v501_v54, %v486_v46  ;;  %v614_v57 = vunpack.c.0.s8 %v613_v53  ;;  %v3318_v53 = vld [vmem:[%s5595_s4 + $0x10] sm:$0xf] }
 0x138   :  { %v580_v22 = vadd.f32 %v5696_v30, %v571_v8  ;;  %v581_v7 = vadd.f32 %v5696_v30, %v572_v32  ;;  %v555_v28 = vpop.permute.xlu1 %554  ;;  %v512_v40 = vadd.f32 %v508_v51, %v451_v27  ;;  %v3486_v8 = vmov 1  }
 0x139   :  { %v561_v21 = vsel %vm558_vm6, %v3998_v38, %v555_v28  ;;  %v562_v17 = vsel %vm558_vm6, %v555_v28, %v557_v34  ;;  %v513_v52 = vadd.f32 %v509_v1, %v452_v11  ;;  %v4083_v62 = vsub.s32 %v614_v57, %v5702_v45  ;;  %3424 = vset.pattern.permute.xlu0 %v3486_v8  ;;  %v5704_v11 = vld [vmem:[#allocation4_spill] sm:$0xff]  ;;  %v3322_v45 = vld [vmem:[%s5595_s4 + $0x18] sm:$0xf] }
 0x13a   :  { %v569_v61 = vmul.f32 %v561_v21, %v546_v37  ;;  %v570_v4 = vmul.f32 %v562_v17, %v547_v19  ;;  %v588_v55 = vcombine.low %v580_v22, %v581_v7  ;;  %v3487_v32 = vmov 2   ;;  %v3334_v37 = vld [vmem:[%s5595_s4 + $0x30] sm:$0xf]  ;;  %v3314_v19 = vld [vmem:[%s5595_s4 + $0x8] sm:$0xf] }
 0x13b   :  { %5703 = vst [vmem:[#allocation16_spill] sm:$0xff] %v4083_v62  ;;  %3425 = vset.pattern.permute.xlu1 %v3487_v32  ;;  %v5705_v7 = vmov 0   ;;  %v5620_v34 = vmov 0.0   ;;  %v3489_v28 = vmov 3   ;;  %v3335_v21 = vld [vmem:[%s5595_s4 + $0x34] sm:$0xf] }
 0x13c   :  { %v573_v35 = vadd.f32 %v569_v61, %v512_v40  ;;  %v574_v23 = vadd.f32 %v570_v4, %v513_v52  ;;  %v4065_v33 = vadd.f32 %v588_v55, %v5698_v56  ;;  %755 = vmatprep.mubr.f32.mxu0 %v5620_v34  ;;  %826 = vmatprep.mubr.f32.mxu1 %v5620_v34  ;;  %v3316_v40 = vld [vmem:[%s5595_s4 + $0xc] sm:$0xf]  ;;  %v3337_v17 = vld [vmem:[%s5595_s4 + $0x38] sm:$0xf]  ;;  %v3339_v52 = vld [vmem:[%s5595_s4 + $0x3c] sm:$0xf] }
 0x13d   :  { %v3343_v61 = vld [vmem:[%s5595_s4 + $0x44] sm:$0xf]  ;;  %v3345_v4 = vld [vmem:[%s5595_s4 + $0x48] sm:$0xf]  ;;  %v3347_v55 = vld [vmem:[%s5595_s4 + $0x4c] sm:$0xf] }
 0x13e   :  { %5699 = vst [vmem:[#allocation6_spill] sm:$0xff] %v4065_v33  ;;  %v582_v25 = vadd.f32 %v5696_v30, %v573_v35  ;;  %v583_v47 = vadd.f32 %v5696_v30, %v574_v23  ;;  %v596_v36 = vcombine.high %v4065_v33, %v4065_v33  ;;  %v601_v0 = vsel %vm600_vm9, %v4065_v33, 0.0  ;;  %v3349_v35 = vld [vmem:[%s5595_s4 + $0x50] sm:$0xf]  ;;  %v3351_v23 = vld [vmem:[%s5595_s4 + $0x54] sm:$0xf] }
 0x13f   :  { %v3353_v56 = vld [vmem:[%s5595_s4 + $0x58] sm:$0xf]  ;;  %v3320_v57 = vld [vmem:[%s5595_s4 + $0x14] sm:$0xf] }
 0x140   :  { %v589_v38 = vcombine.low %v582_v25, %v583_v47  ;;  %v602_v31 = vsel %vm600_vm9, %v596_v36, 0.0  ;;  %v3355_v25 = vld [vmem:[%s5595_s4 + $0x5c] sm:$0xf]  ;;  %v3357_v47 = vld [vmem:[%s5595_s4 + $0x60] sm:$0xf] }
 0x141   :  { %v603_v20 = vadd.f32 %v602_v31, %v601_v0 }
 0x142   :  { %v4073_v50 = vadd.f32 %v589_v38, %v5700_v12 }
 0x144   :  { %5701 = vst [vmem:[#allocation11_spill] sm:$0xff] %v4073_v50  ;;  %v597_v9 = vcombine.high %v4073_v50, %v4073_v50  ;;  %v604_v49 = vsel %vm600_vm9, %v4073_v50, 0.0 }
 0x145   :  { %v605_v44 = vadd.f32 %v604_v49, %v603_v20 }
 0x146   :  { %v606_v58 = vsel %vm600_vm9, %v597_v9, 0.0 }
 0x147   :  { %v607_v26 = vadd.f32 %v606_v58, %v605_v44 }
 0x149   :  { %608 = vadd.xlane.f32.xlu1 %v607_v26  ;;  %v670_v26 = vld [vmem:[%s5596_s6] sm:$0xf]  ;;  %s3499_s6 = smov 109  }
 0x15a   :  { %658 = vperm.xlu1 %3425, %v5704_v11  }
 0x15e   :  { %3426 = vset.pattern.permute.xlu1 %v3489_v28 }
 0x15f   :  { %672 = vperm.xlu1 %3426, %v5704_v11  }
 0x163   :  { %3427 = vset.pattern.permute.xlu1 %v5705_v7 }
 0x164   :  { %1562 = vperm.xlu1 %3427, %v3334_v37  }
 0x168   :  { %860 = vperm.xlu1 %3427, %v856_v10  }
 0x16c   :  { %960 = vperm.xlu1 %3427, %v3314_v19  }
 0x170   :  { %1020 = vperm.xlu1 %3427, %v3316_v40  }
 0x174   :  { %1603 = vperm.xlu1 %3427, %v3335_v21  }
 0x178   :  { %1664 = vperm.xlu1 %3427, %v3337_v17  }
 0x17c   :  { %1725 = vperm.xlu1 %3427, %v3339_v52  }
 0x180   :  { %1847 = vperm.xlu1 %3427, %v3343_v61  }
 0x184   :  { %1908 = vperm.xlu1 %3427, %v3345_v4  }
 0x188   :  { %1969 = vperm.xlu1 %3427, %v3347_v55  }
 0x18c   :  { %2030 = vperm.xlu1 %3427, %v3349_v35  }
 0x190   :  { %2091 = vperm.xlu1 %3427, %v3351_v23  }
 0x194   :  { %2152 = vperm.xlu1 %3427, %v3353_v56  }
 0x198   :  { %2213 = vperm.xlu1 %3427, %v3355_v25  }
 0x19c   :  { %2274 = vperm.xlu1 %3427, %v3357_v47  }
 0x1d2   :  { %v609_v2 = vpop.xlane.xlu1 %608 }
 0x1d3   :  { %v610_v5 = vmul.f32 0.001953125, %v609_v2  ;;  %v3324_v2 = vld [vmem:[%s5595_s4 + $0x1c] sm:$0xf] }
 0x1d5   :  { %v618_v41 = vrot.slane %v610_v5, %v4083_v62  ;;  %v3326_v5 = vld [vmem:[%s5595_s4 + $0x20] sm:$0xf] }
 0x1d6   :  { %v659_v36 = vpop.permute.xlu1 %658 }
 0x1d7   :  { %v4087_v18 = vsub.f32 %v4065_v33, %v618_v41  ;;  %v4090_v29 = vsub.f32 %v4073_v50, %v618_v41  ;;  %v666_v12 = vrot.slane %v659_v36, %v4083_v62  ;;  %v3328_v41 = vld [vmem:[%s5595_s4 + $0x24] sm:$0xf] }
 0x1d9   :  { %v622_v14 = vmul.f32 %v4087_v18, %v4087_v18  ;;  %v623_v13 = vmul.f32 %v4090_v29, %v4090_v29 }
 0x1db   :  { %v626_v39 = vcombine.high %v622_v14, %v622_v14  ;;  %v627_v42 = vcombine.high %v623_v13, %v623_v13  ;;  %v630_v6 = vsel %vm600_vm9, %v622_v14, 0.0  ;;  %v633_v15 = vsel %vm600_vm9, %v623_v13, 0.0  ;;  %v3341_v14 = vld [vmem:[%s5595_s4 + $0x40] sm:$0xf]  ;;  %v673_v13 = vpop.permute.xlu1 %672 }
 0x1dd   :  { %v631_v48 = vsel %vm600_vm9, %v626_v39, 0.0  ;;  %v635_v16 = vsel %vm600_vm9, %v627_v42, 0.0 }
 0x1de   :  { %v632_v43 = vadd.f32 %v631_v48, %v630_v6 }
 0x1e0   :  { %v634_v46 = vadd.f32 %v633_v15, %v632_v43 }
 0x1e2   :  { %v636_v54 = vadd.f32 %v635_v16, %v634_v46 }
 0x1e4   :  { %637 = vadd.xlane.f32.xlu0 %v636_v54  ;;  %v4197_v54 = vpop.permute.xlu1 %1562 }
 0x1e8   :  { %v4199_v8 = vpop.permute.xlu1 %860 }
 0x1ec   :  { %v4201_v32 = vpop.permute.xlu1 %960 }
 0x26d   :  { %v638_v51 = vpop.xlane.xlu0 %637 }
 0x26e   :  { %v639_v27 = vmul.f32 0.001953125, %v638_v51 }
 0x270   :  { %v640_v1 = vadd.f32 1e-05, %v639_v27 }
 0x272   :  { %3438 = vrsqrt.f32 %v640_v1 }
 0x27f   :  { %v3439_v30 = vpop.eup %3438 }
 0x280   :  { %v642_v22 = vmul.f32 %v3439_v30, %v5704_v11  ;;  %v4203_v11 = vpop.permute.xlu1 %1020 }
 0x282   :  { %645 = vperm.xlu0 %3424, %v642_v22  }
 0x284   :  { %v4205_v51 = vpop.permute.xlu1 %1603 }
 0x285   :  { %5706 = vst [vmem:[#allocation13_spill] sm:$0xff] %v4205_v51 }
 0x286   :  { %3428 = vset.pattern.permute.xlu0 %v5705_v7 }
 0x287   :  { %898 = vperm.xlu0 %3428, %v3312_v24  }
 0x288   :  { %v4207_v27 = vpop.permute.xlu1 %1664 }
 0x289   :  { %5707 = vst [vmem:[#allocation8_spill] sm:$0xff] %v4207_v27 }
 0x28b   :  { %1081 = vperm.xlu0 %3428, %v3318_v53  }
 0x28c   :  { %v4209_v1 = vpop.permute.xlu1 %1725 }
 0x28d   :  { %5708 = vst [vmem:[#allocation15_spill] sm:$0xff] %v4209_v1 }
 0x28f   :  { %1142 = vperm.xlu0 %3428, %v3320_v57  }
 0x290   :  { %v4211_v30 = vpop.permute.xlu1 %1847 }
 0x291   :  { %5709 = vst [vmem:[#allocation9_spill] sm:$0xff] %v4211_v30  ;;  %v4520_v30 = vld [vmem:[%s5597_s5 + $0x10] sm:$0xf] }
 0x293   :  { %1202 = vperm.xlu0 %3428, %v3322_v45  }
 0x294   :  { %v4213_v22 = vpop.permute.xlu1 %1908 }
 0x295   :  { %5710 = vst [vmem:[#allocation18_spill] sm:$0xff] %v4213_v22 }
 0x297   :  { %1262 = vperm.xlu0 %3428, %v3324_v2  }
 0x298   :  { %v4215_v28 = vpop.permute.xlu1 %1969 }
 0x299   :  { %5711 = vst [vmem:[#allocation17_spill] sm:$0xff] %v4215_v28 }
 0x29b   :  { %1322 = vperm.xlu0 %3428, %v3326_v5  }
 0x29c   :  { %v4217_v37 = vpop.permute.xlu1 %2030 }
 0x29d   :  { %5712 = vst [vmem:[#allocation20_spill] sm:$0xff] %v4217_v37 }
 0x29f   :  { %1383 = vperm.xlu0 %3428, %v3328_v41  }
 0x2a0   :  { %v4219_v10 = vpop.permute.xlu1 %2091 }
 0x2a1   :  { %5713 = vst [vmem:[#allocation7_spill] sm:$0xff] %v4219_v10 }
 0x2a4   :  { %v4221_v19 = vpop.permute.xlu1 %2152 }
 0x2a5   :  { %5714 = vst [vmem:[#allocation19_spill] sm:$0xff] %v4221_v19 }
 0x2a8   :  { %v4223_v40 = vpop.permute.xlu1 %2213 }
 0x2a9   :  { %5715 = vst [vmem:[#allocation10_spill] sm:$0xff] %v4223_v40 }
 0x2ac   :  { %v4225_v21 = vpop.permute.xlu1 %2274 }
 0x2ad   :  { %5716 = vst [vmem:[#allocation21_spill] sm:$0xff] %v4225_v21 }
 0x2fd   :  { %v646_v38 = vpop.permute.xlu0 %645 }
 0x2fe   :  { %v653_v31 = vrot.slane %v646_v38, %v4083_v62  ;;  %v3315_v62 = vld [vmem:[%s5597_s5 + $0x8] sm:$0xf] }
 0x2ff   :  { %v975_v19 = vrot.slane %v3315_v62, %v3786_v63  ;;  %v979_v10 = vrot.slane %v3315_v62, %v3789_v3 }
 0x300   :  { %v655_v0 = vmul.f32 %v653_v31, %v4087_v18  ;;  %v656_v20 = vmul.f32 %v653_v31, %v4090_v29  ;;  %v3330_v18 = vld [vmem:[%s5595_s4 + $0x28] sm:$0xf]  ;;  %v3332_v29 = vld [vmem:[%s5595_s4 + $0x2c] sm:$0xf]  ;;  %s3491_s4 = smov 108  }
 0x301   :  { %1444 = vperm.xlu0 %3428, %v3330_v18  }
 0x302   :  { %v668_v9 = vadd.f32 %v666_v12, %v655_v0  ;;  %v669_v49 = vadd.f32 %v666_v12, %v656_v20  ;;  %v4298_v47 = vpop.permute.xlu0 %898 }
 0x304   :  { %v677_v44 = vcombine.high %v668_v9, %v668_v9  ;;  %v678_v58 = vcombine.high %v669_v49, %v669_v49 }
 0x305   :  { %1504 = vperm.xlu0 %3428, %v3332_v29  }
 0x306   :  { %3306 = vmatprep.subr.msk.mxu0 %vm600_vm9, %v677_v44  ;;  %3309 = vmatprep.subr.msk.mxu1 %vm600_vm9, %v678_v58  ;;  %v4308_v36 = vpop.permute.xlu0 %1081 }
 0x307   :  { %3307 = vmatpush1.msk.msra.mxu0 %vm600_vm9, %v668_v9  ;;  %3310 = vmatpush1.msk.msra.mxu1 %vm600_vm9, %v669_v49  ;;  %v3505_v9 = vmov 4  }
 0x308   :  { %3308 = vmatmul.mubr.msk.f32.vlgmr.msra.gmra.mxu0 %vm679_vm10, %v670_v26  ;;  %3311 = vmatmul.mubr.msk.f32.vlgmr.msra.gmra.mxu1 %vm679_vm10, %v670_v26 }
 0x309   :  { %2421 = vmatprep.mubr.f32.mxu0 %v5620_v34  ;;  %2492 = vmatprep.mubr.f32.mxu1 %v5620_v34 }
 0x30a   :  { %1786 = vperm.xlu0 %3428, %v3341_v14   ;;  %v4314_v38 = vpop.permute.xlu0 %1142  ;;  %3429 = vset.pattern.permute.xlu1 %v3505_v9 }
 0x30e   :  { %v4324_v31 = vpop.permute.xlu0 %1202 }
 0x312   :  { %v4330_v12 = vpop.permute.xlu0 %1262 }
 0x316   :  { %v4340_v0 = vpop.permute.xlu0 %1322 }
 0x31a   :  { %v4346_v20 = vpop.permute.xlu0 %1383 }
 0x31b   :  { %5717 = vst [vmem:[#allocation5_spill] sm:$0xff] %v4346_v20 }
 0x37c   :  { %v4356_v49 = vpop.permute.xlu0 %1444 }
 0x37d   :  { %5718 = vst [vmem:[#allocation3_spill] sm:$0xff] %v4356_v49 }
 0x380   :  { %v4362_v44 = vpop.permute.xlu0 %1504 }
 0x381   :  { %5719 = vst [vmem:[#allocation2_spill] sm:$0xff] %v4362_v44  ;;  %v987_v44 = vmul.f32 %v979_v10, %v4201_v32 }
 0x385   :  { %v4372_v58 = vpop.permute.xlu0 %1786 }
 0x386   :  { %5720 = vst [vmem:[#allocation12_spill] sm:$0xff] %v4372_v58  ;;  %v3313_v58 = vld [vmem:[%s5597_s5 + $0x4] sm:$0xf] }
 0x387   :  { %v905_v1 = vrot.slane %v3313_v58, %v3775_v59  ;;  %v909_v51 = vrot.slane %v3313_v58, %v3778_v60 }
 0x3c8   :  { %v757_v39 = vpop.f32.mrf.mxu0  ;;  %v828_v6 = vpop.f32.mrf.mxu1 }
 0x3c9   :  { %v758_v42 = vadd.f32 %v757_v39, %v673_v13  ;;  %v829_v48 = vadd.f32 %v828_v6, %v673_v13 }
 0x3ca   :  { %v759_v43 = vpop.f32.mrf.mxu0  ;;  %v830_v46 = vpop.f32.mrf.mxu1 }
 0x3cb   :  { %837 = vrot.lane.b32.xlu1 %v758_v42, %s3490_s27  ;;  %v760_v15 = vadd.f32 %v759_v43, %v673_v13  ;;  %v831_v16 = vadd.f32 %v830_v46, %v673_v13 }
 0x3cf   :  { %841 = vrot.lane.b32.xlu1 %v829_v48, %s3490_s27 }
 0x3d3   :  { %839 = vrot.lane.b32.xlu1 %v760_v15, %s3490_s27 }
 0x3d7   :  { %843 = vrot.lane.b32.xlu1 %v831_v16, %s3490_s27  ;;  %s3504_s27 = smov 63  }
 0x43d   :  { %v838_v17 = vpop.permute.xlu1 %837 }
 0x43e   :  { %v4228_v52 = vsel %vm845_vm11, 0.0, %v838_v17 }
 0x43f   :  { %1411 = vrot.lane.b32.xlu0 %v4228_v52, %s3491_s4  ;;  %928 = vrot.lane.b32.xlu1 %v4228_v52, %s3478_s15  ;;  %v1565_v18 = vmul.f32 %v4197_v54, %v4228_v52 }
 0x441   :  { %v842_v61 = vpop.permute.xlu1 %841 }
 0x443   :  { %1472 = vrot.lane.b32.xlu0 %v4228_v52, %s3482_s18  ;;  %988 = vrot.lane.b32.xlu1 %v4228_v52, %s3477_s0 }
 0x445   :  { %v840_v4 = vpop.permute.xlu1 %839 }
 0x446   :  { %v4267_v55 = vsel %vm845_vm11, %v840_v4, %v842_v61  ;;  %v4285_v56 = vsel %vm845_vm11, %v838_v17, %v840_v4 }
 0x447   :  { %1532 = vrot.lane.b32.xlu0 %v4228_v52, %s3480_s16  ;;  %1048 = vrot.lane.b32.xlu1 %v4228_v52, %s3492_s28 }
 0x449   :  { %v844_v35 = vpop.permute.xlu1 %843 }
 0x44a   :  { %v4278_v23 = vsel %vm845_vm11, %v844_v35, 0.0  ;;  %v4296_v25 = vsel %vm845_vm11, %v842_v61, %v844_v35  ;;  %vm2129_vm11 = vcmask 515072  }
 0x44b   :  { %1631 = vrot.lane.b32.xlu0 %v4228_v52, %s3493_s29  ;;  %1109 = vrot.lane.b32.xlu1 %v4228_v52, %s3494_s30 }
 0x44f   :  { %1692 = vrot.lane.b32.xlu0 %v4228_v52, %s3495_s14  ;;  %1170 = vrot.lane.b32.xlu1 %v4228_v52, %s3479_s2 }
 0x453   :  { %1753 = vrot.lane.b32.xlu0 %v4228_v52, %s3496_s21  ;;  %1230 = vrot.lane.b32.xlu1 %v4228_v52, %s3484_s20 }
 0x457   :  { %1814 = vrot.lane.b32.xlu0 %v4228_v52, %s3497_s22  ;;  %1290 = vrot.lane.b32.xlu1 %v4228_v52, %s3481_s17 }
 0x45b   :  { %1875 = vrot.lane.b32.xlu0 %v4228_v52, %s3498_s23  ;;  %1350 = vrot.lane.b32.xlu1 %v4228_v52, %s3499_s6 }
 0x45f   :  { %1936 = vrot.lane.b32.xlu0 %v4228_v52, %s3500_s24  ;;  %2180 = vrot.lane.b32.xlu1 %v4228_v52, %s3501_s25 }
 0x463   :  { %1997 = vrot.lane.b32.xlu0 %v4228_v52, %s3502_s3  ;;  %932 = vrot.lane.b32.xlu1 %v4267_v55, %s3478_s15 }
 0x467   :  { %2058 = vrot.lane.b32.xlu0 %v4228_v52, %s3503_s26  ;;  %992 = vrot.lane.b32.xlu1 %v4267_v55, %s3477_s0 }
 0x46b   :  { %2119 = vrot.lane.b32.xlu0 %v4228_v52, %s3504_s27  ;;  %936 = vrot.lane.b32.xlu1 %v4278_v23, %s3478_s15 }
 0x46f   :  { %930 = vrot.lane.b32.xlu0 %v4285_v56, %s3478_s15  ;;  %1052 = vrot.lane.b32.xlu1 %v4267_v55, %s3492_s28 }
 0x473   :  { %990 = vrot.lane.b32.xlu0 %v4285_v56, %s3477_s0  ;;  %996 = vrot.lane.b32.xlu1 %v4278_v23, %s3477_s0 }
 0x477   :  { %1113 = vrot.lane.b32.xlu1 %v4267_v55, %s3494_s30  ;;  %934 = vrot.lane.b32.xlu0 %v4296_v25, %s3478_s15 }
 0x47b   :  { %1056 = vrot.lane.b32.xlu1 %v4278_v23, %s3492_s28  ;;  %1050 = vrot.lane.b32.xlu0 %v4285_v56, %s3492_s28 }
 0x47f   :  { %1174 = vrot.lane.b32.xlu1 %v4267_v55, %s3479_s2  ;;  %994 = vrot.lane.b32.xlu0 %v4296_v25, %s3477_s0 }
 0x483   :  { %1117 = vrot.lane.b32.xlu1 %v4278_v23, %s3494_s30  ;;  %1111 = vrot.lane.b32.xlu0 %v4285_v56, %s3494_s30 }
 0x487   :  { %1234 = vrot.lane.b32.xlu1 %v4267_v55, %s3484_s20  ;;  %1054 = vrot.lane.b32.xlu0 %v4296_v25, %s3492_s28 }
 0x48b   :  { %1178 = vrot.lane.b32.xlu1 %v4278_v23, %s3479_s2  ;;  %1172 = vrot.lane.b32.xlu0 %v4285_v56, %s3479_s2 }
 0x48f   :  { %1294 = vrot.lane.b32.xlu1 %v4267_v55, %s3481_s17  ;;  %1115 = vrot.lane.b32.xlu0 %v4296_v25, %s3494_s30 }
 0x493   :  { %1238 = vrot.lane.b32.xlu1 %v4278_v23, %s3484_s20  ;;  %1232 = vrot.lane.b32.xlu0 %v4285_v56, %s3484_s20 }
 0x497   :  { %1354 = vrot.lane.b32.xlu1 %v4267_v55, %s3499_s6  ;;  %1176 = vrot.lane.b32.xlu0 %v4296_v25, %s3479_s2 }
 0x49b   :  { %1298 = vrot.lane.b32.xlu1 %v4278_v23, %s3481_s17  ;;  %1292 = vrot.lane.b32.xlu0 %v4285_v56, %s3481_s17 }
 0x49f   :  { %1415 = vrot.lane.b32.xlu1 %v4267_v55, %s3491_s4  ;;  %1236 = vrot.lane.b32.xlu0 %v4296_v25, %s3484_s20 }
 0x4a3   :  { %1356 = vrot.lane.b32.xlu1 %v4296_v25, %s3499_s6  ;;  %1352 = vrot.lane.b32.xlu0 %v4285_v56, %s3499_s6 }
 0x4a7   :  { %1474 = vrot.lane.b32.xlu1 %v4285_v56, %s3482_s18  ;;  %1296 = vrot.lane.b32.xlu0 %v4296_v25, %s3481_s17 }
 0x4ab   :  { %1417 = vrot.lane.b32.xlu1 %v4296_v25, %s3491_s4  ;;  %1413 = vrot.lane.b32.xlu0 %v4285_v56, %s3491_s4 }
 0x4af   :  { %1534 = vrot.lane.b32.xlu1 %v4285_v56, %s3480_s16  ;;  %1358 = vrot.lane.b32.xlu0 %v4278_v23, %s3499_s6 }
 0x4b1   :  { %v4378_v26 = vpop.permute.xlu0 %1411  ;;  %v4380_v24 = vpop.permute.xlu1 %928 }
 0x4b2   :  { %5721 = vst [vmem:[#allocation4_spill] sm:$0xff] %v4378_v26  ;;  %v1088_v26 = vrot.slane %v4520_v30, %v3775_v59 }
 0x4b3   :  { %1478 = vrot.lane.b32.xlu1 %v4296_v25, %s3482_s18  ;;  %1476 = vrot.lane.b32.xlu0 %v4267_v55, %s3482_s18 }
 0x4b4   :  { %v1105_v49 = vmul.f32 %v1088_v26, %v4308_v36 }
 0x4b5   :  { %v4386_v53 = vpop.permute.xlu0 %1472  ;;  %v4388_v57 = vpop.permute.xlu1 %988 }
 0x4b6   :  { %5722 = vst [vmem:[#allocation22_spill] sm:$0xff] %v4386_v53 }
 0x4b7   :  { %1540 = vrot.lane.b32.xlu1 %v4278_v23, %s3480_s16  ;;  %1419 = vrot.lane.b32.xlu0 %v4278_v23, %s3491_s4 }
 0x4b9   :  { %v4394_v45 = vpop.permute.xlu0 %1532  ;;  %v4396_v2 = vpop.permute.xlu1 %1048 }
 0x4ba   :  { %5723 = vst [vmem:[#allocation23_spill] sm:$0xff] %v4394_v45  ;;  %v986_v45 = vmul.f32 %v975_v19, %v4201_v32  ;;  %v922_v19 = vmul.f32 %v905_v1, %v4298_v47 }
 0x4bb   :  { %1635 = vrot.lane.b32.xlu1 %v4267_v55, %s3493_s29  ;;  %1536 = vrot.lane.b32.xlu0 %v4267_v55, %s3480_s16 }
 0x4bd   :  { %v4402_v5 = vpop.permute.xlu0 %1631  ;;  %v4404_v41 = vpop.permute.xlu1 %1109 }
 0x4be   :  { %5724 = vst [vmem:[#allocation24_spill] sm:$0xff] %v4402_v5 }
 0x4bf   :  { %1575 = vrot.lane.b32.xlu1 %v1565_v18, %s3483_s19  ;;  %1480 = vrot.lane.b32.xlu0 %v4278_v23, %s3482_s18  ;;  %v857_v18 = vld [vmem:[%s5597_s5] sm:$0xf]  ;;  %s3507_s18 = smov 60  }
 0x4c0   :  { %v867_v50 = vrot.slane %v857_v18, %v3775_v59  ;;  %v871_v33 = vrot.slane %v857_v18, %v3778_v60 }
 0x4c1   :  { %v4411_v29 = vpop.permute.xlu0 %1692  ;;  %v4413_v14 = vpop.permute.xlu1 %1170 }
 0x4c2   :  { %5725 = vst [vmem:[#allocation25_spill] sm:$0xff] %v4411_v29  ;;  %v885_v29 = vmul.f32 %v871_v33, %v4199_v8 }
 0x4c3   :  { %1694 = vrot.lane.b32.xlu1 %v4285_v56, %s3495_s14  ;;  %1538 = vrot.lane.b32.xlu0 %v4296_v25, %s3480_s16 }
 0x4c4   :  { %v889_v26 = vmul.f32 %v885_v29, %v4285_v56 }
 0x4c5   :  { %v4419_v13 = vpop.permute.xlu0 %1753  ;;  %v4421_v39 = vpop.permute.xlu1 %1230 }
 0x4c6   :  { %5726 = vst [vmem:[#allocation26_spill] sm:$0xff] %v4419_v13  ;;  %v884_v13 = vmul.f32 %v867_v50, %v4199_v8 }
 0x4c7   :  { %1637 = vrot.lane.b32.xlu1 %v4296_v25, %s3493_s29  ;;  %1633 = vrot.lane.b32.xlu0 %v4285_v56, %s3493_s29 }
 0x4c9   :  { %v4427_v42 = vpop.permute.xlu0 %1814  ;;  %v4429_v6 = vpop.permute.xlu1 %1290 }
 0x4ca   :  { %5727 = vst [vmem:[#allocation27_spill] sm:$0xff] %v4427_v42  ;;  %v971_v42 = vrot.slane %v3315_v62, %v3778_v60 }
 0x4cb   :  { %1755 = vrot.lane.b32.xlu1 %v4285_v56, %s3496_s21  ;;  %1696 = vrot.lane.b32.xlu0 %v4267_v55, %s3495_s14 }
 0x4cd   :  { %v4435_v48 = vpop.permute.xlu0 %1875  ;;  %v4437_v43 = vpop.permute.xlu1 %1350 }
 0x4ce   :  { %5728 = vst [vmem:[#allocation28_spill] sm:$0xff] %v4435_v48  ;;  %5729 = vst [vmem:[#allocation29_spill] sm:$0xff] %v4437_v43  ;;  %v967_v48 = vrot.slane %v3315_v62, %v3775_v59  ;;  %v985_v62 = vmul.f32 %v971_v42, %v4201_v32 }
 0x4cf   :  { %1698 = vrot.lane.b32.xlu1 %v4296_v25, %s3495_s14  ;;  %1639 = vrot.lane.b32.xlu0 %v4278_v23, %s3493_s29 }
 0x4d0   :  { %v984_v22 = vmul.f32 %v967_v48, %v4201_v32  ;;  %v913_v48 = vrot.slane %v3313_v58, %v3786_v63  ;;  %v923_v32 = vmul.f32 %v909_v51, %v4298_v47  ;;  %v888_v51 = vmul.f32 %v884_v13, %v4228_v52 }
 0x4d1   :  { %v4443_v15 = vpop.permute.xlu0 %1936  ;;  %v4445_v46 = vpop.permute.xlu1 %2180 }
 0x4d2   :  { %5730 = vst [vmem:[#allocation30_spill] sm:$0xff] %v4443_v15  ;;  %5731 = vst [vmem:[#allocation31_spill] sm:$0xff] %v4445_v46  ;;  %v879_v15 = vrot.slane %v857_v18, %v3789_v3 }
 0x4d3   :  { %1816 = vrot.lane.b32.xlu1 %v4285_v56, %s3497_s22  ;;  %1757 = vrot.lane.b32.xlu0 %v4267_v55, %s3496_s21 }
 0x4d4   :  { %v887_v28 = vmul.f32 %v879_v15, %v4199_v8  ;;  %v917_v15 = vrot.slane %v3313_v58, %v3789_v3  ;;  %v1092_v58 = vrot.slane %v4520_v30, %v3778_v60 }
 0x4d5   :  { %v4451_v16 = vpop.permute.xlu0 %1997  ;;  %v4453_v17 = vpop.permute.xlu1 %932 }
 0x4d6   :  { %5732 = vst [vmem:[#allocation32_spill] sm:$0xff] %v4451_v16  ;;  %v875_v16 = vrot.slane %v857_v18, %v3786_v63 }
 0x4d7   :  { %1759 = vrot.lane.b32.xlu1 %v4296_v25, %s3496_s21  ;;  %1700 = vrot.lane.b32.xlu0 %v4278_v23, %s3495_s14 }
 0x4d8   :  { %v886_v50 = vmul.f32 %v875_v16, %v4199_v8  ;;  %v4533_v8 = vld [vmem:[%s5597_s5 + $0x14] sm:$0xf] }
 0x4d9   :  { %v4459_v61 = vpop.permute.xlu0 %2058  ;;  %v4461_v4 = vpop.permute.xlu1 %992 }
 0x4da   :  { %5733 = vst [vmem:[#allocation33_spill] sm:$0xff] %v4459_v61  ;;  %v3317_v61 = vld [vmem:[%s5597_s5 + $0xc] sm:$0xf] }
 0x4db   :  { %1877 = vrot.lane.b32.xlu1 %v4285_v56, %s3498_s23  ;;  %1818 = vrot.lane.b32.xlu0 %v4267_v55, %s3497_s22  ;;  %v1027_v5 = vrot.slane %v3317_v61, %v3775_v59  ;;  %v1031_v18 = vrot.slane %v3317_v61, %v3778_v60  ;;  %v1035_v37 = vrot.slane %v3317_v61, %v3786_v63 }
 0x4dc   :  { %v1039_v33 = vrot.slane %v3317_v61, %v3789_v3 }
 0x4dd   :  { %v4467_v35 = vpop.permute.xlu0 %2119  ;;  %v4469_v9 = vpop.permute.xlu1 %936  ;;  %v1044_v16 = vmul.f32 %v1027_v5, %v4203_v11  ;;  %v1045_v61 = vmul.f32 %v1031_v18, %v4203_v11  ;;  %v4546_v53 = vmul.f32 %v1035_v37, %v4203_v11  ;;  %v924_v37 = vmul.f32 %v913_v48, %v4298_v47 }
 0x4de   :  { %5734 = vst [vmem:[#allocation34_spill] sm:$0xff] %v4467_v35  ;;  %v1047_v5 = vmul.f32 %v1039_v33, %v4203_v11  ;;  %v925_v33 = vmul.f32 %v917_v15, %v4298_v47 }
 0x4df   :  { %1820 = vrot.lane.b32.xlu1 %v4296_v25, %s3497_s22  ;;  %1761 = vrot.lane.b32.xlu0 %v4278_v23, %s3496_s21 }
 0x4e1   :  { %v931_v34 = vpop.permute.xlu0 %930  ;;  %v4478_v7 = vpop.permute.xlu1 %1052 }
 0x4e2   :  { %v938_v10 = vsel %vm152_vm1, %v4380_v24, %v931_v34  ;;  %v939_v11 = vsel %vm152_vm1, %v931_v34, %v4453_v17 }
 0x4e3   :  { %1938 = vrot.lane.b32.xlu1 %v4285_v56, %s3500_s24  ;;  %1879 = vrot.lane.b32.xlu0 %v4267_v55, %s3498_s23  ;;  %v946_v43 = vmul.f32 %v938_v10, %v922_v19  ;;  %v947_v13 = vmul.f32 %v939_v11, %v923_v32  ;;  %v891_v10 = vmul.f32 %v887_v28, %v4296_v25 }
 0x4e5   :  { %v991_v46 = vpop.permute.xlu0 %990  ;;  %v4489_v35 = vpop.permute.xlu1 %996  ;;  %v951_v29 = vadd.f32 %v947_v13, %v889_v26 }
 0x4e6   :  { %v998_v34 = vsel %vm213_vm2, %v4388_v57, %v991_v46  ;;  %v999_v47 = vsel %vm213_vm2, %v991_v46, %v4461_v4  ;;  %v890_v57 = vmul.f32 %v886_v50, %v4267_v55 }
 0x4e7   :  { %1881 = vrot.lane.b32.xlu1 %v4296_v25, %s3498_s23  ;;  %1822 = vrot.lane.b32.xlu0 %v4278_v23, %s3497_s22  ;;  %v1006_v46 = vmul.f32 %v998_v34, %v984_v22  ;;  %v1007_v15 = vmul.f32 %v999_v47, %v985_v62 }
 0x4e9   :  { %v935_v21 = vpop.permute.xlu0 %934  ;;  %v4509_v40 = vpop.permute.xlu1 %1113 }
 0x4ea   :  { %v940_v1 = vsel %vm152_vm1, %v4453_v17, %v935_v21  ;;  %v941_v24 = vsel %vm152_vm1, %v935_v21, %v4469_v9  ;;  %vm1702_vm1 = vcmask 752640  }
 0x4eb   :  { %1999 = vrot.lane.b32.xlu1 %v4285_v56, %s3502_s3  ;;  %1940 = vrot.lane.b32.xlu0 %v4267_v55, %s3500_s24  ;;  %v948_v48 = vmul.f32 %v940_v1, %v924_v37  ;;  %v949_v9 = vmul.f32 %v941_v24, %v925_v33 }
 0x4ed   :  { %v1051_v42 = vpop.permute.xlu0 %1050  ;;  %v4539_v27 = vpop.permute.xlu1 %1056  ;;  %v952_v1 = vadd.f32 %v948_v48, %v890_v57  ;;  %v953_v22 = vadd.f32 %v949_v9, %v891_v10  ;;  %v1100_v9 = vrot.slane %v4520_v30, %v3789_v3 }
 0x4ee   :  { %v1060_v11 = vsel %vm1058_vm12, %v1051_v42, %v4478_v7 }
 0x4ef   :  { %1942 = vrot.lane.b32.xlu1 %v4296_v25, %s3500_s24  ;;  %1883 = vrot.lane.b32.xlu0 %v4278_v23, %s3498_s23  ;;  %v1068_v62 = vmul.f32 %v1060_v11, %v1045_v61 }
 0x4f1   :  { %v995_v20 = vpop.permute.xlu0 %994  ;;  %v4572_v18 = vpop.permute.xlu1 %1174 }
 0x4f2   :  { %v1000_v17 = vsel %vm213_vm2, %v4461_v4, %v995_v20  ;;  %v1001_v21 = vsel %vm213_vm2, %v995_v20, %v4489_v35  ;;  %v1059_v4 = vsel %vm1058_vm12, %v4396_v2, %v1051_v42  ;;  %v950_v35 = vadd.f32 %v946_v43, %v888_v51 }
 0x4f3   :  { %2060 = vrot.lane.b32.xlu1 %v4285_v56, %s3503_s26  ;;  %2001 = vrot.lane.b32.xlu0 %v4267_v55, %s3502_s3  ;;  %v1008_v19 = vmul.f32 %v1000_v17, %v986_v45  ;;  %v1009_v37 = vmul.f32 %v1001_v21, %v987_v44  ;;  %v1067_v45 = vmul.f32 %v1059_v4, %v1044_v16  ;;  %vm1763_vm2 = vcmask 654336  }
 0x4f4   :  { %v1106_v2 = vmul.f32 %v1092_v58, %v4308_v36  ;;  %v1010_v43 = vadd.f32 %v1006_v46, %v950_v35  ;;  %v1011_v44 = vadd.f32 %v1007_v15, %v951_v29  ;;  %v4629_v46 = vld [vmem:[%s5597_s5 + $0x18] sm:$0xf] }
 0x4f5   :  { %v1112_v32 = vpop.permute.xlu0 %1111  ;;  %v1118_v20 = vpop.permute.xlu1 %1117  ;;  %v1012_v42 = vadd.f32 %v1008_v19, %v952_v1  ;;  %v1213_v11 = vrot.slane %v4629_v46, %v3778_v60  ;;  %v1108_v1 = vmul.f32 %v1100_v9, %v4308_v36 }
 0x4f6   :  { %v1120_v50 = vsel %vm1119_vm13, %v4404_v41, %v1112_v32  ;;  %v1121_v28 = vsel %vm1119_vm13, %v1112_v32, %v4509_v40  ;;  %v1013_v41 = vadd.f32 %v1009_v37, %v953_v22  ;;  %v1071_v61 = vadd.f32 %v1067_v45, %v1010_v43 }
 0x4f7   :  { %2003 = vrot.lane.b32.xlu1 %v4296_v25, %s3502_s3  ;;  %1944 = vrot.lane.b32.xlu0 %v4278_v23, %s3500_s24  ;;  %v1128_v24 = vmul.f32 %v1120_v50, %v1105_v49  ;;  %v1129_v47 = vmul.f32 %v1121_v28, %v1106_v2  ;;  %v5735_v49 = vrot.slane %v4533_v8, %v3775_v59 }
 0x4f9   :  { %v1055_v33 = vpop.permute.xlu0 %1054  ;;  %v4603_v51 = vpop.permute.xlu1 %1234  ;;  %v1166_v13 = vmul.f32 %v5735_v49, %v4314_v38  ;;  %v1132_v15 = vadd.f32 %v1128_v24, %v1071_v61  ;;  %v4663_v24 = vld [vmem:[%s5597_s5 + $0x1c] sm:$0xf] }
 0x4fa   :  { %v1061_v34 = vsel %vm1058_vm12, %v4478_v7, %v1055_v33  ;;  %v1062_v16 = vsel %vm1058_vm12, %v1055_v33, %v4539_v27  ;;  %v5736_v7 = vrot.slane %v4533_v8, %v3778_v60  ;;  %v1273_v61 = vrot.slane %v4663_v24, %v3778_v60 }
 0x4fb   :  { %v1069_v58 = vmul.f32 %v1061_v34, %v4546_v53  ;;  %v1070_v17 = vmul.f32 %v1062_v16, %v1047_v5  ;;  %2121 = vrot.lane.b32.xlu1 %v4285_v56, %s3504_s27  ;;  %2062 = vrot.lane.b32.xlu0 %v4267_v55, %s3503_s26  ;;  %v1096_v53 = vrot.slane %v4520_v30, %v3786_v63  ;;  %vm2190_vm12 = vcmask 506880  }
 0x4fc   :  { %v1167_v27 = vmul.f32 %v5736_v7, %v4314_v38  ;;  %v1072_v5 = vadd.f32 %v1068_v62, %v1011_v44  ;;  %v1209_v30 = vrot.slane %v4629_v46, %v3775_v59  ;;  %v1157_v44 = vrot.slane %v4533_v8, %v3786_v63 }
 0x4fd   :  { %v1073_v48 = vadd.f32 %v1069_v58, %v1012_v42  ;;  %v1074_v21 = vadd.f32 %v1070_v17, %v1013_v41  ;;  %v1173_v26 = vpop.permute.xlu0 %1172  ;;  %v1179_v57 = vpop.permute.xlu1 %1178  ;;  %v1107_v29 = vmul.f32 %v1096_v53, %v4308_v36  ;;  %v1161_v36 = vrot.slane %v4533_v8, %v3789_v3 }
 0x4fe   :  { %v1180_v4 = vsel %vm274_vm3, %v4413_v14, %v1173_v26  ;;  %v1181_v19 = vsel %vm274_vm3, %v1173_v26, %v4572_v18  ;;  %v1133_v32 = vadd.f32 %v1129_v47, %v1072_v5  ;;  %v1168_v58 = vmul.f32 %v1157_v44, %v4314_v38 }
 0x4ff   :  { %v1188_v35 = vmul.f32 %v1180_v4, %v1166_v13  ;;  %v1189_v10 = vmul.f32 %v1181_v19, %v1167_v27  ;;  %2064 = vrot.lane.b32.xlu1 %v4296_v25, %s3503_s26  ;;  %2005 = vrot.lane.b32.xlu0 %v4278_v23, %s3502_s3  ;;  %v1269_v17 = vrot.slane %v4663_v24, %v3775_v59 }
 0x500   :  { %v1169_v13 = vmul.f32 %v1161_v36, %v4314_v38  ;;  %v1567_v53 = vmul.f32 %v4197_v54, %v4267_v55  ;;  %v1287_v38 = vmul.f32 %v1273_v61, %v4330_v12 }
 0x501   :  { %v1192_v37 = vadd.f32 %v1188_v35, %v1132_v15  ;;  %v1193_v14 = vadd.f32 %v1189_v10, %v1133_v32  ;;  %v1116_v50 = vpop.permute.xlu0 %1115  ;;  %v4645_v22 = vpop.permute.xlu1 %1294  ;;  %v1286_v9 = vmul.f32 %v1269_v17, %v4330_v12  ;;  %v1217_v15 = vrot.slane %v4629_v46, %v3786_v63  ;;  %v4698_v10 = vld [vmem:[%s5597_s5 + $0x20] sm:$0xf] }
 0x502   :  { %v1122_v45 = vsel %vm1119_vm13, %v4509_v40, %v1116_v50  ;;  %v1123_v2 = vsel %vm1119_vm13, %v1116_v50, %v1118_v20  ;;  %v1226_v40 = vmul.f32 %v1209_v30, %v4324_v31  ;;  %v1227_v20 = vmul.f32 %v1213_v11, %v4324_v31 }
 0x503   :  { %v1130_v28 = vmul.f32 %v1122_v45, %v1107_v29  ;;  %v1131_v43 = vmul.f32 %v1123_v2, %v1108_v1  ;;  %2123 = vrot.lane.b32.xlu0 %v4267_v55, %s3504_s27  ;;  %2182 = vrot.lane.b32.xlu1 %v4285_v56, %s3501_s25  ;;  %v1221_v35 = vrot.slane %v4629_v46, %v3789_v3  ;;  %vm2251_vm13 = vcmask 498688  }
 0x504   :  { %v1329_v46 = vrot.slane %v4698_v10, %v3775_v59  ;;  %v1333_v29 = vrot.slane %v4698_v10, %v3778_v60  ;;  %v1337_v61 = vrot.slane %v4698_v10, %v3786_v63 }
 0x505   :  { %v1134_v62 = vadd.f32 %v1130_v28, %v1073_v48  ;;  %v1135_v42 = vadd.f32 %v1131_v43, %v1074_v21  ;;  %v1233_v33 = vpop.permute.xlu0 %1232  ;;  %v1239_v41 = vpop.permute.xlu1 %1238  ;;  %v1229_v45 = vmul.f32 %v1221_v35, %v4324_v31 }
 0x506   :  { %v1240_v34 = vsel %vm318_vm7, %v4421_v39, %v1233_v33  ;;  %v1241_v16 = vsel %vm318_vm7, %v1233_v33, %v4603_v51 }
 0x507   :  { %v1248_v8 = vmul.f32 %v1240_v34, %v1226_v40  ;;  %v1249_v47 = vmul.f32 %v1241_v16, %v1227_v20  ;;  %2066 = vrot.lane.b32.xlu0 %v4278_v23, %s3503_s26  ;;  %2127 = vrot.lane.b32.xlu1 %v4278_v23, %s3504_s27  ;;  %s3506_s26 = smov 61   ;;  %v4730_v40 = vld [vmem:[%s5597_s5 + $0x28] sm:$0xf] }
 0x509   :  { %v1252_v39 = vadd.f32 %v1248_v8, %v1192_v37  ;;  %v1253_v49 = vadd.f32 %v1249_v47, %v1193_v14  ;;  %v1177_v7 = vpop.permute.xlu0 %1176  ;;  %v1355_v27 = vpop.permute.xlu1 %1354  ;;  %v1566_v8 = vmul.f32 %v4197_v54, %v4285_v56  ;;  %v4740_v47 = vld [vmem:[%s5597_s5 + $0x24] sm:$0xf] }
 0x50a   :  { %v1182_v5 = vsel %vm274_vm3, %v4572_v18, %v1177_v7  ;;  %v1183_v48 = vsel %vm274_vm3, %v1177_v7, %v1179_v57  ;;  %v1568_v57 = vmul.f32 %v4197_v54, %v4296_v25  ;;  %v1451_v7 = vrot.slane %v4730_v40, %v3775_v59 }
 0x50b   :  { %v1190_v21 = vmul.f32 %v1182_v5, %v1168_v58  ;;  %v1191_v26 = vmul.f32 %v1183_v48, %v1169_v13  ;;  %2184 = vrot.lane.b32.xlu0 %v4267_v55, %s3501_s25  ;;  %1579 = vrot.lane.b32.xlu1 %v1567_v53, %s3483_s19  ;;  %v1390_v48 = vrot.slane %v4740_v47, %v3775_v59  ;;  %vm1824_vm3 = vcmask 646144  }
 0x50d   :  { %v1194_v4 = vadd.f32 %v1190_v21, %v1134_v62  ;;  %v1195_v19 = vadd.f32 %v1191_v26, %v1135_v42  ;;  %v1293_v32 = vpop.permute.xlu0 %1292  ;;  %v1299_v18 = vpop.permute.xlu1 %1298  ;;  %v1277_v42 = vrot.slane %v4663_v24, %v3786_v63 }
 0x50e   :  { %v1300_v30 = vsel %vm375_vm4, %v4429_v6, %v1293_v32  ;;  %v1301_v11 = vsel %vm375_vm4, %v1293_v32, %v4645_v22  ;;  %v1228_v6 = vmul.f32 %v1217_v15, %v4324_v31  ;;  %v1346_v31 = vmul.f32 %v1329_v46, %v4340_v0 }
 0x50f   :  { %v1308_v37 = vmul.f32 %v1300_v30, %v1286_v9  ;;  %v1309_v14 = vmul.f32 %v1301_v11, %v1287_v38  ;;  %2125 = vrot.lane.b32.xlu0 %v4296_v25, %s3504_s27  ;;  %1581 = vrot.lane.b32.xlu1 %v1568_v57, %s3483_s19  ;;  %v1288_v53 = vmul.f32 %v1277_v42, %v4330_v12  ;;  %v5738_v11 = vld [vmem:[#allocation3_spill] sm:$0xff] }
 0x510   :  { %v1569_v15 = vmul.f32 %v4197_v54, %v4278_v23  ;;  %v5739_v54 = vld [vmem:[#allocation5_spill] sm:$0xff] }
 0x511   :  { %v1312_v1 = vadd.f32 %v1308_v37, %v1252_v39  ;;  %v1313_v50 = vadd.f32 %v1309_v14, %v1253_v49  ;;  %v1237_v2 = vpop.permute.xlu0 %1236  ;;  %v4713_v28 = vpop.permute.xlu1 %1415  ;;  %v1468_v37 = vmul.f32 %v1451_v7, %v5738_v11  ;;  %v1407_v14 = vmul.f32 %v1390_v48, %v5739_v54 }
 0x512   :  { %v1242_v43 = vsel %vm318_vm7, %v4603_v51, %v1237_v2  ;;  %v1243_v44 = vsel %vm318_vm7, %v1237_v2, %v1239_v41  ;;  %v1281_v51 = vrot.slane %v4663_v24, %v3789_v3  ;;  %v1347_v41 = vmul.f32 %v1333_v29, %v4340_v0  ;;  %v5737_v24 = vld [vmem:[#allocation29_spill] sm:$0xff] }
 0x513   :  { %v1250_v36 = vmul.f32 %v1242_v43, %v1228_v6  ;;  %v1251_v62 = vmul.f32 %v1243_v44, %v1229_v45  ;;  %2243 = vrot.lane.b32.xlu0 %v4285_v56, %s3506_s26  ;;  %2245 = vrot.lane.b32.xlu1 %v4267_v55, %s3506_s26  ;;  %v5740_v43 = vld [vmem:[#allocation22_spill] sm:$0xff]  ;;  %v5741_v44 = vld [vmem:[#allocation4_spill] sm:$0xff]  ;;  %vm2007_vm7 = vcmask 621568  }
 0x514   :  { %v1289_v5 = vmul.f32 %v1281_v51, %v4330_v12  ;;  %v4767_v12 = vld [vmem:[%s5597_s5 + $0x2c] sm:$0xf] }
 0x515   :  { %v1254_v20 = vadd.f32 %v1250_v36, %v1194_v4  ;;  %v1255_v33 = vadd.f32 %v1251_v62, %v1195_v19  ;;  %v1353_v34 = vpop.permute.xlu0 %1352  ;;  %v4733_v16 = vpop.permute.xlu1 %1356  ;;  %v1398_v4 = vrot.slane %v4740_v47, %v3786_v63  ;;  %v1348_v19 = vmul.f32 %v1337_v61, %v4340_v0 }
 0x516   :  { %v1361_v58 = vsel %vm1360_vm14, %v5737_v24, %v1353_v34  ;;  %v1362_v17 = vsel %vm1360_vm14, %v1353_v34, %v1355_v27  ;;  %v1363_v39 = vsel %vm1360_vm14, %v1355_v27, %v4733_v16  ;;  %v1394_v27 = vrot.slane %v4740_v47, %v3778_v60  ;;  %v5743_v34 = vld [vmem:[#allocation2_spill] sm:$0xff] }
 0x517   :  { %v1369_v49 = vmul.f32 %v1361_v58, %v1346_v31  ;;  %v1370_v13 = vmul.f32 %v1362_v17, %v1347_v41  ;;  %1577 = vrot.lane.b32.xlu0 %v1566_v8, %s3483_s19  ;;  %2186 = vrot.lane.b32.xlu1 %v4296_v25, %s3501_s25  ;;  %v1371_v29 = vmul.f32 %v1363_v39, %v1348_v19 }
 0x518   :  { %v1408_v46 = vmul.f32 %v1394_v27, %v5739_v54  ;;  %v1409_v45 = vmul.f32 %v1398_v4, %v5739_v54  ;;  %v1459_v24 = vrot.slane %v4730_v40, %v3786_v63 }
 0x519   :  { %v1373_v21 = vadd.f32 %v1369_v49, %v1312_v1  ;;  %v1374_v26 = vadd.f32 %v1370_v13, %v1313_v50  ;;  %v1297_v9 = vpop.permute.xlu0 %1296  ;;  %v1475_v38 = vpop.permute.xlu1 %1474 }
 0x51a   :  { %v1302_v32 = vsel %vm375_vm4, %v4645_v22, %v1297_v9  ;;  %v1303_v57 = vsel %vm375_vm4, %v1297_v9, %v1299_v18  ;;  %v1341_v22 = vrot.slane %v4698_v10, %v3789_v3  ;;  %v1511_v18 = vrot.slane %v4767_v12, %v3775_v59 }
 0x51b   :  { %v1310_v35 = vmul.f32 %v1302_v32, %v1288_v53  ;;  %v1311_v30 = vmul.f32 %v1303_v57, %v1289_v5  ;;  %1583 = vrot.lane.b32.xlu0 %v1569_v15, %s3483_s19  ;;  %2304 = vrot.lane.b32.xlu1 %v4285_v56, %s3507_s18  ;;  %v1482_v56 = vsel %vm436_vm5, %v5740_v43, %v1475_v38  ;;  %v5744_v53 = vld [vmem:[#allocation23_spill] sm:$0xff]  ;;  %v3508_v43 = vmov 5  }
 0x51c   :  { %v1349_v41 = vmul.f32 %v1341_v22, %v4340_v0  ;;  %v1528_v8 = vmul.f32 %v1511_v18, %v5743_v34  ;;  %v1490_v58 = vmul.f32 %v1482_v56, %v1468_v37  ;;  %v1515_v18 = vrot.slane %v4767_v12, %v3778_v60 }
 0x51d   :  { %v1314_v1 = vadd.f32 %v1310_v35, %v1254_v20  ;;  %v1315_v50 = vadd.f32 %v1311_v30, %v1255_v33  ;;  %v1414_v6 = vpop.permute.xlu0 %1413  ;;  %v1418_v2 = vpop.permute.xlu1 %1417  ;;  %v4797_v33 = vld [vmem:[%s5593_s1] sm:$0xf]  ;;  %vm1885_vm4 = vcmask 637952  }
 0x51e   :  { %v1422_v36 = vsel %vm1421_vm15, %v5741_v44, %v1414_v6  ;;  %v1423_v62 = vsel %vm1421_vm15, %v1414_v6, %v4713_v28  ;;  %v1424_v10 = vsel %vm1421_vm15, %v4713_v28, %v1418_v2  ;;  %5742 = vst [vmem:[#allocation29_spill] sm:$0xff] %v4797_v33  ;;  %v1455_v28 = vrot.slane %v4730_v40, %v3778_v60 }
 0x51f   :  { %v1430_v31 = vmul.f32 %v1422_v36, %v1407_v14  ;;  %v1431_v42 = vmul.f32 %v1423_v62, %v1408_v46  ;;  %v1375_v51 = vadd.f32 %v1371_v29, %v1314_v1  ;;  %v1432_v20 = vmul.f32 %v1424_v10, %v1409_v45  ;;  %2241 = vrot.lane.b32.xlu0 %v4228_v52, %s3506_s26 }
 0x520   :  { %2330 = vperm.xlu1 %3429, %v4797_v33   ;;  %v1469_v9 = vmul.f32 %v1455_v28, %v5738_v11  ;;  %v1463_v6 = vrot.slane %v4730_v40, %v3789_v3  ;;  %v1519_v44 = vrot.slane %v4767_v12, %v3786_v63  ;;  %v1523_v36 = vrot.slane %v4767_v12, %v3789_v3 }
 0x521   :  { %v1434_v17 = vadd.f32 %v1430_v31, %v1373_v21  ;;  %v1435_v61 = vadd.f32 %v1431_v42, %v1374_v26  ;;  %v1436_v39 = vadd.f32 %v1432_v20, %v1375_v51  ;;  %v1359_v49 = vpop.permute.xlu0 %1358  ;;  %v1535_v13 = vpop.permute.xlu1 %1534  ;;  %v1402_v21 = vrot.slane %v4740_v47, %v3789_v3 }
 0x522   :  { %v1364_v7 = vsel %vm1360_vm14, %v4733_v16, %v1359_v49  ;;  %v1542_v0 = vsel %vm497_vm8, %v5744_v53, %v1535_v13  ;;  %v1470_v16 = vmul.f32 %v1459_v24, %v5738_v11  ;;  %v1530_v31 = vmul.f32 %v1519_v44, %v5743_v34 }
 0x523   :  { %v1372_v5 = vmul.f32 %v1364_v7, %v1349_v41  ;;  %v1550_v48 = vmul.f32 %v1542_v0, %v1528_v8  ;;  %2188 = vrot.lane.b32.xlu0 %v4278_v23, %s3501_s25  ;;  %v1494_v27 = vadd.f32 %v1490_v58, %v1434_v17  ;;  %v1410_v14 = vmul.f32 %v1402_v21, %v5739_v54 }
 0x524   :  { %2247 = vrot.lane.b32.xlu1 %v4296_v25, %s3506_s26  ;;  %v1531_v42 = vmul.f32 %v1523_v36, %v5743_v34  ;;  %vm2963_vm14 = vcmask 261120  }
 0x525   :  { %v1376_v26 = vadd.f32 %v1372_v5, %v1315_v50  ;;  %v1477_v15 = vpop.permute.xlu0 %1476  ;;  %v1479_v4 = vpop.permute.xlu1 %1478  ;;  %v4818_v19 = vadd.f32 %v1550_v48, %v1494_v27  ;;  %3430 = vset.pattern.permute.xlu1 %v3508_v43 }
 0x526   :  { %v1483_v32 = vsel %vm436_vm5, %v1475_v38, %v1477_v15  ;;  %v1484_v57 = vsel %vm436_vm5, %v1477_v15, %v1479_v4 }
 0x527   :  { %5745 = vst [vmem:[#allocation3_spill] sm:$0xff] %v4818_v19  ;;  %v1491_v35 = vmul.f32 %v1483_v32, %v1469_v9  ;;  %v1492_v30 = vmul.f32 %v1484_v57, %v1470_v16  ;;  %2306 = vrot.lane.b32.xlu0 %v4267_v55, %s3507_s18  ;;  %v1529_v55 = vmul.f32 %v1515_v18, %v5743_v34 }
 0x528   :  { %2308 = vrot.lane.b32.xlu1 %v4296_v25, %s3507_s18 }
 0x529   :  { %v1495_v47 = vadd.f32 %v1491_v35, %v1435_v61  ;;  %v1496_v37 = vadd.f32 %v1492_v30, %v1436_v39  ;;  %v1420_v46 = vpop.permute.xlu0 %1419  ;;  %v1541_v22 = vpop.permute.xlu1 %1540 }
 0x52a   :  { %v1425_v38 = vsel %vm1421_vm15, %v1418_v2, %v1420_v46  ;;  %v1471_v2 = vmul.f32 %v1463_v6, %v5738_v11 }
 0x52b   :  { %v1433_v29 = vmul.f32 %v1425_v38, %v1410_v14  ;;  %2302 = vrot.lane.b32.xlu0 %v4228_v52, %s3507_s18  ;;  %v3338_v38 = vld [vmem:[%s5597_s5 + $0x38] sm:$0xf] }
 0x52c   :  { %2339 = vperm.xlu1 %3430, %v4797_v33   ;;  %v1675_v43 = vrot.slane %v3338_v38, %v3778_v60 }
 0x52d   :  { %v1437_v1 = vadd.f32 %v1433_v29, %v1376_v26  ;;  %v1537_v50 = vpop.permute.xlu0 %1536  ;;  %v1636_v25 = vpop.permute.xlu1 %1635  ;;  %v3336_v29 = vld [vmem:[%s5597_s5 + $0x34] sm:$0xf] }
 0x52e   :  { %v1543_v54 = vsel %vm497_vm8, %v1535_v13, %v1537_v50  ;;  %v1610_v6 = vrot.slane %v3336_v29, %v3775_v59 }
 0x52f   :  { %v1551_v45 = vmul.f32 %v1543_v54, %v1529_v55  ;;  %2249 = vrot.lane.b32.xlu0 %v4278_v23, %s3506_s26  ;;  %v1614_v54 = vrot.slane %v3336_v29, %v3778_v60 }
 0x531   :  { %v1481_v56 = vpop.permute.xlu0 %1480  ;;  %v4839_v52 = vpop.permute.xlu1 %1575  ;;  %v4845_v40 = vadd.f32 %v1551_v45, %v1495_v47  ;;  %v1618_v45 = vrot.slane %v3336_v29, %v3786_v63 }
 0x532   :  { %5746 = vst [vmem:[#allocation5_spill] sm:$0xff] %v4839_v52  ;;  %v1485_v62 = vsel %vm436_vm5, %v1479_v4, %v1481_v56  ;;  %vm1946_vm5 = vcmask 629760  }
 0x533   :  { %5747 = vst [vmem:[#allocation22_spill] sm:$0xff] %v4845_v40  ;;  %v1493_v10 = vmul.f32 %v1485_v62, %v1471_v2  ;;  %2310 = vrot.lane.b32.xlu0 %v4278_v23, %s3507_s18  ;;  %v3344_v2 = vld [vmem:[%s5597_s5 + $0x44] sm:$0xf]  ;;  %v1622_v62 = vrot.slane %v3336_v29, %v3789_v3 }
 0x535   :  { %v1497_v11 = vadd.f32 %v1493_v10, %v1437_v1  ;;  %v1539_v51 = vpop.permute.xlu0 %1538  ;;  %v4853_v20 = vpop.permute.xlu1 %1694  ;;  %v1679_v10 = vrot.slane %v3338_v38, %v3786_v63 }
 0x536   :  { %v1544_v12 = vsel %vm497_vm8, %v1537_v50, %v1539_v51  ;;  %v1545_v41 = vsel %vm497_vm8, %v1539_v51, %v1541_v22  ;;  %v1671_v50 = vrot.slane %v3338_v38, %v3775_v59  ;;  %v5759_v51 = vld [vmem:[#allocation13_spill] sm:$0xff]  ;;  %vm2068_vm8 = vcmask 523264  }
 0x537   :  { %v1552_v8 = vmul.f32 %v1544_v12, %v1530_v31  ;;  %v1553_v28 = vmul.f32 %v1545_v41, %v1531_v42  ;;  %v4953_v12 = vmul.f32 %v1610_v6, %v5759_v51  ;;  %v1683_v41 = vrot.slane %v3338_v38, %v3789_v3  ;;  %v3348_v38 = vld [vmem:[%s5597_s5 + $0x4c] sm:$0xf] }
 0x538   :  { %v5762_v6 = vld [vmem:[#allocation15_spill] sm:$0xff] }
 0x539   :  { %v4857_v24 = vpop.permute.xlu0 %1633  ;;  %v1638_v58 = vpop.permute.xlu1 %1637  ;;  %v4859_v17 = vadd.f32 %v1552_v8, %v1496_v37  ;;  %v4861_v23 = vadd.f32 %v1553_v28, %v1497_v11  ;;  %v5758_v11 = vld [vmem:[#allocation8_spill] sm:$0xff]  ;;  %v1854_v28 = vrot.slane %v3344_v2, %v3775_v59 }
 0x53a   :  { %v4865_v34 = vsel %vm1641_vm0, %v4857_v24, %v1636_v25  ;;  %v4868_v61 = vsel %vm1641_vm0, %v1636_v25, %v1638_v58  ;;  %v3340_v25 = vld [vmem:[%s5597_s5 + $0x3c] sm:$0xf]  ;;  %v4949_v31 = vmul.f32 %v1671_v50, %v5758_v11 }
 0x53b   :  { %5748 = vst [vmem:[#allocation4_spill] sm:$0xff] %v4861_v23  ;;  %v1732_v36 = vrot.slane %v3340_v25, %v3775_v59  ;;  %v1736_v42 = vrot.slane %v3340_v25, %v3778_v60  ;;  %v1740_v8 = vrot.slane %v3340_v25, %v3786_v63 }
 0x53d   :  { %v1697_v39 = vpop.permute.xlu0 %1696  ;;  %v4870_v49 = vpop.permute.xlu1 %1755  ;;  %v4979_v33 = vmul.f32 %v1732_v36, %v5762_v6  ;;  %v3350_v36 = vld [vmem:[%s5597_s5 + $0x50] sm:$0xf] }
 0x53e   :  { %v4874_v13 = vsel %vm1702_vm1, %v4853_v20, %v1697_v39 }
 0x541   :  { %v1640_v7 = vpop.permute.xlu0 %1639  ;;  %v1699_v53 = vpop.permute.xlu1 %1698 }
 0x542   :  { %v4877_v0 = vsel %vm1641_vm0, %v1638_v58, %v1640_v7  ;;  %v4880_v5 = vsel %vm1702_vm1, %v1697_v39, %v1699_v53  ;;  %v3346_v58 = vld [vmem:[%s5597_s5 + $0x48] sm:$0xf]  ;;  %v4962_v39 = vmul.f32 %v1614_v54, %v5759_v51  ;;  %v4965_v7 = vmul.f32 %v1618_v45, %v5759_v51 }
 0x543   :  { %v4982_v54 = vmul.f32 %v1622_v62, %v5759_v51  ;;  %v4985_v45 = vmul.f32 %v1679_v10, %v5758_v11  ;;  %v4998_v62 = vmul.f32 %v1683_v41, %v5758_v11  ;;  %v5001_v10 = vmul.f32 %v1740_v8, %v5762_v6  ;;  %v5763_v51 = vld [vmem:[#allocation9_spill] sm:$0xff] }
 0x544   :  { %v5004_v23 = vmul.f32 %v1854_v28, %v5763_v51 }
 0x545   :  { %v4882_v48 = vpop.permute.xlu0 %1757  ;;  %v4884_v27 = vpop.permute.xlu1 %1816 }
 0x546   :  { %v4889_v21 = vsel %vm1763_vm2, %v4870_v49, %v4882_v48 }
 0x549   :  { %v1701_v26 = vpop.permute.xlu0 %1700  ;;  %v4891_v9 = vpop.permute.xlu1 %1759 }
 0x54a   :  { %v4894_v15 = vsel %vm1702_vm1, %v1699_v53, %v1701_v26  ;;  %v4968_v53 = vmul.f32 %v1675_v43, %v5758_v11  ;;  %v1744_v26 = vrot.slane %v3340_v25, %v3789_v3  ;;  %v1858_v43 = vrot.slane %v3344_v2, %v3778_v60  ;;  %v3352_v11 = vld [vmem:[%s5597_s5 + $0x54] sm:$0xf] }
 0x54b   :  { %v4989_v25 = vmul.f32 %v1736_v42, %v5762_v6  ;;  %v1976_v42 = vrot.slane %v3348_v38, %v3775_v59 }
 0x54c   :  { %v5021_v28 = vmul.f32 %v1858_v43, %v5763_v51  ;;  %v3354_v43 = vld [vmem:[%s5597_s5 + $0x58] sm:$0xf] }
 0x54d   :  { %v4896_v16 = vpop.permute.xlu0 %1818  ;;  %v4898_v4 = vpop.permute.xlu1 %1877 }
 0x551   :  { %v4900_v32 = vpop.permute.xlu0 %1761  ;;  %v4902_v57 = vpop.permute.xlu1 %1820 }
 0x555   :  { %v4904_v35 = vpop.permute.xlu0 %1879  ;;  %v4906_v30 = vpop.permute.xlu1 %1938 }
 0x559   :  { %v4908_v47 = vpop.permute.xlu0 %1822  ;;  %v4910_v37 = vpop.permute.xlu1 %1881 }
 0x55a   :  { %5749 = vst [vmem:[#allocation2_spill] sm:$0xff] %v4908_v47 }
 0x55d   :  { %v4912_v14 = vpop.permute.xlu0 %1940  ;;  %v4914_v46 = vpop.permute.xlu1 %1999 }
 0x55e   :  { %5750 = vst [vmem:[#allocation23_spill] sm:$0xff] %v4912_v14  ;;  %5751 = vst [vmem:[#allocation35_spill] sm:$0xff] %v4914_v46 }
 0x561   :  { %v4916_v22 = vpop.permute.xlu0 %1883  ;;  %v4918_v18 = vpop.permute.xlu1 %1942 }
 0x562   :  { %5752 = vst [vmem:[#allocation36_spill] sm:$0xff] %v4916_v22  ;;  %5753 = vst [vmem:[#allocation37_spill] sm:$0xff] %v4918_v18  ;;  %v1980_v18 = vrot.slane %v3348_v38, %v3778_v60  ;;  %v5766_v22 = vld [vmem:[#allocation18_spill] sm:$0xff] }
 0x565   :  { %v4926_v1 = vpop.permute.xlu0 %2001  ;;  %v4928_v55 = vpop.permute.xlu1 %2060 }
 0x566   :  { %5754 = vst [vmem:[#allocation38_spill] sm:$0xff] %v4926_v1  ;;  %5755 = vst [vmem:[#allocation39_spill] sm:$0xff] %v4928_v55  ;;  %v1866_v55 = vrot.slane %v3344_v2, %v3789_v3  ;;  %v1923_v1 = vrot.slane %v3346_v58, %v3786_v63 }
 0x569   :  { %v4941_v56 = vpop.permute.xlu0 %1944  ;;  %v4943_v44 = vpop.permute.xlu1 %2003 }
 0x56a   :  { %5756 = vst [vmem:[#allocation40_spill] sm:$0xff] %v4941_v56  ;;  %5757 = vst [vmem:[#allocation41_spill] sm:$0xff] %v4943_v44  ;;  %v1915_v44 = vrot.slane %v3346_v58, %v3775_v59  ;;  %v5008_v56 = vmul.f32 %v1744_v26, %v5762_v6  ;;  %v2037_v26 = vrot.slane %v3350_v36, %v3775_v59 }
 0x56b   :  { %v1927_v6 = vrot.slane %v3346_v58, %v3789_v3 }
 0x56c   :  { %v5027_v46 = vmul.f32 %v1915_v44, %v5766_v22  ;;  %v1988_v44 = vrot.slane %v3348_v38, %v3789_v3 }
 0x56d   :  { %v4974_v29 = vpop.permute.xlu0 %2062  ;;  %v4976_v50 = vpop.permute.xlu1 %2121 }
 0x56e   :  { %5760 = vst [vmem:[#allocation8_spill] sm:$0xff] %v4974_v29  ;;  %5761 = vst [vmem:[#allocation13_spill] sm:$0xff] %v4976_v50  ;;  %v1862_v29 = vrot.slane %v3344_v2, %v3786_v63  ;;  %v1919_v50 = vrot.slane %v3346_v58, %v3778_v60  ;;  %v1984_v2 = vrot.slane %v3348_v38, %v3786_v63 }
 0x56f   :  { %5767 = vst [vmem:[#allocation18_spill] sm:$0xff] %v5027_v46  ;;  %v2098_v58 = vrot.slane %v3352_v11, %v3775_v59  ;;  %v2045_v46 = vrot.slane %v3350_v36, %v3786_v63  ;;  %v5063_v38 = vmul.f32 %v1927_v6, %v5766_v22  ;;  %v5083_v6 = vld [vmem:[%s5597_s5 + $0x60] sm:$0xf] }
 0x570   :  { %v5030_v14 = vmul.f32 %v1862_v29, %v5763_v51  ;;  %v5033_v40 = vmul.f32 %v1919_v50, %v5766_v22  ;;  %v5046_v29 = vmul.f32 %v1866_v55, %v5763_v51  ;;  %v5049_v50 = vmul.f32 %v1923_v1, %v5766_v22 }
 0x571   :  { %v5016_v41 = vpop.permute.xlu0 %2005  ;;  %v5018_v8 = vpop.permute.xlu1 %2064  ;;  %5778 = vst [vmem:[#allocation48_spill] sm:$0xff] %v5063_v38  ;;  %v2159_v1 = vrot.slane %v3354_v43, %v3775_v59  ;;  %v2106_v22 = vrot.slane %v3352_v11, %v3786_v63 }
 0x572   :  { %5764 = vst [vmem:[#allocation15_spill] sm:$0xff] %v5016_v41  ;;  %5765 = vst [vmem:[#allocation9_spill] sm:$0xff] %v5018_v8  ;;  %v2041_v8 = vrot.slane %v3350_v36, %v3778_v60  ;;  %v5770_v41 = vld [vmem:[#allocation17_spill] sm:$0xff] }
 0x573   :  { %5768 = vst [vmem:[#allocation42_spill] sm:$0xff] %v5030_v14  ;;  %5769 = vst [vmem:[#allocation43_spill] sm:$0xff] %v5033_v40  ;;  %v5040_v19 = vmul.f32 %v1976_v42, %v5770_v41  ;;  %v5052_v40 = vmul.f32 %v1980_v18, %v5770_v41  ;;  %v2102_v14 = vrot.slane %v3352_v11, %v3778_v60  ;;  %v5072_v18 = vld [vmem:[%s5597_s5 + $0x5c] sm:$0xf] }
 0x574   :  { %5772 = vst [vmem:[#allocation44_spill] sm:$0xff] %v5049_v50  ;;  %v5066_v55 = vmul.f32 %v1984_v2, %v5770_v41  ;;  %5780 = vst [vmem:[#allocation50_spill] sm:$0xff] %v5072_v18  ;;  %v5782_v2 = vld [vmem:[#allocation7_spill] sm:$0xff] }
 0x575   :  { %5771 = vst [vmem:[#allocation17_spill] sm:$0xff] %v5040_v19  ;;  %5773 = vst [vmem:[#allocation45_spill] sm:$0xff] %v5052_v40  ;;  %v5055_v52 = vpop.permute.xlu0 %2123  ;;  %v5057_v42 = vpop.permute.xlu1 %2182  ;;  %v5776_v19 = vld [vmem:[#allocation20_spill] sm:$0xff]  ;;  %v5099_v38 = vmul.f32 %v2102_v14, %v5782_v2  ;;  %v2285_v14 = vrot.slane %v5083_v6, %v3778_v60 }
 0x576   :  { %5774 = vst [vmem:[#allocation46_spill] sm:$0xff] %v5055_v52  ;;  %5775 = vst [vmem:[#allocation47_spill] sm:$0xff] %v5057_v42  ;;  %v5060_v47 = vmul.f32 %v2037_v26, %v5776_v19  ;;  %v5075_v51 = vmul.f32 %v2041_v8, %v5776_v19  ;;  %v2049_v42 = vrot.slane %v3350_v36, %v3789_v3 }
 0x577   :  { %5779 = vst [vmem:[#allocation49_spill] sm:$0xff] %v5066_v55  ;;  %v2163_v26 = vrot.slane %v3354_v43, %v3778_v60  ;;  %v5086_v52 = vmul.f32 %v2098_v58, %v5782_v2  ;;  %v5089_v55 = vmul.f32 %v1988_v44, %v5770_v41  ;;  %v5092_v8 = vmul.f32 %v2045_v46, %v5776_v19 }
 0x578   :  { %5777 = vst [vmem:[#allocation20_spill] sm:$0xff] %v5060_v47  ;;  %5781 = vst [vmem:[#allocation51_spill] sm:$0xff] %v5075_v51  ;;  %v2110_v36 = vrot.slane %v3352_v11, %v3789_v3  ;;  %v3342_v51 = vld [vmem:[%s5597_s5 + $0x40] sm:$0xf]  ;;  %v2224_v41 = vrot.slane %v5072_v18, %v3778_v60  ;;  %v2167_v58 = vrot.slane %v3354_v43, %v3786_v63  ;;  %v5789_v11 = vld [vmem:[#allocation19_spill] sm:$0xff] }
 0x579   :  { %5783 = vst [vmem:[#allocation7_spill] sm:$0xff] %v5086_v52  ;;  %5784 = vst [vmem:[#allocation52_spill] sm:$0xff] %v5089_v55  ;;  %v5101_v47 = vpop.permute.xlu0 %2066  ;;  %v5103_v40 = vpop.permute.xlu1 %2127  ;;  %v2220_v46 = vrot.slane %v5072_v18, %v3775_v59  ;;  %v5111_v44 = vmul.f32 %v2159_v1, %v5789_v11  ;;  %v5122_v55 = vmul.f32 %v2163_v26, %v5789_v11 }
 0x57a   :  { %5785 = vst [vmem:[#allocation53_spill] sm:$0xff] %v5092_v8  ;;  %5786 = vst [vmem:[#allocation54_spill] sm:$0xff] %v5099_v38  ;;  %v2171_v8 = vrot.slane %v3354_v43, %v3789_v3  ;;  %v2281_v38 = vrot.slane %v5083_v6, %v3775_v59  ;;  %v2228_v1 = vrot.slane %v5072_v18, %v3786_v63 }
 0x57b   :  { %5787 = vst [vmem:[#allocation55_spill] sm:$0xff] %v5101_v47  ;;  %5788 = vst [vmem:[#allocation56_spill] sm:$0xff] %v5103_v40  ;;  %v5119_v40 = vmul.f32 %v2049_v42, %v5776_v19  ;;  %v5125_v47 = vmul.f32 %v2106_v22, %v5782_v2  ;;  %v1793_v43 = vrot.slane %v3342_v51, %v3775_v59 }
 0x57c   :  { %5790 = vst [vmem:[#allocation19_spill] sm:$0xff] %v5111_v44  ;;  %5792 = vst [vmem:[#allocation58_spill] sm:$0xff] %v5122_v55  ;;  %v1797_v44 = vrot.slane %v3342_v51, %v3778_v60  ;;  %v1801_v52 = vrot.slane %v3342_v51, %v3786_v63  ;;  %v5133_v50 = vmul.f32 %v2110_v36, %v5782_v2  ;;  %v5794_v55 = vld [vmem:[#allocation10_spill] sm:$0xff] }
 0x57d   :  { %5791 = vst [vmem:[#allocation57_spill] sm:$0xff] %v5119_v40  ;;  %5793 = vst [vmem:[#allocation59_spill] sm:$0xff] %v5125_v47  ;;  %v1805_v19 = vrot.slane %v3342_v51, %v3789_v3  ;;  %v5136_v42 = vpop.permute.xlu0 %2184  ;;  %v1580_v26 = vpop.permute.xlu1 %1579  ;;  %v5139_v22 = vmul.f32 %v2224_v41, %v5794_v55  ;;  %v5142_v47 = vmul.f32 %v2167_v58, %v5789_v11  ;;  %v5796_v40 = vld [vmem:[#allocation21_spill] sm:$0xff] }
 0x57e   :  { %v5145_v59 = vmul.f32 %v2220_v46, %v5794_v55  ;;  %v5148_v60 = vmul.f32 %v2171_v8, %v5789_v11  ;;  %v5151_v2 = vmul.f32 %v2285_v14, %v5796_v40  ;;  %v5154_v51 = vmul.f32 %v2281_v38, %v5796_v40  ;;  %v5797_v41 = vld [vmem:[#allocation25_spill] sm:$0xff]  ;;  %v5798_v11 = vld [vmem:[#allocation24_spill] sm:$0xff] }
 0x57f   :  { %5795 = vst [vmem:[#allocation10_spill] sm:$0xff] %v5142_v47  ;;  %v1703_v58 = vsel %vm1702_vm1, %v5797_v41, %v4853_v20  ;;  %v5162_v47 = vmul.f32 %v2228_v1, %v5794_v55  ;;  %v1642_v38 = vsel %vm1641_vm0, %v5798_v11, %v4857_v24  ;;  %v5799_v14 = vld [vmem:[#allocation12_spill] sm:$0xff]  ;;  %v5800_v20 = vld [vmem:[#allocation26_spill] sm:$0xff] }
 0x580   :  { %v1810_v40 = vmul.f32 %v1793_v43, %v5799_v14  ;;  %v1811_v36 = vmul.f32 %v1797_v44, %v5799_v14  ;;  %v1812_v18 = vmul.f32 %v1801_v52, %v5799_v14  ;;  %v1764_v1 = vsel %vm1763_vm2, %v5800_v20, %v4870_v49 }
 0x581   :  { %v1813_v41 = vmul.f32 %v1805_v19, %v5799_v14  ;;  %v5178_v8 = vpop.permute.xlu0 %2125  ;;  %v1582_v46 = vpop.permute.xlu1 %1581  ;;  %v1711_v63 = vmul.f32 %v1703_v58, %v4949_v31  ;;  %v1650_v44 = vmul.f32 %v1642_v38, %v4953_v12  ;;  %v1651_v52 = vmul.f32 %v4865_v34, %v4962_v39  ;;  %v5801_v58 = vld [vmem:[#allocation27_spill] sm:$0xff] }
 0x582   :  { %v1587_v24 = vsel %vm558_vm6, %v1580_v26, %v1582_v46  ;;  %v1652_v49 = vmul.f32 %v4868_v61, %v4965_v7  ;;  %v1712_v19 = vmul.f32 %v4874_v13, %v4968_v53  ;;  %v1772_v31 = vmul.f32 %v1764_v1, %v4979_v33  ;;  %v5802_v61 = vld [vmem:[#allocation28_spill] sm:$0xff]  ;;  %v5806_v1 = vld [vmem:[#allocation42_spill] sm:$0xff] }
 0x583   :  { %v1595_v43 = vadd.f32 %v1587_v24, %v4859_v17  ;;  %v1825_v11 = vsel %vm1824_vm3, %v5801_v58, %v4884_v27  ;;  %v1766_v12 = vsel %vm1763_vm2, %v4882_v48, %v4891_v9  ;;  %v1713_v34 = vmul.f32 %v4880_v5, %v4985_v45  ;;  %v5808_v58 = vld [vmem:[#allocation22_spill] sm:$0xff] }
 0x584   :  { %v1826_v17 = vsel %vm1824_vm3, %v4884_v27, %v4896_v16  ;;  %v1886_v13 = vsel %vm1885_vm4, %v5802_v61, %v4898_v4  ;;  %v1653_v7 = vmul.f32 %v4877_v0, %v4982_v54  ;;  %v1773_v48 = vmul.f32 %v4889_v21, %v4989_v25  ;;  %v5812_v61 = vld [vmem:[#allocation32_spill] sm:$0xff] }
 0x585   :  { %v1656_v33 = vadd.f32 %v1652_v49, %v1595_v43  ;;  %v5205_v39 = vpop.permute.xlu0 %2243  ;;  %v1767_v5 = vsel %vm1763_vm2, %v4891_v9, %v4900_v32  ;;  %v1827_v27 = vsel %vm1824_vm3, %v4896_v16, %v4902_v57  ;;  %v1833_v53 = vmul.f32 %v1825_v11, %v1810_v40  ;;  %v5803_v32 = vld [vmem:[#allocation30_spill] sm:$0xff]  ;;  %v5239_v24 = vpop.permute.xlu1 %2245  ;;  %v5807_v49 = vld [vmem:[#allocation3_spill] sm:$0xff] }
 0x586   :  { %v1774_v45 = vmul.f32 %v1766_v12, %v5001_v10  ;;  %v1887_v38 = vsel %vm1885_vm4, %v4898_v4, %v4904_v35  ;;  %v1714_v0 = vmul.f32 %v4894_v15, %v4998_v62  ;;  %v1834_v21 = vmul.f32 %v1826_v17, %v1811_v36  ;;  %v5804_v15 = vld [vmem:[#allocation2_spill] sm:$0xff]  ;;  %v5805_v62 = vld [vmem:[#allocation5_spill] sm:$0xff]  ;;  %v5811_v17 = vld [vmem:[#allocation35_spill] sm:$0xff] }
 0x587   :  { %v1717_v14 = vadd.f32 %v1713_v34, %v1656_v33  ;;  %v1894_v54 = vmul.f32 %v1886_v13, %v5004_v23  ;;  %v1888_v9 = vsel %vm1885_vm4, %v4904_v35, %v4910_v37  ;;  %v1775_v40 = vmul.f32 %v1767_v5, %v5008_v56  ;;  %v5810_v34 = vld [vmem:[#allocation23_spill] sm:$0xff]  ;;  %v5813_v13 = vld [vmem:[#allocation36_spill] sm:$0xff]  ;;  %v5814_v5 = vld [vmem:[#allocation37_spill] sm:$0xff] }
 0x588   :  { %v1835_v16 = vmul.f32 %v1827_v27, %v1812_v18  ;;  %v1947_v25 = vsel %vm1946_vm5, %v5803_v32, %v4906_v30  ;;  %v1895_v20 = vmul.f32 %v1887_v38, %v5021_v28  ;;  %v1828_v23 = vsel %vm1824_vm3, %v4902_v57, %v5804_v15  ;;  %v5809_v28 = vld [vmem:[#allocation18_spill] sm:$0xff] }
 0x589   :  { %v1778_v4 = vadd.f32 %v1774_v45, %v1717_v14  ;;  %v1578_v10 = vpop.permute.xlu0 %1577  ;;  %v1896_v56 = vmul.f32 %v1888_v9, %v5806_v1  ;;  %v1955_v12 = vmul.f32 %v1947_v25, %v5809_v28  ;;  %v1948_v57 = vsel %vm1946_vm5, %v4906_v30, %v5810_v34  ;;  %v5815_v32 = vld [vmem:[#allocation38_spill] sm:$0xff]  ;;  %v5816_v25 = vld [vmem:[#allocation39_spill] sm:$0xff] }
 0x58a   :  { %v1585_v36 = vsel %vm558_vm6, %v5805_v62, %v1578_v10  ;;  %v1586_v35 = vsel %vm558_vm6, %v1578_v10, %v1580_v26  ;;  %v2008_v26 = vsel %vm2007_vm7, %v5812_v61, %v5811_v17  ;;  %v1889_v33 = vsel %vm1885_vm4, %v4910_v37, %v5813_v13  ;;  %v5818_v37 = vld [vmem:[#allocation40_spill] sm:$0xff]  ;;  %v5820_v1 = vld [vmem:[#allocation43_spill] sm:$0xff] }
 0x58b   :  { %v1839_v18 = vadd.f32 %v1835_v16, %v1778_v4  ;;  %v1593_v43 = vadd.f32 %v1585_v36, %v5807_v49  ;;  %v1594_v11 = vadd.f32 %v1586_v35, %v5808_v58  ;;  %v1949_v27 = vsel %vm1946_vm5, %v5810_v34, %v5814_v5  ;;  %v5817_v4 = vld [vmem:[#allocation33_spill] sm:$0xff]  ;;  %v5822_v49 = vld [vmem:[#allocation44_spill] sm:$0xff]  ;;  %v2187_v34 = vpop.permute.xlu1 %2186 }
 0x58c   :  { %v1836_v16 = vmul.f32 %v1828_v23, %v1813_v41  ;;  %v2009_v30 = vsel %vm2007_vm7, %v5811_v17, %v5815_v32  ;;  %v2069_v10 = vsel %vm2068_vm8, %v5817_v4, %v5816_v25  ;;  %v1950_v62 = vsel %vm1946_vm5, %v5814_v5, %v5818_v37  ;;  %v5821_v23 = vld [vmem:[#allocation17_spill] sm:$0xff]  ;;  %v5825_v13 = vld [vmem:[#allocation20_spill] sm:$0xff]  ;;  %v5831_v4 = vld [vmem:[#allocation15_spill] sm:$0xff] }
 0x58d   :  { %v1900_v45 = vadd.f32 %v1896_v56, %v1839_v18  ;;  %v1654_v38 = vadd.f32 %v1650_v44, %v1593_v43  ;;  %v1655_v14 = vadd.f32 %v1651_v52, %v1594_v11  ;;  %v1584_v9 = vpop.permute.xlu0 %1583  ;;  %v5819_v44 = vld [vmem:[#allocation4_spill] sm:$0xff]  ;;  %v1956_v41 = vmul.f32 %v1948_v57, %v5820_v1  ;;  %v5823_v58 = vld [vmem:[#allocation41_spill] sm:$0xff] }
 0x58e   :  { %v1588_v15 = vsel %vm558_vm6, %v1582_v46, %v1584_v9  ;;  %v2016_v56 = vmul.f32 %v2008_v26, %v5821_v23  ;;  %v1897_v18 = vmul.f32 %v1889_v33, %v5046_v29  ;;  %v1957_v43 = vmul.f32 %v1949_v27, %v5822_v49  ;;  %v5824_v17 = vld [vmem:[#allocation45_spill] sm:$0xff]  ;;  %v5826_v5 = vld [vmem:[#allocation48_spill] sm:$0xff]  ;;  %v5829_v27 = vld [vmem:[#allocation34_spill] sm:$0xff] }
 0x58f   :  { %v1715_v36 = vadd.f32 %v1711_v63, %v1654_v38  ;;  %v1716_v35 = vadd.f32 %v1712_v19, %v1655_v14  ;;  %v1596_v52 = vadd.f32 %v1588_v15, %v5819_v44  ;;  %v2010_v46 = vsel %vm2007_vm7, %v5815_v32, %v5823_v58  ;;  %v5827_v38 = vld [vmem:[#allocation8_spill] sm:$0xff]  ;;  %v5828_v33 = vld [vmem:[#allocation13_spill] sm:$0xff]  ;;  %v5836_v23 = vld [vmem:[#allocation47_spill] sm:$0xff] }
 0x590   :  { %v2017_v61 = vmul.f32 %v2009_v30, %v5824_v17  ;;  %v2077_v57 = vmul.f32 %v2069_v10, %v5825_v13  ;;  %v1958_v26 = vmul.f32 %v1950_v62, %v5826_v5  ;;  %v2070_v29 = vsel %vm2068_vm8, %v5816_v25, %v5827_v38  ;;  %v5832_v10 = vld [vmem:[#allocation9_spill] sm:$0xff]  ;;  %v5833_v25 = vld [vmem:[#allocation46_spill] sm:$0xff]  ;;  %v5837_v49 = vld [vmem:[#allocation31_spill] sm:$0xff] }
 0x591   :  { %v1776_v11 = vadd.f32 %v1772_v31, %v1715_v36  ;;  %v1777_v28 = vadd.f32 %v1773_v48, %v1716_v35  ;;  %v1657_v63 = vadd.f32 %v1653_v7, %v1596_v52  ;;  %v2242_v19 = vpop.permute.xlu0 %2241  ;;  %vm2312_vm6 = vcmask 490496   ;;  %v5830_v7 = vld [vmem:[#allocation49_spill] sm:$0xff]  ;;  %v5835_v52 = vld [vmem:[#allocation7_spill] sm:$0xff]  ;;  %v5841_v5 = vld [vmem:[#allocation54_spill] sm:$0xff] }
 0x592   :  { %v2130_v14 = vsel %vm2129_vm11, %v5829_v27, %v5828_v33  ;;  %v2018_v32 = vmul.f32 %v2010_v46, %v5830_v7  ;;  %v2011_v30 = vsel %vm2007_vm7, %v5823_v58, %v5831_v4  ;;  %v2071_v15 = vsel %vm2068_vm8, %v5827_v38, %v5832_v10  ;;  %v5838_v46 = vld [vmem:[#allocation55_spill] sm:$0xff]  ;;  %v5840_v17 = vld [vmem:[#allocation53_spill] sm:$0xff] }
 0x593   :  { %v1837_v31 = vadd.f32 %v1833_v53, %v1776_v11  ;;  %v1838_v48 = vadd.f32 %v1834_v21, %v1777_v28  ;;  %v1718_v9 = vadd.f32 %v1714_v0, %v1657_v63  ;;  %v1961_v37 = vadd.f32 %v1957_v43, %v1900_v45  ;;  %v5834_v0 = vld [vmem:[#allocation51_spill] sm:$0xff]  ;;  %v5839_v28 = vld [vmem:[#allocation52_spill] sm:$0xff] }
 0x594   :  { %v2131_v62 = vsel %vm2129_vm11, %v5828_v33, %v5833_v25  ;;  %v2078_v44 = vmul.f32 %v2070_v29, %v5834_v0  ;;  %v2138_v1 = vmul.f32 %v2130_v14, %v5835_v52  ;;  %v2191_v58 = vsel %vm2190_vm12, %v5837_v49, %v5836_v23 }
 0x595   :  { %v1898_v36 = vadd.f32 %v1894_v54, %v1837_v31  ;;  %v1899_v35 = vadd.f32 %v1895_v20, %v1838_v48  ;;  %v1779_v53 = vadd.f32 %v1775_v40, %v1718_v9  ;;  %v2189_v21 = vpop.permute.xlu0 %2188  ;;  %v2072_v45 = vsel %vm2068_vm8, %v5832_v10, %v5838_v46  ;;  %v2305_v40 = vpop.permute.xlu1 %2304  ;;  %v5842_v9 = vld [vmem:[#allocation19_spill] sm:$0xff] }
 0x596   :  { %v2192_v43 = vsel %vm2190_vm12, %v5836_v23, %v5136_v42  ;;  %v2019_v63 = vmul.f32 %v2011_v30, %v5839_v28  ;;  %v2079_v13 = vmul.f32 %v2071_v15, %v5840_v17  ;;  %v2139_v38 = vmul.f32 %v2131_v62, %v5841_v5  ;;  %v5845_v30 = vld [vmem:[#allocation56_spill] sm:$0xff]  ;;  %v5848_v28 = vld [vmem:[#allocation50_spill] sm:$0xff]  ;;  %v5850_v5 = vld [vmem:[#allocation21_spill] sm:$0xff] }
 0x597   :  { %v1960_v54 = vadd.f32 %v1956_v41, %v1899_v35  ;;  %v1840_v20 = vadd.f32 %v1836_v16, %v1779_v53  ;;  %v1959_v11 = vadd.f32 %v1955_v12, %v1898_v36  ;;  %v2022_v29 = vadd.f32 %v2018_v32, %v1961_v37  ;;  %v5843_v16 = vld [vmem:[#allocation57_spill] sm:$0xff]  ;;  %v5844_v12 = vld [vmem:[#allocation58_spill] sm:$0xff] }
 0x598   :  { %v2132_v33 = vsel %vm2129_vm11, %v5833_v25, %v5178_v8  ;;  %v2199_v41 = vmul.f32 %v2191_v58, %v5842_v9  ;;  %v2080_v7 = vmul.f32 %v2072_v45, %v5843_v16  ;;  %v2200_v4 = vmul.f32 %v2192_v43, %v5844_v12  ;;  %v5846_v25 = vld [vmem:[#allocation59_spill] sm:$0xff] }
 0x599   :  { %v1901_v27 = vadd.f32 %v1897_v18, %v1840_v20  ;;  %v2020_v14 = vadd.f32 %v2016_v56, %v1959_v11  ;;  %v2307_v31 = vpop.permute.xlu0 %2306  ;;  %v2021_v48 = vadd.f32 %v2017_v61, %v1960_v54  ;;  %v2133_v10 = vsel %vm2129_vm11, %v5178_v8, %v5845_v30  ;;  %v2337_v30 = vld [vmem:[%s5598_s7] sm:$0xf] }
 0x59a   :  { %v2253_v32 = vsel %vm2251_vm13, %v5205_v39, %v5239_v24  ;;  %v2140_v61 = vmul.f32 %v2132_v33, %v5846_v25  ;;  %v2083_v62 = vadd.f32 %v2079_v13, %v2022_v29  ;;  %v2252_v36 = vsel %vm2251_vm13, %v2242_v19, %v5205_v39 }
 0x59b   :  { %v2081_v15 = vadd.f32 %v2077_v57, %v2020_v14  ;;  %v1962_v37 = vadd.f32 %v1958_v26, %v1901_v27  ;;  %v2082_v18 = vadd.f32 %v2078_v44, %v2021_v48  ;;  %v2331_v56 = vpop.permute.xlu1 %2330  ;;  %v2194_v35 = vsel %vm2190_vm12, %v2187_v34, %v2189_v21 }
 0x59c   :  { %v2314_v8 = vsel %vm2312_vm6, %v2305_v40, %v2307_v31  ;;  %v2141_v49 = vmul.f32 %v2133_v10, %v5133_v50  ;;  %v2261_v57 = vmul.f32 %v2253_v32, %v5139_v22  ;;  %v2193_v26 = vsel %vm2190_vm12, %v5136_v42, %v2187_v34 }
 0x59d   :  { %v2142_v53 = vadd.f32 %v2138_v1, %v2081_v15  ;;  %v2023_v0 = vadd.f32 %v2019_v63, %v1962_v37  ;;  %v2143_v52 = vadd.f32 %v2139_v38, %v2082_v18  ;;  %v2303_v23 = vpop.permute.xlu0 %2302  ;;  %v2260_v39 = vmul.f32 %v2252_v36, %v5145_v59  ;;  %v5851_v38 = vld [vmem:[#allocation14_spill] sm:$0xff] }
 0x59e   :  { %v2313_v44 = vsel %vm2312_vm6, %v2303_v23, %v2305_v40  ;;  %v2144_v46 = vadd.f32 %v2140_v61, %v2083_v62  ;;  %v2202_v45 = vmul.f32 %v2194_v35, %v5148_v60  ;;  %v2322_v43 = vmul.f32 %v2314_v8, %v5151_v2  ;;  %v5847_v40 = vld [vmem:[#allocation10_spill] sm:$0xff] }
 0x59f   :  { %v2203_v58 = vadd.f32 %v2199_v41, %v2142_v53  ;;  %v2084_v19 = vadd.f32 %v2080_v7, %v2023_v0  ;;  %v2204_v21 = vadd.f32 %v2200_v4, %v2143_v52  ;;  %v2248_v1 = vpop.permute.xlu1 %2247  ;;  %v2321_v42 = vmul.f32 %v2313_v44, %v5154_v51  ;;  %v5855_v0 = vld [vmem:[#allocation6_spill] sm:$0xff]  ;;  %v5856_v44 = vld [vmem:[#allocation11_spill] sm:$0xff] }
 0x5a0   :  { %v2254_v50 = vsel %vm2251_vm13, %v5239_v24, %v2248_v1  ;;  %v2201_v11 = vmul.f32 %v2193_v26, %v5847_v40  ;;  %v5849_v63 = vrot.slane %v5848_v28, %v3789_v3  ;;  %v5852_v29 = vrot.slane %v5083_v6, %v5851_v38 }
 0x5a1   :  { %v2264_v22 = vadd.f32 %v2260_v39, %v2203_v58  ;;  %v2145_v54 = vadd.f32 %v2141_v49, %v2084_v19  ;;  %v2265_v20 = vadd.f32 %v2261_v57, %v2204_v21  ;;  %v2250_v34 = vpop.permute.xlu0 %2249  ;;  %v2262_v59 = vmul.f32 %v2254_v50, %v5162_v47 }
 0x5a2   :  { %v2240_v60 = vmul.f32 %v5849_v63, %v5794_v55  ;;  %v2255_v2 = vsel %vm2251_vm13, %v2248_v1, %v2250_v34  ;;  %v2300_v51 = vmul.f32 %v5852_v29, %v5850_v5  ;;  %v2205_v27 = vadd.f32 %v2201_v11, %v2144_v46 }
 0x5a3   :  { %v2206_v17 = vadd.f32 %v2202_v45, %v2145_v54  ;;  %v2326_v13 = vadd.f32 %v2322_v43, %v2265_v20  ;;  %v2325_v24 = vadd.f32 %v2321_v42, %v2264_v22  ;;  %v2309_v33 = vpop.permute.xlu1 %2308  ;;  %v5853_v55 = vrot.slane %v5083_v6, %v3789_v3  ;;  %v5857_v54 = vld [vmem:[#allocation16_spill] sm:$0xff] }
 0x5a4   :  { %v2263_v14 = vmul.f32 %v2255_v2, %v2240_v60  ;;  %v2315_v47 = vsel %vm2312_vm6, %v2307_v31, %v2309_v33  ;;  %v2266_v12 = vadd.f32 %v2262_v59, %v2205_v27  ;;  %v5854_v3 = vmov 0.0  }
 0x5a5   :  { %v2334_v48 = vadd.f32 %v2331_v56, %v2326_v13  ;;  %v2333_v9 = vadd.f32 %v2331_v56, %v2325_v24  ;;  %v2323_v41 = vmul.f32 %v2315_v47, %v2300_v51  ;;  %v2301_v16 = vmul.f32 %v5853_v55, %v5850_v5  ;;  %v2311_v7 = vpop.permute.xlu0 %2310  ;;  %v5858_v51 = vld [vmem:[#allocation29_spill] sm:$0xff]  ;;  %v2586_v55 = vld [vmem:[%s5599_s9 + $0x10] sm:$0xff] }
 0x5a6   :  { %v2316_v4 = vsel %vm2312_vm6, %v2309_v33, %v2311_v7  ;;  %v2267_v10 = vadd.f32 %v2263_v14, %v2206_v17  ;;  %v3509_v38 = vmov 6   ;;  %v3510_v29 = vmov 7   ;;  %v2584_v7 = vld [vmem:[%s5599_s9] sm:$0xff] }
 0x5a7   :  { %v2324_v32 = vmul.f32 %v2316_v4, %v2301_v16  ;;  %3359 = vmatprep.subr.msk.mxu0 %vm600_vm9, %v2334_v48  ;;  %v2327_v31 = vadd.f32 %v2323_v41, %v2266_v12  ;;  %v2340_v18 = vpop.permute.xlu1 %2339  ;;  %3431 = vset.pattern.permute.xlu0 %v3509_v38  ;;  %v5859_v33 = vmov 0   ;;  %v2587_v41 = vld [vmem:[%s5599_s9 + $0x18] sm:$0xff]  ;;  %v2585_v16 = vld [vmem:[%s5599_s9 + $0x8] sm:$0xff] }
 0x5a8   :  { %3360 = vmatpush1.msk.msra.mxu0 %vm600_vm9, %v2333_v9  ;;  %3432 = vset.pattern.permute.xlu1 %v3510_v29 }
 0x5a9   :  { %v2328_v15 = vadd.f32 %v2324_v32, %v2267_v10  ;;  %3361 = vmatmul.mubr.msk.f32.vlgmr.msra.gmra.mxu0 %vm679_vm10, %v2337_v30  ;;  %v2335_v37 = vadd.f32 %v2331_v56, %v2327_v31 }
 0x5aa   :  { %2700 = vmatprep.mubr.f32.mxu0 %v5854_v3 }
 0x5ab   :  { %v2336_v6 = vadd.f32 %v2331_v56, %v2328_v15 }
 0x5ad   :  { %3362 = vmatprep.subr.msk.mxu1 %vm600_vm9, %v2336_v6 }
 0x5ae   :  { %3363 = vmatpush1.msk.msra.mxu1 %vm600_vm9, %v2335_v37 }
 0x5af   :  { %3364 = vmatmul.mubr.msk.f32.vlgmr.msra.gmra.mxu1 %vm679_vm10, %v2337_v30 }
 0x5b0   :  { %2789 = vmatprep.mubr.f32.mxu1 %v5854_v3 }
 0x669   :  { %v2423_v25 = vpop.f32.mrf.mxu0 }
 0x66a   :  { %v2424_v61 = vadd.f32 %v2423_v25, %v2340_v18  ;;  %v2588_v25 = vld [vmem:[%s5600_s8] sm:$0xff] }
 0x66b   :  { %v2425_v62 = vpop.f32.mrf.mxu0 }
 0x66c   :  { %v2426_v36 = vadd.f32 %v2425_v62, %v2340_v18  ;;  %v2590_v62 = vld [vmem:[%s5600_s8 + $0x10] sm:$0xff] }
 0x66e   :  { %v2503_v35 = vcombine.low %v2424_v61, %v2426_v36  ;;  %v2589_v61 = vld [vmem:[%s5600_s8 + $0x8] sm:$0xff]  ;;  %v2591_v36 = vld [vmem:[%s5600_s8 + $0x18] sm:$0xff] }
 0x66f   :  { %v2494_v53 = vpop.f32.mrf.mxu1 }
 0x670   :  { %v5364_v52 = vadd.f32 %v2503_v35, %v5855_v0  ;;  %v2495_v56 = vadd.f32 %v2494_v53, %v2340_v18  ;;  %v3511_v35 = vmov 8  }
 0x671   :  { %v2496_v8 = vpop.f32.mrf.mxu1 }
 0x672   :  { %v2497_v23 = vadd.f32 %v2496_v8, %v2340_v18  ;;  %v2511_v49 = vcombine.high %v5364_v52, %v5364_v52  ;;  %v2515_v39 = vsel %vm600_vm9, %v5364_v52, 0.0 }
 0x674   :  { %v2504_v57 = vcombine.low %v2495_v56, %v2497_v23  ;;  %v2516_v26 = vsel %vm600_vm9, %v2511_v49, 0.0 }
 0x675   :  { %v2517_v19 = vadd.f32 %v2516_v26, %v2515_v39 }
 0x676   :  { %v5370_v58 = vadd.f32 %v2504_v57, %v5856_v44 }
 0x678   :  { %v2512_v21 = vcombine.high %v5370_v58, %v5370_v58  ;;  %v2518_v1 = vsel %vm600_vm9, %v5370_v58, 0.0 }
 0x679   :  { %v2519_v46 = vadd.f32 %v2518_v1, %v2517_v19 }
 0x67a   :  { %v2520_v45 = vsel %vm600_vm9, %v2512_v21, 0.0 }
 0x67b   :  { %v2521_v43 = vadd.f32 %v2520_v45, %v2519_v46 }
 0x67d   :  { %2522 = vadd.xlane.f32.xlu0 %v2521_v43 }
 0x706   :  { %v2523_v50 = vpop.xlane.xlu0 %2522 }
 0x707   :  { %v2524_v22 = vmul.f32 0.001953125, %v2523_v50 }
 0x709   :  { %v2532_v20 = vrot.slane %v2524_v22, %v5857_v54 }
 0x70b   :  { %v2534_v42 = vsub.f32 %v5364_v52, %v2532_v20  ;;  %v2535_v34 = vsub.f32 %v5370_v58, %v2532_v20 }
 0x70d   :  { %v2536_v40 = vmul.f32 %v2534_v42, %v2534_v42  ;;  %v2537_v11 = vmul.f32 %v2535_v34, %v2535_v34 }
 0x70f   :  { %v2540_v59 = vcombine.high %v2536_v40, %v2536_v40  ;;  %v2544_v28 = vsel %vm600_vm9, %v2536_v40, 0.0  ;;  %v2541_v63 = vcombine.high %v2537_v11, %v2537_v11  ;;  %v2547_v17 = vsel %vm600_vm9, %v2537_v11, 0.0 }
 0x711   :  { %v2545_v60 = vsel %vm600_vm9, %v2540_v59, 0.0  ;;  %v2549_v24 = vsel %vm600_vm9, %v2541_v63, 0.0 }
 0x712   :  { %v2546_v2 = vadd.f32 %v2545_v60, %v2544_v28 }
 0x714   :  { %v2548_v13 = vadd.f32 %v2547_v17, %v2546_v2 }
 0x716   :  { %v2550_v5 = vadd.f32 %v2549_v24, %v2548_v13 }
 0x718   :  { %2551 = vadd.xlane.f32.xlu1 %v2550_v5 }
 0x729   :  { %2572 = vperm.xlu1 %3432, %v5858_v51  }
 0x72d   :  { %3433 = vset.pattern.permute.xlu1 %v5859_v33 }
 0x72e   :  { %2609 = vperm.xlu1 %3433, %v2587_v41  }
 0x732   :  { %2604 = vperm.xlu1 %3433, %v2586_v55  }
 0x736   :  { %2599 = vperm.xlu1 %3433, %v2585_v16  }
 0x73a   :  { %2594 = vperm.xlu1 %3433, %v2584_v7  }
 0x73e   :  { %3434 = vset.pattern.permute.xlu1 %v3511_v35 }
 0x73f   :  { %2960 = vperm.xlu1 %3434, %v5858_v51  }
 0x7a1   :  { %v2552_v27 = vpop.xlane.xlu1 %2551 }
 0x7a2   :  { %v2553_v14 = vmul.f32 0.001953125, %v2552_v27 }
 0x7a4   :  { %v2554_v47 = vadd.f32 1e-05, %v2553_v14 }
 0x7a5   :  { %v2573_v12 = vpop.permute.xlu1 %2572 }
 0x7a6   :  { %3440 = vrsqrt.f32 %v2554_v47  ;;  %v2580_v10 = vrot.slane %v2573_v12, %v5857_v54 }
 0x7a9   :  { %v5437_v53 = vpop.permute.xlu1 %2609 }
 0x7ad   :  { %v2605_v0 = vpop.permute.xlu1 %2604 }
 0x7b1   :  { %v2600_v8 = vpop.permute.xlu1 %2599 }
 0x7b3   :  { %v3441_v48 = vpop.eup %3440 }
 0x7b4   :  { %v2556_v9 = vmul.f32 %v5858_v51, %v3441_v48 }
 0x7b5   :  { %v2595_v49 = vpop.permute.xlu1 %2594 }
 0x7b6   :  { %2559 = vperm.xlu0 %3431, %v2556_v9  }
 0x7ba   :  { %3435 = vset.pattern.permute.xlu0 %v5859_v33 }
 0x831   :  { %v2560_v4 = vpop.permute.xlu0 %2559 }
 0x832   :  { %v2567_v30 = vrot.slane %v2560_v4, %v5857_v54 }
 0x834   :  { %v2569_v32 = vmul.f32 %v2567_v30, %v2534_v42  ;;  %v2570_v31 = vmul.f32 %v2567_v30, %v2535_v34 }
 0x836   :  { %v2582_v15 = vadd.f32 %v2580_v10, %v2569_v32  ;;  %v2583_v6 = vadd.f32 %v2580_v10, %v2570_v31 }
 0x838   :  { %v2614_v37 = vcombine.high %v2582_v15, %v2582_v15  ;;  %v2615_v18 = vcombine.high %v2583_v6, %v2583_v6 }
 0x83a   :  { %3365 = vmatprep.subr.msk.mxu0 %vm600_vm9, %v2614_v37  ;;  %3371 = vmatprep.subr.msk.mxu1 %vm600_vm9, %v2615_v18 }
 0x83b   :  { %3366 = vmatpush1.msk.msra.mxu0 %vm600_vm9, %v2582_v15  ;;  %3372 = vmatpush1.msk.msra.mxu1 %vm600_vm9, %v2583_v6 }
 0x83c   :  { %3367 = vmatmul.mubr.msk.f32.vlgmr.msra.gmra.mxu0 %vm679_vm10, %v2588_v25  ;;  %3373 = vmatmul.mubr.msk.f32.vlgmr.msra.gmra.mxu1 %vm679_vm10, %v2588_v25 }
 0x83d   :  { %2706 = vmatprep.mubr.f32.mxu0 %v5854_v3  ;;  %2795 = vmatprep.mubr.f32.mxu1 %v5854_v3 }
 0x840   :  { %3368 = vmatmul.mubr.msk.f32.gmra.mxu0 %vm679_vm10, %v2589_v61  ;;  %3374 = vmatmul.mubr.msk.f32.gmra.mxu1 %vm679_vm10, %v2589_v61 }
 0x841   :  { %2712 = vmatprep.mubr.f32.mxu0 %v5854_v3  ;;  %2801 = vmatprep.mubr.f32.mxu1 %v5854_v3 }
 0x844   :  { %3369 = vmatmul.mubr.msk.f32.gmra.mxu0 %vm679_vm10, %v2590_v62  ;;  %3375 = vmatmul.mubr.msk.f32.gmra.mxu1 %vm679_vm10, %v2590_v62 }
 0x845   :  { %2718 = vmatprep.mubr.f32.mxu0 %v5854_v3  ;;  %2807 = vmatprep.mubr.f32.mxu1 %v5854_v3 }
 0x848   :  { %3370 = vmatmul.mubr.msk.f32.gmra.mxu0 %vm679_vm10, %v2591_v36  ;;  %3376 = vmatmul.mubr.msk.f32.gmra.mxu1 %vm679_vm10, %v2591_v36 }
 0x849   :  { %3031 = vmatprep.mubr.f32.mxu0 %v5854_v3  ;;  %3102 = vmatprep.mubr.f32.mxu1 %v5854_v3 }
 0x8fc   :  { %v2702_v56 = vpop.f32.mrf.mxu0  ;;  %v2791_v23 = vpop.f32.mrf.mxu1 }
 0x8fd   :  { %v5441_v39 = vadd.f32 %v2702_v56, %v2595_v49  ;;  %v5443_v1 = vadd.f32 %v2791_v23, %v2595_v49 }
 0x8fe   :  { %v2704_v57 = vpop.f32.mrf.mxu0  ;;  %v2793_v26 = vpop.f32.mrf.mxu1 }
 0x8ff   :  { %v5439_v44 = vadd.f32 %v2704_v57, %v2595_v49  ;;  %v5448_v43 = vadd.f32 %v2793_v26, %v2595_v49  ;;  %v2846_v20 = vmul.f32 0.044715, %v5441_v39  ;;  %v2848_v11 = vmul.f32 0.044715, %v5443_v1 }
 0x900   :  { %v2708_v19 = vpop.f32.mrf.mxu0  ;;  %v2797_v21 = vpop.f32.mrf.mxu1 }
 0x901   :  { %v5445_v46 = vadd.f32 %v2708_v19, %v2600_v8  ;;  %v2847_v45 = vmul.f32 0.044715, %v5439_v44  ;;  %v5450_v50 = vadd.f32 %v2797_v21, %v2600_v8  ;;  %v2849_v60 = vmul.f32 0.044715, %v5448_v43 }
 0x902   :  { %v2710_v22 = vpop.f32.mrf.mxu0  ;;  %v2799_v54 = vpop.f32.mrf.mxu1  ;;  %v5469_v51 = vmul.f32 %v2846_v20, %v5441_v39  ;;  %v5473_v14 = vmul.f32 %v2848_v11, %v5443_v1  ;;  %v5476_v47 = vmul.f32 0.7978846, %v5439_v44  ;;  %v5482_v55 = vmul.f32 0.7978846, %v5448_v43 }
 0x903   :  { %v2850_v42 = vmul.f32 0.044715, %v5445_v46  ;;  %v2852_v59 = vmul.f32 0.044715, %v5450_v50  ;;  %v5456_v28 = vadd.f32 %v2710_v22, %v2600_v8  ;;  %v2863_v63 = vmul.f32 %v2847_v45, %v5439_v44 }
 0x904   :  { %v2714_v34 = vpop.f32.mrf.mxu0  ;;  %v2803_v40 = vpop.f32.mrf.mxu1  ;;  %v5464_v5 = vadd.f32 %v2799_v54, %v2600_v8  ;;  %v2865_v16 = vmul.f32 %v2849_v60, %v5448_v43  ;;  %v2834_v7 = vmul.f32 0.7978846, %v5445_v46  ;;  %v2836_v4 = vmul.f32 0.7978846, %v5450_v50 }
 0x905   :  { %v2866_v2 = vmul.f32 %v2850_v42, %v5445_v46  ;;  %v5461_v17 = vadd.f32 %v2714_v34, %v2605_v0  ;;  %v2868_v24 = vmul.f32 %v2852_v59, %v5450_v50  ;;  %v5466_v38 = vadd.f32 %v2803_v40, %v2605_v0 }
 0x906   :  { %v2716_v13 = vpop.f32.mrf.mxu0  ;;  %v2805_v29 = vpop.f32.mrf.mxu1  ;;  %v2851_v27 = vmul.f32 0.044715, %v5456_v28  ;;  %v5479_v41 = vadd.f32 1.0, %v2863_v63  ;;  %v2853_v30 = vmul.f32 0.044715, %v5464_v5  ;;  %v5499_v35 = vadd.f32 1.0, %v2865_v16 }
 0x907   :  { %v2882_v33 = vadd.f32 1.0, %v2866_v2  ;;  %v2884_v48 = vadd.f32 1.0, %v2868_v24  ;;  %v2854_v9 = vmul.f32 0.044715, %v5461_v17  ;;  %v2856_v32 = vmul.f32 0.044715, %v5466_v38 }
 0x908   :  { %v2720_v12 = vpop.f32.mrf.mxu0  ;;  %v2809_v31 = vpop.f32.mrf.mxu1  ;;  %v2867_v6 = vmul.f32 %v2851_v27, %v5456_v28  ;;  %v5491_v37 = vadd.f32 %v2716_v13, %v2605_v0  ;;  %v5493_v18 = vadd.f32 %v2805_v29, %v2605_v0  ;;  %v2835_v8 = vmul.f32 0.7978846, %v5456_v28 }
 0x909   :  { %v2870_v10 = vmul.f32 %v2854_v9, %v5461_v17  ;;  %v2898_v15 = vmul.f32 %v2882_v33, %v2834_v7  ;;  %v2900_v25 = vmul.f32 %v2884_v48, %v2836_v4  ;;  %v2872_v62 = vmul.f32 %v2856_v32, %v5466_v38 }
 0x90a   :  { %v5497_v36 = vadd.f32 %v2720_v12, %v5437_v53  ;;  %v2855_v56 = vmul.f32 0.044715, %v5491_v37  ;;  %v5504_v23 = vadd.f32 %v2809_v31, %v5437_v53  ;;  %v2869_v49 = vmul.f32 %v2853_v30, %v5464_v5  ;;  %v2722_v19 = vpop.f32.mrf.mxu0  ;;  %v2811_v54 = vpop.f32.mrf.mxu1 }
 0x90b   :  { %v2886_v61 = vadd.f32 1.0, %v2870_v10  ;;  %v2838_v0 = vmul.f32 0.7978846, %v5461_v17  ;;  %v2888_v57 = vadd.f32 1.0, %v2872_v62  ;;  %v2857_v26 = vmul.f32 0.044715, %v5493_v18 }
 0x90c   :  { %3442 = vtanh.f32 %v2898_v15  ;;  %v2840_v21 = vmul.f32 0.7978846, %v5466_v38  ;;  %v2871_v45 = vmul.f32 %v2855_v56, %v5491_v37  ;;  %v2858_v22 = vmul.f32 0.044715, %v5497_v36 }
 0x90d   :  { %3444 = vtanh.f32 %v2900_v25  ;;  %v2883_v20 = vadd.f32 1.0, %v2867_v6  ;;  %v2902_v42 = vmul.f32 %v2886_v61, %v2838_v0  ;;  %v2873_v34 = vmul.f32 %v2857_v26, %v5493_v18 }
 0x90e   :  { %v2887_v40 = vadd.f32 1.0, %v2871_v45  ;;  %v2874_v11 = vmul.f32 %v2858_v22, %v5497_v36  ;;  %v2860_v59 = vmul.f32 0.044715, %v5504_v23  ;;  %v5516_v63 = vadd.f32 %v2722_v19, %v5437_v53 }
 0x90f   :  { %v2904_v60 = vmul.f32 %v2888_v57, %v2840_v21  ;;  %v2839_v2 = vmul.f32 0.7978846, %v5491_v37  ;;  %v2889_v13 = vadd.f32 1.0, %v2873_v34  ;;  %v5520_v24 = vadd.f32 %v2811_v54, %v5437_v53 }
 0x910   :  { %v2842_v29 = vmul.f32 0.7978846, %v5497_v36  ;;  %v2890_v33 = vadd.f32 1.0, %v2874_v11  ;;  %v2876_v27 = vmul.f32 %v2860_v59, %v5504_v23  ;;  %v2859_v48 = vmul.f32 0.044715, %v5516_v63 }
 0x911   :  { %3446 = vtanh.f32 %v2902_v42  ;;  %v2841_v9 = vmul.f32 0.7978846, %v5493_v18  ;;  %v2844_v16 = vmul.f32 0.7978846, %v5504_v23  ;;  %v2861_v7 = vmul.f32 0.044715, %v5520_v24 }
 0x912   :  { %v2906_v12 = vmul.f32 %v2890_v33, %v2842_v29  ;;  %v2892_v4 = vadd.f32 1.0, %v2876_v27  ;;  %v2875_v30 = vmul.f32 %v2859_v48, %v5516_v63  ;;  %v2903_v53 = vmul.f32 %v2887_v40, %v2839_v2 }
 0x913   :  { %v2885_v10 = vadd.f32 1.0, %v2869_v49  ;;  %3448 = vtanh.f32 %v2904_v60  ;;  %v2877_v32 = vmul.f32 %v2861_v7, %v5520_v24  ;;  %v2905_v31 = vmul.f32 %v2889_v13, %v2841_v9 }
 0x914   :  { %3450 = vtanh.f32 %v2906_v12  ;;  %v2908_v15 = vmul.f32 %v2892_v4, %v2844_v16  ;;  %v2843_v6 = vmul.f32 0.7978846, %v5516_v63  ;;  %v2891_v25 = vadd.f32 1.0, %v2875_v30 }
 0x915   :  { %v2837_v61 = vmul.f32 0.7978846, %v5464_v5  ;;  %v2845_v62 = vmul.f32 0.7978846, %v5520_v24  ;;  %v2893_v56 = vadd.f32 1.0, %v2877_v32  ;;  %3452 = vtanh.f32 %v2903_v53 }
 0x916   :  { %v2878_v0 = vadd.f32 1.0, %v5469_v51  ;;  %3454 = vtanh.f32 %v2908_v15  ;;  %v2907_v57 = vmul.f32 %v2891_v25, %v2843_v6  ;;  %v2899_v49 = vmul.f32 %v2883_v20, %v2835_v8 }
 0x917   :  { %v2880_v26 = vadd.f32 1.0, %v5473_v14  ;;  %v2909_v19 = vmul.f32 %v2893_v56, %v2845_v62  ;;  %3456 = vtanh.f32 %v2905_v31  ;;  %v2901_v21 = vmul.f32 %v2885_v10, %v2837_v61 }
 0x918   :  { %v2830_v45 = vmul.f32 0.7978846, %v5441_v39  ;;  %3458 = vtanh.f32 %v2907_v57  ;;  %v2895_v22 = vmul.f32 %v5479_v41, %v5476_v47  ;;  %v2832_v42 = vmul.f32 0.7978846, %v5443_v1 }
 0x919   :  { %v3443_v54 = vpop.eup %3442  ;;  %3460 = vtanh.f32 %v2909_v19  ;;  %v2897_v51 = vmul.f32 %v5499_v35, %v5482_v55  ;;  %v2818_v59 = vmul.f32 0.5, %v5445_v46  ;;  %v5543_v60 = vmul.f32 0.5, %v5441_v39 }
 0x91a   :  { %v3445_v34 = vpop.eup %3444  ;;  %3462 = vtanh.f32 %v2899_v49  ;;  %v2894_v8 = vmul.f32 %v2878_v0, %v2830_v45  ;;  %v2896_v14 = vmul.f32 %v2880_v26, %v2832_v42  ;;  %v2820_v35 = vmul.f32 0.5, %v5450_v50 }
 0x91b   :  { %3464 = vtanh.f32 %v2901_v21  ;;  %v2822_v2 = vmul.f32 0.5, %v5461_v17  ;;  %v2824_v13 = vmul.f32 0.5, %v5466_v38  ;;  %v2826_v29 = vmul.f32 0.5, %v5497_v36 }
 0x91c   :  { %3466 = vtanh.f32 %v2895_v22  ;;  %v2828_v27 = vmul.f32 0.5, %v5504_v23  ;;  %v2827_v48 = vmul.f32 0.5, %v5516_v63  ;;  %v2823_v46 = vmul.f32 0.5, %v5491_v37 }
 0x91d   :  { %3468 = vtanh.f32 %v2897_v51  ;;  %v2829_v7 = vmul.f32 0.5, %v5520_v24  ;;  %v2825_v38 = vmul.f32 0.5, %v5493_v18  ;;  %v2819_v63 = vmul.f32 0.5, %v5456_v28 }
 0x91e   :  { %v3447_v20 = vpop.eup %3446  ;;  %3470 = vtanh.f32 %v2894_v8  ;;  %v2930_v25 = vadd.f32 1.0, %v3443_v54  ;;  %v2932_v56 = vadd.f32 1.0, %v3445_v34  ;;  %v2821_v26 = vmul.f32 0.5, %v5464_v5 }
 0x91f   :  { %3472 = vtanh.f32 %v2896_v14  ;;  %v2934_v36 = vadd.f32 1.0, %v3447_v20  ;;  %v2815_v22 = vmul.f32 0.5, %v5439_v44  ;;  %v2817_v34 = vmul.f32 0.5, %v5448_v43  ;;  %v2958_v44 = vld [vmem:[%s5601_s10] sm:$0xf] }
 0x920   :  { %v3449_v40 = vpop.eup %3448  ;;  %v2946_v51 = vmul.f32 %v2930_v25, %v2818_v59  ;;  %v2948_v14 = vmul.f32 %v2932_v56, %v2820_v35  ;;  %v2816_v20 = vmul.f32 0.5, %v5443_v1  ;;  %v3119_v1 = vld [vmem:[%s5602_s12] sm:$0xff] }
 0x921   :  { %v3451_v11 = vpop.eup %3450  ;;  %v2936_v23 = vadd.f32 1.0, %v3449_v40  ;;  %v2950_v49 = vmul.f32 %v2934_v36, %v2822_v2  ;;  %3123 = vperm.xlu0 %3435, %v3119_v1  }
 0x922   :  { %v3453_v47 = vpop.eup %3452  ;;  %v2938_v9 = vadd.f32 1.0, %v3451_v11 }
 0x923   :  { %v3455_v41 = vpop.eup %3454  ;;  %v2935_v50 = vadd.f32 1.0, %v3453_v47  ;;  %v2952_v21 = vmul.f32 %v2936_v23, %v2824_v13 }
 0x924   :  { %v3457_v55 = vpop.eup %3456  ;;  %v2940_v12 = vadd.f32 1.0, %v3455_v41  ;;  %v2954_v15 = vmul.f32 %v2938_v9, %v2826_v29  ;;  %v2961_v41 = vpop.permute.xlu1 %2960 }
 0x925   :  { %v3459_v33 = vpop.eup %3458  ;;  %v2937_v30 = vadd.f32 1.0, %v3457_v55  ;;  %v2951_v62 = vmul.f32 %v2935_v50, %v2823_v46 }
 0x926   :  { %v3461_v16 = vpop.eup %3460  ;;  %v2939_v39 = vadd.f32 1.0, %v3459_v33  ;;  %v2956_v61 = vmul.f32 %v2940_v12, %v2828_v27 }
 0x927   :  { %v3463_v4 = vpop.eup %3462  ;;  %v2941_v17 = vadd.f32 1.0, %v3461_v16  ;;  %v2953_v57 = vmul.f32 %v2937_v30, %v2825_v38  ;;  %v3120_v16 = vld [vmem:[%s5603_s11] sm:$0xff] }
 0x928   :  { %v3465_v53 = vpop.eup %3464  ;;  %v2955_v10 = vmul.f32 %v2939_v39, %v2827_v48  ;;  %v2931_v32 = vadd.f32 1.0, %v3463_v4 }
 0x929   :  { %v3467_v31 = vpop.eup %3466  ;;  %v2957_v37 = vmul.f32 %v2941_v17, %v2829_v7  ;;  %v2933_v6 = vadd.f32 1.0, %v3465_v53 }
 0x92a   :  { %v3469_v24 = vpop.eup %3468  ;;  %2991 = vmatprep.subr.mxu0 %v2955_v10  ;;  %v2927_v0 = vadd.f32 1.0, %v3467_v31  ;;  %v2947_v45 = vmul.f32 %v2931_v32, %v2819_v63 }
 0x92b   :  { %v3471_v18 = vpop.eup %3470  ;;  %3062 = vmatprep.subr.mxu1 %v2957_v37  ;;  %2992 = vmatpush1.msra.mxu0 %v2954_v15  ;;  %v2929_v28 = vadd.f32 1.0, %v3469_v24  ;;  %v2949_v42 = vmul.f32 %v2933_v6, %v2821_v26 }
 0x92c   :  { %v3473_v19 = vpop.eup %3472  ;;  %3063 = vmatpush1.msra.mxu1 %v2956_v61  ;;  %2993 = vmatprep.subr.mxu0 %v2951_v62  ;;  %v2926_v54 = vadd.f32 1.0, %v3471_v18  ;;  %v2943_v5 = vmul.f32 %v2927_v0, %v2815_v22 }
 0x92d   :  { %3064 = vmatprep.subr.mxu1 %v2953_v57  ;;  %2994 = vmatpush1.msra.mxu0 %v2950_v49  ;;  %v2928_v8 = vadd.f32 1.0, %v3473_v19  ;;  %v2945_v40 = vmul.f32 %v2929_v28, %v2817_v34 }
 0x92e   :  { %3065 = vmatpush1.msra.mxu1 %v2952_v21  ;;  %2995 = vmatprep.subr.mxu0 %v2947_v45  ;;  %v2942_v11 = vmul.f32 %v2926_v54, %v5543_v60 }
 0x92f   :  { %3066 = vmatprep.subr.mxu1 %v2949_v42  ;;  %2996 = vmatpush1.msra.mxu0 %v2946_v51  ;;  %v2944_v43 = vmul.f32 %v2928_v8, %v2816_v20 }
 0x930   :  { %3067 = vmatpush1.msra.mxu1 %v2948_v14  ;;  %2997 = vmatprep.subr.mxu0 %v2943_v5 }
 0x931   :  { %3068 = vmatprep.subr.mxu1 %v2945_v40  ;;  %2998 = vmatpush1.msra.mxu0 %v2942_v11 }
 0x932   :  { %3069 = vmatpush1.msra.mxu1 %v2944_v43  ;;  %3377 = vmatmul.mubr.msk.f32.vlgmr.msra.gmra.mxu0 %vm2963_vm14, %v2958_v44 }
 0x933   :  { %3378 = vmatmul.mubr.msk.f32.vlgmr.msra.gmra.mxu1 %vm2963_vm14, %v2958_v44  ;;  %3205 = vmatprep.mubr.f32.mxu0 %v5854_v3 }
 0x934   :  { %3276 = vmatprep.mubr.f32.mxu1 %v5854_v3 }
 0x9f2   :  { %v3033_v47 = vpop.f32.mrf.mxu0 }
 0x9f3   :  { %v3104_v59 = vpop.f32.mrf.mxu1  ;;  %v3034_v35 = vadd.f32 %v3033_v47, %v2961_v41 }
 0x9f4   :  { %v3035_v60 = vpop.f32.mrf.mxu0  ;;  %v3105_v13 = vadd.f32 %v3104_v59, %v2961_v41 }
 0x9f5   :  { %v3106_v55 = vpop.f32.mrf.mxu1  ;;  %v3036_v2 = vadd.f32 %v3035_v60, %v2961_v41 }
 0x9f6   :  { %v3107_v29 = vadd.f32 %v3106_v55, %v2961_v41 }
 0x9f7   :  { %v3113_v33 = vcombine.low %v3034_v35, %v3036_v2 }
 0x9f8   :  { %v3114_v27 = vcombine.low %v3105_v13, %v3107_v29 }
 0x9f9   :  { %v3117_v48 = vadd.f32 %v3113_v33, %v5364_v52  ;;  %v3124_v52 = vpop.permute.xlu0 %3123 }
 0x9fa   :  { %v3118_v3 = vadd.f32 %v3114_v27, %v5370_v58 }
 0x9fb   :  { %v3128_v9 = vcombine.high %v3117_v48, %v3117_v48 }
 0x9fc   :  { %v3129_v46 = vcombine.high %v3118_v3, %v3118_v3 }
 0x9fd   :  { %3379 = vmatprep.subr.msk.mxu0 %vm600_vm9, %v3128_v9 }
 0x9fe   :  { %3382 = vmatprep.subr.msk.mxu1 %vm600_vm9, %v3129_v46  ;;  %3380 = vmatpush1.msk.msra.mxu0 %vm600_vm9, %v3117_v48 }
 0x9ff   :  { %3383 = vmatpush1.msk.msra.mxu1 %vm600_vm9, %v3118_v3  ;;  %3381 = vmatmul.mubr.msk.f32.vlgmr.msra.gmra.mxu0 %vm679_vm10, %v3120_v16 }
 0xa00   :  { %3384 = vmatmul.mubr.msk.f32.vlgmr.msra.gmra.mxu1 %vm679_vm10, %v3120_v16 }
 0xabf   :  { %v3207_v58 = vpop.f32.mrf.mxu0 }
 0xac0   :  { %v3278_v39 = vpop.f32.mrf.mxu1  ;;  %v3208_v7 = vadd.f32 %v3207_v58, %v3124_v52 }
 0xac1   :  { %v3279_v12 = vadd.f32 %v3278_v39, %v3124_v52  ;;  %v3209_v50 = vpop.f32.mrf.mxu0 }
 0xac2   :  { %3283 = vst [vmem:[%s5604_s13] sm:$0xff] %v3208_v7  ;;  %v3210_v4 = vadd.f32 %v3209_v50, %v3124_v52  ;;  %v3280_v17 = vpop.f32.mrf.mxu1 }
 0xac3   :  { %3285 = vst [vmem:[%s5604_s13 + $0x10] sm:$0xff] %v3279_v12  ;;  %v3281_v38 = vadd.f32 %v3280_v17, %v3124_v52 }
 0xac4   :  { %3284 = vst [vmem:[%s5604_s13 + $0x8] sm:$0xff] %v3210_v4 }
 0xac5   :  { %3286 = vst [vmem:[%s5604_s13 + $0x18] sm:$0xff] %v3281_v38 }

</bundles_post_ra>
